<compile_context>
chip_gen: v7x
topology: tpu7x:2x2x1
jax: 0.10.0
libtpu: 0.0.40
codegen_flags: <defaults>
</compile_context>

<pallas_src>
import functools

import numpy as np
import jax
import jax.numpy as jnp
from jax.experimental import pallas as pl
from jax.experimental.pallas import tpu as pltpu

# -----------------------------------------------------------------------------
# Small config consistent with the module (defaults scaled down; emb_dim=128 is
# the module default and lane-friendly; num_nodes=128 keeps the one-hot gather
# contraction MXU-aligned on v5e's 128^2 MXU as well).
# -----------------------------------------------------------------------------
NUM_NODES = 128
EMB_DIM = 128
WALK_LENGTH = 8          # module asserts walk_length >= window_size + 1
WINDOW_SIZE = 3
NEG_WEIGHT = 1.0
NEGATIVE_SIZE = 2
BATCH_SIZE = 4


def build_window_index_lists(walk_length, window_size):
    """Replicates self.idx_list_src / self.idx_list_dst from __init__."""
    src, dst = [], []
    for i in range(walk_length):
        for j in range(max(0, i - window_size), i):
            src.append(j)
            dst.append(i)
        for j in range(i + 1, min(walk_length, i + 1 + window_size)):
            src.append(j)
            dst.append(i)
    return np.asarray(src, np.int32), np.asarray(dst, np.int32)


# -----------------------------------------------------------------------------
# Index construction (mirrors forward()); only node-id vectors leave this step.
# -----------------------------------------------------------------------------
def build_pair_node_ids(batch_walk, neg_key):
    B, L = batch_walk.shape
    walk_flat = batch_walk.reshape(-1).astype(jnp.int32)

    src_np, dst_np = build_window_index_lists(WALK_LENGTH, WINDOW_SIZE)
    offsets = (jnp.arange(B, dtype=jnp.int32) * L)[:, None]
    idx_src = (offsets + jnp.asarray(src_np)[None, :]).reshape(-1)
    idx_dst = (offsets + jnp.asarray(dst_np)[None, :]).reshape(-1)

    pos_src_ids = walk_flat[idx_src]
    pos_dst_ids = walk_flat[idx_dst]

    # neg_idx_list_src = each positive-dst index repeated NEGATIVE_SIZE times.
    neg_idx_src = jnp.repeat(idx_dst, NEGATIVE_SIZE)
    neg_src_ids = walk_flat[neg_idx_src]

    # fast_neg path: shuffle list(range(B*L)) * (negative_size*window_size*2)
    # and keep the first len(neg_idx_src) entries.
    # TODO(synk): PyTorch uses unseeded python random.shuffle; replaced with a
    # deterministic jax.random.permutation with identical sampling semantics.
    pool = jnp.tile(jnp.arange(B * L, dtype=jnp.int32),
                    NEGATIVE_SIZE * WINDOW_SIZE * 2)
    neg_idx_dst = jax.random.permutation(neg_key, pool)[: neg_idx_src.shape[0]]
    neg_dst_ids = walk_flat[neg_idx_dst]

    return pos_src_ids, pos_dst_ids, neg_src_ids, neg_dst_ids


def _choose_row_tile(r_total):
    """Fat, lane-aligned (multiple-of-128) row tiles.

    Aims for >= 2 grid steps so the 'parallel' grid axis can shard across both
    TensorCores on v7x; tiles are capped at 1024 so per-step MXU fill stays high
    on v6e/v7x while VMEM use stays small on every generation.
    """
    half = -(-r_total // 2)                    # ceil(r_total / 2)
    tile = -(-half // 128) * 128               # round up to a lane multiple
    return int(min(max(tile, 128), 1024))


def pack_pair_ids(pos_src_ids, pos_dst_ids, neg_src_ids, neg_dst_ids):
    """One (num_tiles, 2, ROW_TILE) int32 slab: [tile, {src,dst}, lane-dense row].

    Positive rows come first, negative rows after; per-row sign / weight are NOT
    materialized -- the kernel rebuilds them from the global row index.
    """
    r_pos = int(pos_src_ids.shape[0])
    r_neg = int(neg_src_ids.shape[0])
    r_total = r_pos + r_neg
    src_ids = jnp.concatenate([pos_src_ids, neg_src_ids]).astype(jnp.int32)
    dst_ids = jnp.concatenate([pos_dst_ids, neg_dst_ids]).astype(jnp.int32)

    row_tile = _choose_row_tile(r_total)
    num_tiles = -(-r_total // row_tile)
    pad = num_tiles * row_tile - r_total
    if pad:
        # Pad id 0 is a valid node: its embedding gets gathered but the kernel
        # assigns weight 0 to rows >= r_total, so padding never biases the loss.
        src_ids = jnp.pad(src_ids, (0, pad))
        dst_ids = jnp.pad(dst_ids, (0, pad))
    ids = jnp.stack([src_ids.reshape(num_tiles, row_tile),
                     dst_ids.reshape(num_tiles, row_tile)], axis=1)
    return ids, r_pos, r_total


# -----------------------------------------------------------------------------
# Pallas kernel: fused transposed gather (table^T @ onehot^T on the MXU) +
# score + clamp + -logsigmoid + weighted partial sum, one fat row tile per step.
# -----------------------------------------------------------------------------
def _raid_loss_kernel(node_tab_t_ref, ctx_tab_t_ref, ids_ref, out_ref, *,
                      row_tile, r_pos, r_total, w_pos, w_neg):
    d, n_nodes = node_tab_t_ref.shape

    ids = ids_ref[0]                               # (2, ROW_TILE) int32
    src_ids = ids[0:1, :]                          # (1, ROW_TILE) lane-dense
    dst_ids = ids[1:2, :]

    # Transposed one-hot gather: onehot^T is built directly in (N, rows) layout
    # from the lane-dense ids (no in-kernel transposes), so table^T @ onehot^T
    # lands embeddings in (D, rows) with the row axis on lanes.
    # NOTE: ids >= NUM_NODES would produce an all-zero one-hot column (zero
    # embedding, score 0) instead of an out-of-bounds error as PyTorch would.
    node_iota = jax.lax.broadcasted_iota(jnp.int32, (n_nodes, row_tile), 0)
    onehot_src_t = (node_iota == src_ids).astype(jnp.float32)      # (N, rows)
    onehot_dst_t = (node_iota == dst_ids).astype(jnp.float32)
    src_emb_t = jnp.dot(node_tab_t_ref[...], onehot_src_t,
                        precision=jax.lax.Precision.HIGHEST,
                        preferred_element_type=jnp.float32)        # (D, rows)
    dst_emb_t = jnp.dot(ctx_tab_t_ref[...], onehot_dst_t,
                        precision=jax.lax.Precision.HIGHEST,
                        preferred_element_type=jnp.float32)

    # Lane-dense epilogue: everything below is (1, ROW_TILE).
    score = jnp.sum(src_emb_t * dst_emb_t, axis=0, keepdims=True)
    score = jnp.clip(score, -6.0, 6.0)

    # sign / weight from the global row index (no HBM streams):
    #   row <  r_pos           -> positive: -logsigmoid(+s) = log1p(exp(-s))
    #   r_pos <= row < r_total -> negative: -logsigmoid(-s) = log1p(exp(+s))
    #   row >= r_total         -> padding: term is finite (clamped score) and
    #                             weight 0 zeroes it -- do NOT change pad weights.
    gid = (pl.program_id(0) * row_tile
           + jax.lax.broadcasted_iota(jnp.int32, (1, row_tile), 1))
    is_pos = gid < r_pos
    sign = jnp.where(is_pos, -1.0, 1.0).astype(jnp.float32)
    weight = jnp.where(gid < r_total,
                       jnp.where(is_pos, w_pos, w_neg),
                       0.0).astype(jnp.float32)

    partial = jnp.sum(weight * jnp.log1p(jnp.exp(sign * score)))    # scalar

    # (1,1,128) lane-dense unmasked store; per-tile partials summed in wrapper,
    # keeping the grid axis fully parallel (sharded across both TCs on v7x).
    out_ref[...] = jnp.full((1, 1, 128), partial, jnp.float32)


def raid_loss_pallas(node_embed, context_embed, ids_packed, r_pos, r_total):
    n_nodes, d = node_embed.shape
    num_tiles, _, row_tile = ids_packed.shape
    r_neg = r_total - r_pos
    w_pos = 1.0 / float(r_pos)
    w_neg = float(NEGATIVE_SIZE) * float(NEG_WEIGHT) / float(r_neg)

    # One-time (tiny) transposes so the gather matmuls emit (D, rows) directly.
    node_tab_t = node_embed.T
    ctx_tab_t = context_embed.T

    kernel = functools.partial(_raid_loss_kernel, row_tile=int(row_tile),
                               r_pos=int(r_pos), r_total=int(r_total),
                               w_pos=w_pos, w_neg=w_neg)

    # Tables stay resident in VMEM (constant index map).  At NUM_NODES=128 this
    # is ~256 KiB double-buffered; for node counts beyond ~8-16k (v7x's smaller
    # VMEM), switch the tables to memory_space=pl.ANY + DMA row gather instead.
    tab_spec = pl.BlockSpec((d, n_nodes), lambda i: (0, 0))
    ids_spec = pl.BlockSpec((1, 2, row_tile), lambda i: (i, 0, 0))

    partials = pl.pallas_call(
        kernel,
        out_shape=jax.ShapeDtypeStruct((num_tiles, 1, 128), jnp.float32),
        grid=(num_tiles,),
        in_specs=[tab_spec, tab_spec, ids_spec],
        out_specs=pl.BlockSpec((1, 1, 128), lambda i: (i, 0, 0)),
        compiler_params=pltpu.CompilerParams(
            dimension_semantics=("parallel",)),
    )(node_tab_t, ctx_tab_t, ids_packed)
    return jnp.sum(partials[:, 0, 0])


@jax.jit
def raid_attentive_walk_forward(node_embed, context_embed, batch_walk, neg_key):
    ids4 = build_pair_node_ids(batch_walk, neg_key)
    ids_packed, r_pos, r_total = pack_pair_ids(*ids4)
    return raid_loss_pallas(node_embed, context_embed, ids_packed,
                            r_pos, r_total)


# Pure-JAX reference of the full forward math (for correctness check).
def _reference_forward(node_embed, context_embed, batch_walk, neg_key):
    pos_src_ids, pos_dst_ids, neg_src_ids, neg_dst_ids = build_pair_node_ids(
        batch_walk, neg_key)
    pos_src = node_embed[pos_src_ids]
    pos_dst = context_embed[pos_dst_ids]
    neg_src = node_embed[neg_src_ids]
    neg_dst = context_embed[neg_dst_ids]
    ps = jnp.clip(jnp.sum(pos_src * pos_dst, axis=1), -6.0, 6.0)
    pos = jnp.mean(-jax.nn.log_sigmoid(ps))
    ns = jnp.clip(jnp.sum(neg_src * neg_dst, axis=1), -6.0, 6.0)
    neg = jnp.mean(-jax.nn.log_sigmoid(-ns)) * NEGATIVE_SIZE * NEG_WEIGHT
    return pos + neg


if __name__ == "__main__":
    key = jax.random.PRNGKey(0)
    k_node, k_ctx, k_walk, k_neg = jax.random.split(key, 4)

    # Parameter shapes from __init__: nn.Embedding(num_nodes, emb_dim) x2.
    # reset_parameters(): node_embed ~ U(-1/emb_dim, 1/emb_dim), context_embed=0.
    init_range = 1.0 / EMB_DIM
    node_embed = jax.random.uniform(
        k_node, (NUM_NODES, EMB_DIM), jnp.float32, -init_range, init_range)
    # NOTE: the module zeros context_embed; a deterministic random init is used
    # here so the kernel computes non-trivial scores (semantics unchanged).
    context_embed = jax.random.uniform(
        k_ctx, (NUM_NODES, EMB_DIM), jnp.float32, -init_range, init_range)

    batch_walk = jax.random.randint(
        k_walk, (BATCH_SIZE, WALK_LENGTH), 0, NUM_NODES, dtype=jnp.int32)

    # Run the Pallas-backed forward.
    loss = raid_attentive_walk_forward(node_embed, context_embed, batch_walk,
                                       k_neg)
    loss = jax.block_until_ready(loss)

    # Check against the pure-JAX reference (same sampled negative indices).
    ref = jax.block_until_ready(
        _reference_forward(node_embed, context_embed, batch_walk, k_neg))
    assert np.allclose(np.asarray(loss), np.asarray(ref), rtol=2e-5, atol=1e-5), \
        (float(loss), float(ref))

    print("KERNEL_OK")
</pallas_src>

<mosaic_0001>
module attributes {stable_mosaic.version = 11 : i64} {
  func.func @_raid_loss_kernel(%arg0: i32, %arg1: memref<128x128xf32, #tpu.memory_space<vmem>>, %arg2: memref<128x128xf32, #tpu.memory_space<vmem>>, %arg3: memref<1x2x256xi32, #tpu.memory_space<vmem>>, %arg4: memref<1x1x128xf32, #tpu.memory_space<vmem>>) attributes {dimension_semantics = [#tpu.dimension_semantics<parallel>], iteration_bounds = array<i64: 2>, scalar_prefetch = 0 : i64, scratch_operands = 0 : i64, tpu.core_type = #tpu.core_type<tc>, window_params = [{pipeline_mode = #tpu.pipeline_mode<synchronous>, transform_indices = @transform_0, window_bounds = array<i64: 128, 128>}, {pipeline_mode = #tpu.pipeline_mode<synchronous>, transform_indices = @transform_1, window_bounds = array<i64: 128, 128>}, {transform_indices = @transform_2, window_bounds = array<i64: 1, 2, 256>}, {transform_indices = @transform_3, window_bounds = array<i64: 1, 1, 128>}]} {
    %c0 = arith.constant 0 : index
    %c0_0 = arith.constant 0 : index
    %c0_1 = arith.constant 0 : index
    %0 = vector.load %arg3[%c0, %c0_0, %c0_1] : memref<1x2x256xi32, #tpu.memory_space<vmem>>, vector<1x2x256xi32>
    %1 = vector.shape_cast %0 : vector<1x2x256xi32> to vector<2x256xi32>
    %2 = vector.extract_strided_slice %1 {offsets = [0, 0], sizes = [1, 256], strides = [1, 1]} : vector<2x256xi32> to vector<1x256xi32>
    %3 = vector.extract_strided_slice %1 {offsets = [1, 0], sizes = [1, 256], strides = [1, 1]} : vector<2x256xi32> to vector<1x256xi32>
    %4 = tpu.iota {dimensions = array<i32: 0>} : vector<128x256xi32>
    %5 = vector.broadcast %2 : vector<1x256xi32> to vector<128x256xi32>
    %6 = arith.cmpi eq, %4, %5 : vector<128x256xi32>
    %7 = arith.extui %6 : vector<128x256xi1> to vector<128x256xi32>
    %8 = arith.sitofp %7 : vector<128x256xi32> to vector<128x256xf32>
    %9 = vector.broadcast %3 : vector<1x256xi32> to vector<128x256xi32>
    %10 = arith.cmpi eq, %4, %9 : vector<128x256xi32>
    %11 = arith.extui %10 : vector<128x256xi1> to vector<128x256xi32>
    %12 = arith.sitofp %11 : vector<128x256xi32> to vector<128x256xf32>
    %c0_2 = arith.constant 0 : index
    %c0_3 = arith.constant 0 : index
    %13 = vector.load %arg1[%c0_2, %c0_3] : memref<128x128xf32, #tpu.memory_space<vmem>>, vector<128x128xf32>
    %cst = arith.constant dense<0.000000e+00> : vector<128x256xf32>
    %14 = tpu.matmul %13, %8, %cst {dimension_numbers = #tpu.dot_dimension_numbers<[1], [0], [0], [1], [0, 0, 1, 1], [], []>, precision = #tpu.contract_precision<fp32>} : vector<128x128xf32>, vector<128x256xf32>, vector<128x256xf32> -> vector<128x256xf32>
    %c0_4 = arith.constant 0 : index
    %c0_5 = arith.constant 0 : index
    %15 = vector.load %arg2[%c0_4, %c0_5] : memref<128x128xf32, #tpu.memory_space<vmem>>, vector<128x128xf32>
    %cst_6 = arith.constant dense<0.000000e+00> : vector<128x256xf32>
    %16 = tpu.matmul %15, %12, %cst_6 {dimension_numbers = #tpu.dot_dimension_numbers<[1], [0], [0], [1], [0, 0, 1, 1], [], []>, precision = #tpu.contract_precision<fp32>} : vector<128x128xf32>, vector<128x256xf32>, vector<128x256xf32> -> vector<128x256xf32>
    %17 = arith.mulf %14, %16 : vector<128x256xf32>
    %cst_7 = arith.constant dense<0.000000e+00> : vector<256xf32>
    %18 = vector.multi_reduction <add>, %17, %cst_7 [0] : vector<128x256xf32> to vector<256xf32>
    %19 = vector.shape_cast %18 : vector<256xf32> to vector<1x256xf32>
    %cst_8 = arith.constant -6.000000e+00 : f32
    %cst_9 = arith.constant 6.000000e+00 : f32
    %20 = vector.broadcast %cst_8 : f32 to vector<1x256xf32>
    %21 = arith.maximumf %20, %19 : vector<1x256xf32>
    %22 = vector.broadcast %cst_9 : f32 to vector<1x256xf32>
    %23 = arith.minimumf %22, %21 : vector<1x256xf32>
    %c256_i32 = arith.constant 256 : i32
    %24 = arith.muli %arg0, %c256_i32 : i32
    %25 = tpu.iota {dimensions = array<i32: 1>} : vector<1x256xi32>
    %26 = vector.broadcast %24 : i32 to vector<1x256xi32>
    %27 = arith.addi %26, %25 : vector<1x256xi32>
    %c144_i32 = arith.constant 144 : i32
    %28 = vector.broadcast %c144_i32 : i32 to vector<1x256xi32>
    %29 = arith.cmpi slt, %27, %28 : vector<1x256xi32>
    %cst_10 = arith.constant -1.000000e+00 : f32
    %cst_11 = arith.constant 1.000000e+00 : f32
    %30 = vector.broadcast %cst_10 : f32 to vector<1x256xf32>
    %31 = vector.broadcast %cst_11 : f32 to vector<1x256xf32>
    %32 = arith.select %29, %30, %31 : vector<1x256xi1>, vector<1x256xf32>
    %c432_i32 = arith.constant 432 : i32
    %33 = vector.broadcast %c432_i32 : i32 to vector<1x256xi32>
    %34 = arith.cmpi slt, %27, %33 : vector<1x256xi32>
    %cst_12 = arith.constant 0.0069444445 : f32
    %cst_13 = arith.constant 0.0069444445 : f32
    %35 = vector.broadcast %cst_12 : f32 to vector<1x256xf32>
    %36 = vector.broadcast %cst_13 : f32 to vector<1x256xf32>
    %37 = arith.select %29, %35, %36 : vector<1x256xi1>, vector<1x256xf32>
    %cst_14 = arith.constant 0.000000e+00 : f32
    %38 = vector.broadcast %cst_14 : f32 to vector<1x256xf32>
    %39 = arith.select %34, %37, %38 : vector<1x256xi1>, vector<1x256xf32>
    %40 = arith.mulf %32, %23 : vector<1x256xf32>
    %41 = math.exp %40 : vector<1x256xf32>
    %42 = math.log1p %41 : vector<1x256xf32>
    %43 = arith.mulf %39, %42 : vector<1x256xf32>
    %44 = vector.shape_cast %43 : vector<1x256xf32> to vector<1x1x256xf32>
    %cst_15 = arith.constant dense<0.000000e+00> : vector<1xf32>
    %45 = vector.multi_reduction <add>, %44, %cst_15 [1, 2] : vector<1x1x256xf32> to vector<1xf32>
    %46 = vector.shape_cast %45 : vector<1xf32> to vector<1x1x1xf32>
    %47 = vector.extract %46[0, 0, 0] : f32 from vector<1x1x1xf32>
    %48 = vector.broadcast %47 : f32 to vector<1x1x128xf32>
    %c0_16 = arith.constant 0 : index
    %c0_17 = arith.constant 0 : index
    %c0_18 = arith.constant 0 : index
    %49 = vector.load %arg4[%c0_16, %c0_17, %c0_18] : memref<1x1x128xf32, #tpu.memory_space<vmem>>, vector<1x1x128xf32>
    tpu.vector_store %arg4[%c0_16, %c0_17, %c0_18], %48 {strides = array<i32>} : memref<1x1x128xf32, #tpu.memory_space<vmem>>, vector<1x1x128xf32>,
    return
  }
  func.func @transform_0(%arg0: i32) -> (i32, i32) {
    %c0_i32 = arith.constant 0 : i32
    %c0_i32_0 = arith.constant 0 : i32
    %c0_i32_1 = arith.constant 0 : i32
    return %c0_i32, %c0_i32_0 : i32, i32
  }
  func.func @transform_1(%arg0: i32) -> (i32, i32) {
    %c0_i32 = arith.constant 0 : i32
    %c0_i32_0 = arith.constant 0 : i32
    %c0_i32_1 = arith.constant 0 : i32
    return %c0_i32, %c0_i32_0 : i32, i32
  }
  func.func @transform_2(%arg0: i32) -> (i32, i32, i32) {
    %c0_i32 = arith.constant 0 : i32
    %c0_i32_0 = arith.constant 0 : i32
    %c0_i32_1 = arith.constant 0 : i32
    return %arg0, %c0_i32, %c0_i32_0 : i32, i32, i32
  }
  func.func @transform_3(%arg0: i32) -> (i32, i32, i32) {
    %c0_i32 = arith.constant 0 : i32
    %c0_i32_0 = arith.constant 0 : i32
    %c0_i32_1 = arith.constant 0 : i32
    return %arg0, %c0_i32, %c0_i32_0 : i32, i32, i32
  }
}

</mosaic_0001>

<bundles_post_ra>
// kernel: tile.9
= control target key start
LH: loop header
LB: loop body
LE: loop exit
PB: predicated region body
PF: predicated region fallthrough
CT: control target
= control target key end

     0   :  { %s35_s8 = smov 96   ;;  %vm3_vm0 = vcmask 261120   ;;  %s37_s15 = smov 64   ;;  %vm9_vm1 = vcmask 1048320   ;;  %vm15_vm2 = vcmask 785920   ;;  %vm21_vm3 = vcmask 523520   ;;  %s63_s0 = inlined_call_operand.vmem [shape: s32[12,32], index: 0, kind: input, shape index: {}]   ;;  %s64_s1 = inlined_call_operand.vmem [shape: s32[384], index: 1, kind: output, shape index: {}]  }
   0x1   :  { %v29_v0 = vld [vmem:[%s63_s0 + $0x3] ss:$4 sm:$0x7]   ;;  %v30_v1 = vld [vmem:[%s63_s0 + $0x2] ss:$4 sm:$0x7]  }
   0x2   :  { %7 = vrot.lane.b32.xlu0 %v29_v0, %s35_s8  ;;  %v31_v2 = vld [vmem:[%s63_s0 + $0x1] ss:$4 sm:$0x7]   ;;  %v2_v3 = vld [vmem:[%s63_s0] ss:$4 sm:$0x7]  }
   0x3   :  { %s36_s0 = smov 32   ;;  %4 = vst.msk [vmem:[#allocation0] sm:$0x7] %vm3_vm0, %v2_v3  }
   0x4   :  { %19 = vrot.lane.b32.xlu1 %v31_v2, %s36_s0 }
   0x6   :  { %13 = vrot.lane.b32.xlu0 %v30_v1, %s37_s15 }
  0x74   :  { %v8_v4 = vpop.permute.xlu0 %7  }
  0x75   :  { %10 = vst.msk [vmem:[#allocation0] sm:$0x7] %vm9_vm1, %v8_v4  }
  0x76   :  { %v20_v5 = vpop.permute.xlu1 %19  }
  0x78   :  { %v14_v6 = vpop.permute.xlu0 %13  }
  0x79   :  { %16 = vst.msk [vmem:[#allocation0] sm:$0x7] %vm15_vm2, %v14_v6  }
  0x7a   :  { %22 = vst.msk [vmem:[#allocation0] sm:$0x7] %vm21_vm3, %v20_v5  }
  0x81   :  { %v26_v7 = vld [vmem:[#allocation0] sm:$0xf] }
  0x82   :  { %28 = vst [vmem:[%s64_s1] sm:$0xf] %v26_v7 }

// kernel: raid_attentive_walk_forward.1
= control target key start
LH: loop header
LB: loop body
LE: loop exit
PB: predicated region body
PF: predicated region fallthrough
CT: control target
= control target key end

     0   :  { %s4827_s12 = smov 0   ;;  %s6928_s0 = inlined_call_operand.vmem [shape: f32[128,128], index: 0, kind: input, shape index: {}]   ;;  %s6929_s1 = inlined_call_operand.vmem [shape: f32[128,128], index: 1, kind: input, shape index: {}]   ;;  %s6930_s2 = inlined_call_operand.vmem [shape: s32[2,2,256], index: 2, kind: input, shape index: {}]   ;;  %s6931_s3 = inlined_call_operand.vmem [shape: f32[2,1,128], index: 3, kind: output, shape index: {}]  }
   0x1 LB: > { %s4833_s13 = sadd.s32 4294967295, %s4802_s12   ;;  %p3806_p0 = scmp.ge.s32.totalorder %s4802_s12, 1  ;;  %s4802_s12 = sphi %s4827_s12, %s13_s12  }
   0x2   : > { %p137_p1 = scmp.lt.s32.totalorder %s4802_s12, 3 }
   0x4   : > { %p138_p2 = pnand %p3806_p0, %p137_p1 }
   0x6   : > { %141 = sbr.rel (%p138_p2) target bundleno = 984 (0x3d8), region = 32 }
   0xd   : > { %p159_p3 = scmp.lt.s32.totalorder %s4833_s13, 1  ;;  %v6932_v0 = vlaneseq  ;;  %v409_v1 = vld [vmem:[%s6928_s0] sm:$0xff]  ;;  %v6957_v3 = vmov 0.0   ;;  %v4853_v6 = vld [vmem:[%s6928_s0 + $0x8] sm:$0xff]  ;;  %v4863_v8 = vld [vmem:[%s6928_s0 + $0x10] sm:$0xff]  ;;  %v7340_v48 = vmov 0 }
   0xe   : > { %v2015_v2 = vld [vmem:[%s6929_s1] sm:$0xff]  ;;  %521 = vmatprep.mubr.f32.mxu0 %v6957_v3  ;;  %2127 = vmatprep.mubr.f32.mxu1 %v6957_v3  ;;  %v4846_v4 = vand.u32 4294901760, %v409_v1  ;;  %v4858_v7 = vld [vmem:[%s6929_s1 + $0x8] sm:$0xff]  ;;  %v4872_v10 = vand.u32 4294901760, %v4853_v6  ;;  %v4880_v12 = vld [vmem:[%s6929_s1 + $0x10] sm:$0xff]  ;;  %v4889_v15 = vand.u32 4294901760, %v4863_v8 }
   0xf   : > { %v4848_v5 = vand.u32 4294901760, %v2015_v2  ;;  %s4866_s24 = scalar_select %p159_p3, %s4833_s13, 1  ;;  %v4869_v9 = vshrl.u32 %v6932_v0, 7  ;;  %v4875_v11 = vand.u32 4294901760, %v4858_v7  ;;  %v4892_v16 = vand.u32 4294901760, %v4880_v12 }
  0x10   : > { %7332 = vst [vmem:[#allocation2_spill] sm:$0xff] %v4846_v4  ;;  %7334 = vst [vmem:[#allocation4_spill] sm:$0xff] %v4872_v10  ;;  %v4883_v13 = vsub.f32 %v409_v1, %v4846_v4  ;;  %v6937_v51 = vmov 1.0|1.0   ;;  %v7345_v54 = vmov 0  ;;  %v7348_v59 = vmov 0 }
  0x11   : > { %7333 = vst [vmem:[#allocation3_spill] sm:$0xff] %v4848_v5  ;;  %7335 = vst [vmem:[#allocation5_spill] sm:$0xff] %v4875_v11  ;;  %v4886_v14 = vsub.f32 %v2015_v2, %v4848_v5  ;;  %s4070_s27 = sshll.u32 %s4866_s24, 2  ;;  %v170_v17 = vadd.s32 8, %v4869_v9  ;;  %v187_v18 = vsub.s32 0, %v4869_v9  ;;  %v191_v19 = vsub.s32 2, %v4869_v9  ;;  %s166_s10 = scalar_lea.vmem %s6931_s3, %s4866_s24 }
  0x12   : > { %7336 = vst [vmem:[#allocation6_spill] sm:$0xff] %v4883_v13  ;;  %7338 = vst [vmem:[#allocation8_spill] sm:$0xff] %v4889_v15  ;;  %v299_v20 = vsub.s32 1, %v4869_v9  ;;  %s163_s30 = scalar_lea.vmem %s6930_s2, %s4070_s27  ;;  %v303_v21 = vsub.s32 3, %v4869_v9  ;;  %v4904_v22 = vadd.s32 16, %v4869_v9  ;;  %v4907_v23 = vadd.s32 24, %v4869_v9 }
  0x13   : > { %7337 = vst [vmem:[#allocation7_spill] sm:$0xff] %v4886_v14  ;;  %7339 = vst [vmem:[#allocation9_spill] sm:$0xff] %v4892_v16  ;;  %v4910_v24 = vadd.s32 32, %v4869_v9  ;;  %v167_v25 = vld [vmem:[%s163_s30] sm:$0xf]  ;;  %v4913_v26 = vadd.s32 40, %v4869_v9 }
  0x14   : > { %v4916_v27 = vadd.s32 48, %v4869_v9  ;;  %v4919_v28 = vadd.s32 56, %v4869_v9  ;;  %v4922_v29 = vadd.s32 64, %v4869_v9  ;;  %v192_v30 = vrot.slane %v167_v25, %v191_v19  ;;  %s4067_s8 = sshll.u32 %s4833_s13, 8 }
  0x15   : > { %v304_v31 = vrot.slane %v167_v25, %v303_v21  ;;  %v188_v32 = vrot.slane %v167_v25, %v187_v18  ;;  %v300_v33 = vrot.slane %v167_v25, %v299_v20  ;;  %v4925_v34 = vadd.s32 72, %v4869_v9 }
  0x16   : > { %v4928_v35 = vadd.s32 80, %v4869_v9  ;;  %v4931_v36 = vadd.s32 88, %v4869_v9  ;;  %v4934_v37 = vadd.s32 96, %v4869_v9  ;;  %v4936_v38 = vrot.slane %v192_v30, %v187_v18 }
  0x17   : > { %v4938_v39 = vrot.slane %v304_v31, %v299_v20  ;;  %v4940_v40 = vrot.slane %v188_v32, %v187_v18  ;;  %v4942_v41 = vrot.slane %v300_v33, %v299_v20  ;;  %v4945_v42 = vadd.s32 104, %v4869_v9 }
  0x18   : > { %v4948_v43 = vadd.s32 112, %v4869_v9  ;;  %v4951_v44 = vadd.s32 120, %v4869_v9  ;;  %vm202_vm0 = vcmp.eq.s32.totalorder %v4869_v9, %v4936_v38  ;;  %vm204_vm1 = vcmp.eq.s32.totalorder %v170_v17, %v4936_v38 }
  0x19   : > { %vm314_vm2 = vcmp.eq.s32.totalorder %v4869_v9, %v4938_v39  ;;  %vm316_vm3 = vcmp.eq.s32.totalorder %v170_v17, %v4938_v39  ;;  %v3810_v46 = vsel %vm202_vm0, 1.0, %v6957_v3  ;;  %v3812_v47 = vsel %vm204_vm1, 1.0, %v6957_v3  ;;  %vm4962_vm4 = vmpackc.low %vm204_vm1, %vm202_vm0 }
  0x1a   : > { %v7341_v48 = vsel %vm4962_vm4, 4294967295, %v7340_v48  ;;  %v3842_v49 = vsel %vm314_vm2, 1.0, %v6957_v3  ;;  %v3844_v50 = vsel %vm316_vm3, 1.0, %v6957_v3  ;;  %4072 = vmatprep.subr.msk.bf16.mxu0 %vm4962_vm4, %v6937_v51  ;;  %v4971_v52 = vsub.f32 %v3810_v46, %v3810_v46  ;;  %vm4975_vm5 = vmpackc.low %vm316_vm3, %vm314_vm2 }
  0x1b   : > { %7342 = vst [vmem:[#allocation10_spill] sm:$0xff] %v7341_v48  ;;  %v4973_v53 = vsub.f32 %v3812_v47, %v3812_v47  ;;  %v7346_v54 = vsel %vm4975_vm5, 4294967295, %v7345_v54  ;;  %v4979_v55 = vsub.f32 %v3842_v49, %v3842_v49  ;;  %v4981_v56 = vsub.f32 %v3844_v50, %v3844_v50  ;;  %4264 = vmatprep.subr.msk.bf16.mxu1 %vm4975_vm5, %v6937_v51 }
  0x1c   : > { %7343 = vst [vmem:[#allocation11_spill] sm:$0xff] %v4971_v52  ;;  %7347 = vst [vmem:[#allocation13_spill] sm:$0xff] %v7346_v54  ;;  %vm201_vm6 = vcmp.eq.s32.totalorder %v4869_v9, %v4940_v40  ;;  %vm203_vm7 = vcmp.eq.s32.totalorder %v170_v17, %v4940_v40  ;;  %vm313_vm8 = vcmp.eq.s32.totalorder %v4869_v9, %v4942_v41  ;;  %v7353_v1 = vmov 0 }
  0x1d   : > { %7344 = vst [vmem:[#allocation12_spill] sm:$0xff] %v4973_v53  ;;  %vm315_vm9 = vcmp.eq.s32.totalorder %v170_v17, %v4942_v41  ;;  %v3809_v57 = vsel %vm201_vm6, 1.0, %v6957_v3  ;;  %v3811_v58 = vsel %vm203_vm7, 1.0, %v6957_v3  ;;  %vm4994_vm10 = vmpackc.low %vm203_vm7, %vm201_vm6  ;;  %v3841_v60 = vsel %vm313_vm8, 1.0, %v6957_v3 }
  0x1e   : > { %v7349_v59 = vsel %vm4994_vm10, 4294967295, %v7348_v59  ;;  %v3843_v61 = vsel %vm315_vm9, 1.0, %v6957_v3  ;;  %4074 = vmatpush1.bf16.msk.msra.mxu0 %vm4994_vm10, %v6937_v51  ;;  %v5003_v62 = vsub.f32 %v3809_v57, %v3809_v57  ;;  %v5005_v63 = vsub.f32 %v3811_v58, %v3811_v58  ;;  %vm5007_vm11 = vmpackc.low %vm315_vm9, %vm313_vm8 }
  0x1f   : > { %7350 = vst [vmem:[#allocation14_spill] sm:$0xff] %v7349_v59  ;;  %v7354_v1 = vsel %vm5007_vm11, 4294967295, %v7353_v1  ;;  %v5011_v2 = vsub.f32 %v3841_v60, %v3841_v60  ;;  %v5013_v9 = vsub.f32 %v3843_v61, %v3843_v61  ;;  %4266 = vmatpush1.bf16.msk.msra.mxu1 %vm5007_vm11, %v6937_v51  ;;  %vm206_vm12 = vcmp.eq.s32.totalorder %v4904_v22, %v4936_v38 }
  0x20   : > { %7351 = vst [vmem:[#allocation15_spill] sm:$0xff] %v5003_v62  ;;  %7352 = vst [vmem:[#allocation16_spill] sm:$0xff] %v5005_v63  ;;  %vm208_vm13 = vcmp.eq.s32.totalorder %v4907_v23, %v4936_v38  ;;  %vm318_vm14 = vcmp.eq.s32.totalorder %v4904_v22, %v4938_v39  ;;  %vm320_vm15 = vcmp.eq.s32.totalorder %v4907_v23, %v4938_v39  ;;  %v6936_v17 = vand.u32 4294901760, %v5003_v62 }
  0x21   : > { %7355 = vst [vmem:[#allocation17_spill] sm:$0xff] %v7354_v1  ;;  %7356 = vst [vmem:[#allocation18_spill] sm:$0xff] %v5011_v2  ;;  %v6934_v18 = vand.u32 4294901760, %v5005_v63  ;;  %v6933_v19 = vand.u32 4294901760, %v5011_v2  ;;  %v6935_v20 = vand.u32 4294901760, %v5013_v9  ;;  %v7358_v21 = vmov 0 }
  0x22   : > { %7357 = vst [vmem:[#allocation19_spill] sm:$0xff] %v5013_v9  ;;  %vm5030_vm0 = vmpackc.low %vm208_vm13, %vm206_vm12  ;;  %v3814_v25 = vsel %vm206_vm12, 1.0, %v6957_v3  ;;  %v3816_v30 = vsel %vm208_vm13, 1.0, %v6957_v3  ;;  %v3846_v31 = vsel %vm318_vm14, 1.0, %v6957_v3  ;;  %v3848_v32 = vsel %vm320_vm15, 1.0, %v6957_v3 }
  0x23   : > { %v7359_v21 = vsel %vm5030_vm0, 4294967295, %v7358_v21  ;;  %4076 = vmatprep.subr.msk.bf16.mxu0 %vm5030_vm0, %v6937_v51  ;;  %vm5041_vm1 = vmpackc.low %vm320_vm15, %vm318_vm14  ;;  %v7361_v33 = vmov 0  ;;  %v5048_v46 = vsub.f32 %v5003_v62, %v6936_v17  ;;  %v5053_v47 = vsub.f32 %v5005_v63, %v6934_v18 }
  0x24   : > { %7360 = vst [vmem:[#allocation20_spill] sm:$0xff] %v7359_v21  ;;  %v7362_v33 = vsel %vm5041_vm1, 4294967295, %v7361_v33  ;;  %v5058_v49 = vsub.f32 %v5011_v2, %v6933_v19  ;;  %v5063_v50 = vsub.f32 %v5013_v9, %v6935_v20  ;;  %4268 = vmatprep.subr.msk.bf16.mxu1 %vm5041_vm1, %v6937_v51  ;;  %v5068_v57 = vsub.f32 %v3814_v25, %v3814_v25 }
  0x25   : > { %7363 = vst [vmem:[#allocation21_spill] sm:$0xff] %v7362_v33  ;;  %v5070_v58 = vsub.f32 %v3816_v30, %v3816_v30  ;;  %v5072_v60 = vsub.f32 %v3846_v31, %v3846_v31  ;;  %v5074_v61 = vsub.f32 %v3848_v32, %v3848_v32  ;;  %vm205_vm2 = vcmp.eq.s32.totalorder %v4904_v22, %v4940_v40 }
  0x26   : > { %vm207_vm3 = vcmp.eq.s32.totalorder %v4907_v23, %v4940_v40  ;;  %vm317_vm6 = vcmp.eq.s32.totalorder %v4904_v22, %v4942_v41  ;;  %vm319_vm7 = vcmp.eq.s32.totalorder %v4907_v23, %v4942_v41  ;;  %v3813_v25 = vsel %vm205_vm2, 1.0, %v6957_v3 }
  0x27   : > { %v3815_v30 = vsel %vm207_vm3, 1.0, %v6957_v3  ;;  %vm5090_vm8 = vmpackc.low %vm207_vm3, %vm205_vm2  ;;  %v7364_v31 = vmov 0  ;;  %v3845_v32 = vsel %vm317_vm6, 1.0, %v6957_v3  ;;  %v3847_v17 = vsel %vm319_vm7, 1.0, %v6957_v3 }
  0x28   : > { %v7365_v31 = vsel %vm5090_vm8, 4294967295, %v7364_v31  ;;  %4078 = vmatpush1.bf16.msk.msra.mxu0 %vm5090_vm8, %v6937_v51  ;;  %v5099_v22 = vsub.f32 %v3813_v25, %v3813_v25  ;;  %v5101_v20 = vsub.f32 %v3815_v30, %v3815_v30  ;;  %vm5103_vm9 = vmpackc.low %vm319_vm7, %vm317_vm6  ;;  %v7368_v23 = vmov 0 }
  0x29   : > { %7366 = vst [vmem:[#allocation22_spill] sm:$0xff] %v7365_v31  ;;  %v7369_v23 = vsel %vm5103_vm9, 4294967295, %v7368_v23  ;;  %v5107_v18 = vsub.f32 %v3845_v32, %v3845_v32  ;;  %v5109_v19 = vsub.f32 %v3847_v17, %v3847_v17  ;;  %4270 = vmatpush1.bf16.msk.msra.mxu1 %vm5103_vm9, %v6937_v51  ;;  %vm210_vm12 = vcmp.eq.s32.totalorder %v4910_v24, %v4936_v38 }
  0x2a   : > { %7367 = vst [vmem:[#allocation23_spill] sm:$0xff] %v5101_v20  ;;  %7370 = vst [vmem:[#allocation24_spill] sm:$0xff] %v7369_v23  ;;  %vm212_vm13 = vcmp.eq.s32.totalorder %v4913_v26, %v4936_v38  ;;  %vm322_vm14 = vcmp.eq.s32.totalorder %v4910_v24, %v4938_v39  ;;  %vm324_vm15 = vcmp.eq.s32.totalorder %v4913_v26, %v4938_v39  ;;  %v7373_v0 = vmov 0 }
  0x2b   : > { %7371 = vst [vmem:[#allocation25_spill] sm:$0xff] %v5107_v18  ;;  %7372 = vst [vmem:[#allocation26_spill] sm:$0xff] %v5109_v19  ;;  %v3818_v45 = vsel %vm210_vm12, 1.0, %v6957_v3  ;;  %v3820_v51 = vsel %vm212_vm13, 1.0, %v6957_v3  ;;  %v7376_v23 = vmov 1.0|1.0   ;;  %vm209_vm6 = vcmp.eq.s32.totalorder %v4910_v24, %v4940_v40 }
  0x2c   : > { %vm5126_vm2 = vmpackc.low %vm212_vm13, %vm210_vm12  ;;  %v3850_v25 = vsel %vm322_vm14, 1.0, %v6957_v3  ;;  %v3852_v17 = vsel %vm324_vm15, 1.0, %v6957_v3  ;;  %v7377_v30 = vmov 0  ;;  %v5141_v32 = vsub.f32 %v3818_v45, %v3818_v45 }
  0x2d   : > { %v7374_v0 = vsel %vm5126_vm2, 4294967295, %v7373_v0  ;;  %4080 = vmatprep.subr.msk.bf16.mxu0 %vm5126_vm2, %v7376_v23  ;;  %vm5137_vm3 = vmpackc.low %vm324_vm15, %vm322_vm14  ;;  %v5143_v31 = vsub.f32 %v3820_v51, %v3820_v51  ;;  %v5148_v33 = vsub.f32 %v3850_v25, %v3850_v25  ;;  %vm211_vm7 = vcmp.eq.s32.totalorder %v4913_v26, %v4940_v40 }
  0x2e   : > { %7375 = vst [vmem:[#allocation27_spill] sm:$0xff] %v7374_v0  ;;  %v7378_v30 = vsel %vm5137_vm3, 4294967295, %v7377_v30  ;;  %7380 = vst [vmem:[#allocation29_spill] sm:$0xff] %v5141_v32  ;;  %4272 = vmatprep.subr.msk.bf16.mxu1 %vm5137_vm3, %v7376_v23  ;;  %v5150_v0 = vsub.f32 %v3852_v17, %v3852_v17  ;;  %vm321_vm12 = vcmp.eq.s32.totalorder %v4910_v24, %v4942_v41  ;;  %v3817_v45 = vsel %vm209_vm6, 1.0, %v6957_v3 }
  0x2f   : > { %7379 = vst [vmem:[#allocation28_spill] sm:$0xff] %v7378_v30  ;;  %7381 = vst [vmem:[#allocation30_spill] sm:$0xff] %v5143_v31  ;;  %vm323_vm13 = vcmp.eq.s32.totalorder %v4913_v26, %v4942_v41  ;;  %v3819_v51 = vsel %vm211_vm7, 1.0, %v6957_v3  ;;  %v7384_v25 = vmov 0  ;;  %v3849_v17 = vsel %vm321_vm12, 1.0, %v6957_v3 }
  0x30   : > { %7382 = vst [vmem:[#allocation31_spill] sm:$0xff] %v5148_v33  ;;  %7383 = vst [vmem:[#allocation32_spill] sm:$0xff] %v5150_v0  ;;  %v3851_v30 = vsel %vm323_vm13, 1.0, %v6957_v3  ;;  %v5171_v24 = vsub.f32 %v3817_v45, %v3817_v45  ;;  %v5173_v21 = vsub.f32 %v3819_v51, %v3819_v51  ;;  %v7389_v26 = vmov 0 }
  0x31   : > { %vm5162_vm14 = vmpackc.low %vm211_vm7, %vm209_vm6  ;;  %v5179_v1 = vsub.f32 %v3849_v17, %v3849_v17  ;;  %v5181_v59 = vsub.f32 %v3851_v30, %v3851_v30  ;;  %vm214_vm6 = vcmp.eq.s32.totalorder %v4916_v27, %v4936_v38  ;;  %vm216_vm7 = vcmp.eq.s32.totalorder %v4919_v28, %v4936_v38 }
  0x32   : > { %v7385_v25 = vsel %vm5162_vm14, 4294967295, %v7384_v25  ;;  %4082 = vmatpush1.bf16.msk.msra.mxu0 %vm5162_vm14, %v7376_v23  ;;  %7387 = vst [vmem:[#allocation34_spill] sm:$0xff] %v5171_v24  ;;  %7388 = vst [vmem:[#allocation35_spill] sm:$0xff] %v5173_v21  ;;  %v7394_v3 = vmov 0  ;;  %v7398_v51 = vmov 0 }
  0x33   : > { %7386 = vst [vmem:[#allocation33_spill] sm:$0xff] %v7385_v25  ;;  %vm5175_vm15 = vmpackc.low %vm323_vm13, %vm321_vm12  ;;  %vm326_vm12 = vcmp.eq.s32.totalorder %v4916_v27, %v4938_v39  ;;  %vm328_vm13 = vcmp.eq.s32.totalorder %v4919_v28, %v4938_v39 }
  0x34   : > { %v7390_v26 = vsel %vm5175_vm15, 4294967295, %v7389_v26  ;;  %7392 = vst [vmem:[#allocation37_spill] sm:$0xff] %v5179_v1  ;;  %7393 = vst [vmem:[#allocation38_spill] sm:$0xff] %v5181_v59  ;;  %4274 = vmatpush1.bf16.msk.msra.mxu1 %vm5175_vm15, %v7376_v23 }
  0x35   : > { %7391 = vst [vmem:[#allocation36_spill] sm:$0xff] %v7390_v26  ;;  %vm5198_vm15 = vmpackc.low %vm216_vm7, %vm214_vm6  ;;  %v7397_v26 = vmov 0.0  }
  0x36   : > { %v7395_v3 = vsel %vm5198_vm15, 4294967295, %v7394_v3  ;;  %v3822_v25 = vsel %vm214_vm6, 1.0, %v7397_v26  ;;  %v3824_v54 = vsel %vm216_vm7, 1.0, %v7397_v26  ;;  %4084 = vmatprep.subr.msk.bf16.mxu0 %vm5198_vm15, %v7376_v23  ;;  %v3854_v45 = vsel %vm326_vm12, 1.0, %v7397_v26  ;;  %vm5209_vm14 = vmpackc.low %vm328_vm13, %vm326_vm12 }
  0x37   : > { %7396 = vst [vmem:[#allocation39_spill] sm:$0xff] %v7395_v3  ;;  %v3856_v30 = vsel %vm328_vm13, 1.0, %v7397_v26  ;;  %v7399_v51 = vsel %vm5209_vm14, 4294967295, %v7398_v51  ;;  %v5213_v17 = vsub.f32 %v3822_v25, %v3822_v25  ;;  %v5215_v48 = vsub.f32 %v3824_v54, %v3824_v54  ;;  %4276 = vmatprep.subr.msk.bf16.mxu1 %vm5209_vm14, %v7376_v23 }
  0x38   : > { %7400 = vst [vmem:[#allocation40_spill] sm:$0xff] %v7399_v51  ;;  %v5220_v5 = vsub.f32 %v3854_v45, %v3854_v45  ;;  %v5222_v3 = vsub.f32 %v3856_v30, %v3856_v30  ;;  %vm213_vm6 = vcmp.eq.s32.totalorder %v4916_v27, %v4940_v40  ;;  %vm215_vm7 = vcmp.eq.s32.totalorder %v4919_v28, %v4940_v40 }
  0x39   : > { %7401 = vst [vmem:[#allocation41_spill] sm:$0xff] %v5213_v17  ;;  %7402 = vst [vmem:[#allocation42_spill] sm:$0xff] %v5215_v48  ;;  %vm325_vm12 = vcmp.eq.s32.totalorder %v4916_v27, %v4942_v41  ;;  %vm327_vm13 = vcmp.eq.s32.totalorder %v4919_v28, %v4942_v41  ;;  %v3821_v54 = vsel %vm213_vm6, 1.0, %v7397_v26  ;;  %v3823_v25 = vsel %vm215_vm7, 1.0, %v7397_v26 }
  0x3a   : > { %7403 = vst [vmem:[#allocation43_spill] sm:$0xff] %v5220_v5  ;;  %7404 = vst [vmem:[#allocation44_spill] sm:$0xff] %v5222_v3  ;;  %v7405_v45 = vmov 0  ;;  %v3853_v30 = vsel %vm325_vm12, 1.0, %v7397_v26  ;;  %v3855_v51 = vsel %vm327_vm13, 1.0, %v7397_v26  ;;  %v5243_v27 = vsub.f32 %v3821_v54, %v3821_v54 }
  0x3b   : > { %vm5234_vm14 = vmpackc.low %vm215_vm7, %vm213_vm6  ;;  %v5245_v4 = vsub.f32 %v3823_v25, %v3823_v25  ;;  %v7410_v28 = vmov 0  ;;  %v5251_v9 = vsub.f32 %v3853_v30, %v3853_v30  ;;  %v5253_v2 = vsub.f32 %v3855_v51, %v3855_v51 }
  0x3c   : > { %v7406_v45 = vsel %vm5234_vm14, 4294967295, %v7405_v45  ;;  %4086 = vmatpush1.bf16.msk.msra.mxu0 %vm5234_vm14, %v7376_v23  ;;  %7408 = vst [vmem:[#allocation46_spill] sm:$0xff] %v5243_v27  ;;  %vm5247_vm15 = vmpackc.low %vm327_vm13, %vm325_vm12  ;;  %vm218_vm6 = vcmp.eq.s32.totalorder %v4922_v29, %v4936_v38  ;;  %vm220_vm7 = vcmp.eq.s32.totalorder %v4925_v34, %v4936_v38  ;;  %vm330_vm12 = vcmp.eq.s32.totalorder %v4922_v29, %v4938_v39 }
  0x3d   : > { %7407 = vst [vmem:[#allocation45_spill] sm:$0xff] %v7406_v45  ;;  %7409 = vst [vmem:[#allocation47_spill] sm:$0xff] %v5245_v4  ;;  %v7411_v28 = vsel %vm5247_vm15, 4294967295, %v7410_v28  ;;  %4278 = vmatpush1.bf16.msk.msra.mxu1 %vm5247_vm15, %v7376_v23  ;;  %vm332_vm13 = vcmp.eq.s32.totalorder %v4925_v34, %v4938_v39  ;;  %v3826_v45 = vsel %vm218_vm6, 1.0, %v7397_v26  ;;  %v3828_v63 = vsel %vm220_vm7, 1.0, %v7397_v26 }
  0x3e   : > { %7412 = vst [vmem:[#allocation48_spill] sm:$0xff] %v7411_v28  ;;  %7413 = vst [vmem:[#allocation49_spill] sm:$0xff] %v5251_v9  ;;  %v7415_v28 = vmov 0  ;;  %v3858_v54 = vsel %vm330_vm12, 1.0, %v7397_v26  ;;  %v3860_v51 = vsel %vm332_vm13, 1.0, %v7397_v26  ;;  %v7418_v25 = vmov 0 }
  0x3f   : > { %7414 = vst [vmem:[#allocation50_spill] sm:$0xff] %v5253_v2  ;;  %vm5270_vm15 = vmpackc.low %vm220_vm7, %vm218_vm6  ;;  %v5285_v30 = vsub.f32 %v3826_v45, %v3826_v45  ;;  %v5287_v62 = vsub.f32 %v3828_v63, %v3828_v63  ;;  %v5292_v2 = vsub.f32 %v3858_v54, %v3858_v54  ;;  %vm217_vm6 = vcmp.eq.s32.totalorder %v4922_v29, %v4940_v40 }
  0x40   : > { %v7416_v28 = vsel %vm5270_vm15, 4294967295, %v7415_v28  ;;  %4088 = vmatprep.subr.msk.bf16.mxu0 %vm5270_vm15, %v7376_v23  ;;  %vm5281_vm14 = vmpackc.low %vm332_vm13, %vm330_vm12  ;;  %vm219_vm7 = vcmp.eq.s32.totalorder %v4925_v34, %v4940_v40  ;;  %vm329_vm12 = vcmp.eq.s32.totalorder %v4922_v29, %v4942_v41  ;;  %vm331_vm13 = vcmp.eq.s32.totalorder %v4925_v34, %v4942_v41 }
  0x41   : > { %7417 = vst [vmem:[#allocation51_spill] sm:$0xff] %v7416_v28  ;;  %v7419_v25 = vsel %vm5281_vm14, 4294967295, %v7418_v25  ;;  %7421 = vst [vmem:[#allocation53_spill] sm:$0xff] %v5285_v30  ;;  %4280 = vmatprep.subr.msk.bf16.mxu1 %vm5281_vm14, %v7376_v23  ;;  %v5294_v28 = vsub.f32 %v3860_v51, %v3860_v51  ;;  %v3825_v63 = vsel %vm217_vm6, 1.0, %v7397_v26  ;;  %v3827_v45 = vsel %vm219_vm7, 1.0, %v7397_v26 }
  0x42   : > { %7420 = vst [vmem:[#allocation52_spill] sm:$0xff] %v7419_v25  ;;  %7422 = vst [vmem:[#allocation54_spill] sm:$0xff] %v5287_v62  ;;  %v7425_v54 = vmov 0  ;;  %v3857_v51 = vsel %vm329_vm12, 1.0, %v7397_v26  ;;  %v3859_v25 = vsel %vm331_vm13, 1.0, %v7397_v26  ;;  %v5315_v29 = vsub.f32 %v3825_v63, %v3825_v63 }
  0x43   : > { %7423 = vst [vmem:[#allocation55_spill] sm:$0xff] %v5292_v2  ;;  %7424 = vst [vmem:[#allocation56_spill] sm:$0xff] %v5294_v28  ;;  %v5317_v28 = vsub.f32 %v3827_v45, %v3827_v45  ;;  %v7430_v34 = vmov 0  ;;  %v5323_v2 = vsub.f32 %v3857_v51, %v3857_v51  ;;  %v5325_v62 = vsub.f32 %v3859_v25, %v3859_v25 }
  0x44   : > { %vm5306_vm14 = vmpackc.low %vm219_vm7, %vm217_vm6  ;;  %7428 = vst [vmem:[#allocation58_spill] sm:$0xff] %v5315_v29  ;;  %vm222_vm6 = vcmp.eq.s32.totalorder %v4928_v35, %v4936_v38  ;;  %vm224_vm7 = vcmp.eq.s32.totalorder %v4931_v36, %v4936_v38  ;;  %v7438_v45 = vmov 0 }
  0x45   : > { %v7426_v54 = vsel %vm5306_vm14, 4294967295, %v7425_v54  ;;  %4090 = vmatpush1.bf16.msk.msra.mxu0 %vm5306_vm14, %v7376_v23  ;;  %7429 = vst [vmem:[#allocation59_spill] sm:$0xff] %v5317_v28  ;;  %vm5319_vm15 = vmpackc.low %vm331_vm13, %vm329_vm12  ;;  %vm334_vm12 = vcmp.eq.s32.totalorder %v4928_v35, %v4938_v39  ;;  %vm336_vm13 = vcmp.eq.s32.totalorder %v4931_v36, %v4938_v39  ;;  %v3832_v30 = vsel %vm224_vm7, 1.0, %v7397_v26 }
  0x46   : > { %7427 = vst [vmem:[#allocation57_spill] sm:$0xff] %v7426_v54  ;;  %v7431_v34 = vsel %vm5319_vm15, 4294967295, %v7430_v34  ;;  %7433 = vst [vmem:[#allocation61_spill] sm:$0xff] %v5323_v2  ;;  %4282 = vmatpush1.bf16.msk.msra.mxu1 %vm5319_vm15, %v7376_v23  ;;  %v3830_v54 = vsel %vm222_vm6, 1.0, %v7397_v26  ;;  %v3862_v63 = vsel %vm334_vm12, 1.0, %v7397_v26  ;;  %v3864_v25 = vsel %vm336_vm13, 1.0, %v7397_v26 }
  0x47   : > { %7432 = vst [vmem:[#allocation60_spill] sm:$0xff] %v7431_v34  ;;  %7434 = vst [vmem:[#allocation62_spill] sm:$0xff] %v5325_v62  ;;  %v7435_v34 = vmov 0  ;;  %v5357_v51 = vsub.f32 %v3830_v54, %v3830_v54  ;;  %v5359_v62 = vsub.f32 %v3832_v30, %v3832_v30  ;;  %v5364_v2 = vsub.f32 %v3862_v63, %v3862_v63 }
  0x48   : > { %vm5342_vm15 = vmpackc.low %vm224_vm7, %vm222_vm6  ;;  %vm221_vm6 = vcmp.eq.s32.totalorder %v4928_v35, %v4940_v40  ;;  %vm223_vm7 = vcmp.eq.s32.totalorder %v4931_v36, %v4940_v40  ;;  %v7445_v63 = vmov 0 }
  0x49   : > { %v7436_v34 = vsel %vm5342_vm15, 4294967295, %v7435_v34  ;;  %4092 = vmatprep.subr.msk.bf16.mxu0 %vm5342_vm15, %v7376_v23  ;;  %vm5353_vm14 = vmpackc.low %vm336_vm13, %vm334_vm12  ;;  %7441 = vst [vmem:[#allocation65_spill] sm:$0xff] %v5357_v51  ;;  %vm333_vm12 = vcmp.eq.s32.totalorder %v4928_v35, %v4942_v41  ;;  %vm335_vm13 = vcmp.eq.s32.totalorder %v4931_v36, %v4942_v41  ;;  %v3829_v30 = vsel %vm221_vm6, 1.0, %v7397_v26 }
  0x4a   : > { %7437 = vst [vmem:[#allocation63_spill] sm:$0xff] %v7436_v34  ;;  %v7439_v45 = vsel %vm5353_vm14, 4294967295, %v7438_v45  ;;  %7442 = vst [vmem:[#allocation66_spill] sm:$0xff] %v5359_v62  ;;  %4284 = vmatprep.subr.msk.bf16.mxu1 %vm5353_vm14, %v7376_v23  ;;  %v5366_v34 = vsub.f32 %v3864_v25, %v3864_v25  ;;  %v3831_v54 = vsel %vm223_vm7, 1.0, %v7397_v26  ;;  %v3861_v25 = vsel %vm333_vm12, 1.0, %v7397_v26 }
  0x4b   : > { %7440 = vst [vmem:[#allocation64_spill] sm:$0xff] %v7439_v45  ;;  %7443 = vst [vmem:[#allocation67_spill] sm:$0xff] %v5364_v2  ;;  %v3863_v45 = vsel %vm335_vm13, 1.0, %v7397_v26  ;;  %v5387_v35 = vsub.f32 %v3829_v30, %v3829_v30  ;;  %v7448_v36 = vmov 0  ;;  %v5395_v2 = vsub.f32 %v3861_v25, %v3861_v25 }
  0x4c   : > { %7444 = vst [vmem:[#allocation68_spill] sm:$0xff] %v5366_v34  ;;  %vm5378_vm14 = vmpackc.low %vm223_vm7, %vm221_vm6  ;;  %v5389_v34 = vsub.f32 %v3831_v54, %v3831_v54  ;;  %v5397_v62 = vsub.f32 %v3863_v45, %v3863_v45  ;;  %vm226_vm6 = vcmp.eq.s32.totalorder %v4934_v37, %v4936_v38  ;;  %vm228_vm7 = vcmp.eq.s32.totalorder %v4945_v42, %v4936_v38 }
  0x4d   : > { %v7446_v63 = vsel %vm5378_vm14, 4294967295, %v7445_v63  ;;  %4094 = vmatpush1.bf16.msk.msra.mxu0 %vm5378_vm14, %v7376_v23  ;;  %vm5391_vm15 = vmpackc.low %vm335_vm13, %vm333_vm12  ;;  %7451 = vst [vmem:[#allocation71_spill] sm:$0xff] %v5395_v2  ;;  %vm338_vm12 = vcmp.eq.s32.totalorder %v4934_v37, %v4938_v39  ;;  %vm340_vm13 = vcmp.eq.s32.totalorder %v4945_v42, %v4938_v39  ;;  %v3836_v51 = vsel %vm228_vm7, 1.0, %v7397_v26 }
  0x4e   : > { %7447 = vst [vmem:[#allocation69_spill] sm:$0xff] %v7446_v63  ;;  %v7449_v36 = vsel %vm5391_vm15, 4294967295, %v7448_v36  ;;  %7452 = vst [vmem:[#allocation72_spill] sm:$0xff] %v5397_v62  ;;  %4286 = vmatpush1.bf16.msk.msra.mxu1 %vm5391_vm15, %v7376_v23  ;;  %v3834_v63 = vsel %vm226_vm6, 1.0, %v7397_v26  ;;  %v3866_v30 = vsel %vm338_vm12, 1.0, %v7397_v26  ;;  %v3868_v45 = vsel %vm340_vm13, 1.0, %v7397_v26 }
  0x4f   : > { %7450 = vst [vmem:[#allocation70_spill] sm:$0xff] %v7449_v36  ;;  %vm5414_vm15 = vmpackc.low %vm228_vm7, %vm226_vm6  ;;  %v7453_v36 = vmov 0  ;;  %v7456_v54 = vmov 0  ;;  %v5429_v25 = vsub.f32 %v3834_v63, %v3834_v63  ;;  %v5431_v62 = vsub.f32 %v3836_v51, %v3836_v51 }
  0x50   : > { %v7454_v36 = vsel %vm5414_vm15, 4294967295, %v7453_v36  ;;  %4096 = vmatprep.subr.msk.bf16.mxu0 %vm5414_vm15, %v7376_v23  ;;  %vm5425_vm14 = vmpackc.low %vm340_vm13, %vm338_vm12  ;;  %v5436_v2 = vsub.f32 %v3866_v30, %v3866_v30  ;;  %vm225_vm6 = vcmp.eq.s32.totalorder %v4934_v37, %v4940_v40  ;;  %vm227_vm7 = vcmp.eq.s32.totalorder %v4945_v42, %v4940_v40 }
  0x51   : > { %7455 = vst [vmem:[#allocation73_spill] sm:$0xff] %v7454_v36  ;;  %v7457_v54 = vsel %vm5425_vm14, 4294967295, %v7456_v54  ;;  %7459 = vst [vmem:[#allocation75_spill] sm:$0xff] %v5431_v62  ;;  %4288 = vmatprep.subr.msk.bf16.mxu1 %vm5425_vm14, %v7376_v23  ;;  %v5438_v36 = vsub.f32 %v3868_v45, %v3868_v45  ;;  %vm337_vm12 = vcmp.eq.s32.totalorder %v4934_v37, %v4942_v41  ;;  %v3833_v51 = vsel %vm225_vm6, 1.0, %v7397_v26 }
  0x52   : > { %7458 = vst [vmem:[#allocation74_spill] sm:$0xff] %v7457_v54  ;;  %7460 = vst [vmem:[#allocation76_spill] sm:$0xff] %v5436_v2  ;;  %vm339_vm13 = vcmp.eq.s32.totalorder %v4945_v42, %v4942_v41  ;;  %v3835_v63 = vsel %vm227_vm7, 1.0, %v7397_v26  ;;  %v7462_v30 = vmov 0  ;;  %v3865_v45 = vsel %vm337_vm12, 1.0, %v7397_v26 }
  0x53   : > { %7461 = vst [vmem:[#allocation77_spill] sm:$0xff] %v5438_v36  ;;  %vm5450_vm14 = vmpackc.low %vm227_vm7, %vm225_vm6  ;;  %v3867_v54 = vsel %vm339_vm13, 1.0, %v7397_v26  ;;  %v5459_v37 = vsub.f32 %v3833_v51, %v3833_v51  ;;  %v5461_v36 = vsub.f32 %v3835_v63, %v3835_v63  ;;  %v7465_v42 = vmov 0 }
  0x54   : > { %v7463_v30 = vsel %vm5450_vm14, 4294967295, %v7462_v30  ;;  %4098 = vmatpush1.bf16.msk.msra.mxu0 %vm5450_vm14, %v7376_v23  ;;  %vm5463_vm15 = vmpackc.low %vm339_vm13, %vm337_vm12  ;;  %v5467_v2 = vsub.f32 %v3865_v45, %v3865_v45  ;;  %v5469_v62 = vsub.f32 %v3867_v54, %v3867_v54  ;;  %vm230_vm6 = vcmp.eq.s32.totalorder %v4948_v43, %v4936_v38 }
  0x55   : > { %7464 = vst [vmem:[#allocation78_spill] sm:$0xff] %v7463_v30  ;;  %v7466_v42 = vsel %vm5463_vm15, 4294967295, %v7465_v42  ;;  %4290 = vmatpush1.bf16.msk.msra.mxu1 %vm5463_vm15, %v7376_v23  ;;  %vm232_vm7 = vcmp.eq.s32.totalorder %v4951_v44, %v4936_v38  ;;  %vm342_vm12 = vcmp.eq.s32.totalorder %v4948_v43, %v4938_v39  ;;  %vm344_vm13 = vcmp.eq.s32.totalorder %v4951_v44, %v4938_v39 }
  0x56   : > { %7467 = vst [vmem:[#allocation79_spill] sm:$0xff] %v7466_v42  ;;  %7468 = vst [vmem:[#allocation80_spill] sm:$0xff] %v5467_v2  ;;  %v7470_v42 = vmov 0  ;;  %v3838_v38 = vsel %vm230_vm6, 1.0, %v7397_v26  ;;  %v3840_v30 = vsel %vm232_vm7, 1.0, %v7397_v26  ;;  %v3870_v39 = vsel %vm342_vm12, 1.0, %v7397_v26 }
  0x57   : > { %7469 = vst [vmem:[#allocation81_spill] sm:$0xff] %v5469_v62  ;;  %vm5486_vm15 = vmpackc.low %vm232_vm7, %vm230_vm6  ;;  %v3872_v54 = vsel %vm344_vm13, 1.0, %v7397_v26  ;;  %v7473_v63 = vmov 0  ;;  %v5501_v45 = vsub.f32 %v3838_v38, %v3838_v38  ;;  %v5503_v51 = vsub.f32 %v3840_v30, %v3840_v30 }
  0x58   : > { %v7471_v42 = vsel %vm5486_vm15, 4294967295, %v7470_v42  ;;  %4100 = vmatprep.subr.msk.bf16.mxu0 %vm5486_vm15, %v7376_v23  ;;  %vm5497_vm14 = vmpackc.low %vm344_vm13, %vm342_vm12  ;;  %v5508_v62 = vsub.f32 %v3870_v39, %v3870_v39  ;;  %vm229_vm6 = vcmp.eq.s32.totalorder %v4948_v43, %v4940_v40  ;;  %vm231_vm7 = vcmp.eq.s32.totalorder %v4951_v44, %v4940_v40 }
  0x59   : > { %7472 = vst [vmem:[#allocation82_spill] sm:$0xff] %v7471_v42  ;;  %v7474_v63 = vsel %vm5497_vm14, 4294967295, %v7473_v63  ;;  %7476 = vst [vmem:[#allocation84_spill] sm:$0xff] %v5501_v45  ;;  %4292 = vmatprep.subr.msk.bf16.mxu1 %vm5497_vm14, %v7376_v23  ;;  %v5510_v42 = vsub.f32 %v3872_v54, %v3872_v54  ;;  %vm341_vm12 = vcmp.eq.s32.totalorder %v4948_v43, %v4942_v41  ;;  %v3837_v30 = vsel %vm229_vm6, 1.0, %v7397_v26 }
  0x5a   : > { %7475 = vst [vmem:[#allocation83_spill] sm:$0xff] %v7474_v63  ;;  %7477 = vst [vmem:[#allocation85_spill] sm:$0xff] %v5503_v51  ;;  %vm343_vm13 = vcmp.eq.s32.totalorder %v4951_v44, %v4942_v41  ;;  %v3839_v38 = vsel %vm231_vm7, 1.0, %v7397_v26  ;;  %v7480_v39 = vmov 0  ;;  %v3869_v54 = vsel %vm341_vm12, 1.0, %v7397_v26 }
  0x5b   : > { %7478 = vst [vmem:[#allocation86_spill] sm:$0xff] %v5508_v62  ;;  %7479 = vst [vmem:[#allocation87_spill] sm:$0xff] %v5510_v42  ;;  %v3871_v63 = vsel %vm343_vm13, 1.0, %v7397_v26  ;;  %v5531_v40 = vsub.f32 %v3837_v30, %v3837_v30  ;;  %v5533_v43 = vsub.f32 %v3839_v38, %v3839_v38  ;;  %v7485_v41 = vmov 0 }
  0x5c   : > { %vm5522_vm14 = vmpackc.low %vm231_vm7, %vm229_vm6  ;;  %v5539_v44 = vsub.f32 %v3869_v54, %v3869_v54  ;;  %v5541_v42 = vsub.f32 %v3871_v63, %v3871_v63  ;;  %v7490_v62 = vand.u32 4294901760, %v4883_v13  ;;  %v7091_v30 = vand.u32 4294901760, %v4971_v52 }
  0x5d   : > { %v7481_v39 = vsel %vm5522_vm14, 4294967295, %v7480_v39  ;;  %4102 = vmatpush1.bf16.msk.msra.mxu0 %vm5522_vm14, %v7376_v23  ;;  %7483 = vst [vmem:[#allocation89_spill] sm:$0xff] %v5531_v40  ;;  %7484 = vst [vmem:[#allocation90_spill] sm:$0xff] %v5533_v43  ;;  %v7094_v38 = vand.u32 4294901760, %v4973_v53  ;;  %v7099_v51 = vand.u32 4294901760, %v4886_v14  ;;  %v7109_v45 = vand.u32 4294901760, %v4979_v55 }
  0x5e   : > { %7482 = vst [vmem:[#allocation88_spill] sm:$0xff] %v7481_v39  ;;  %vm5535_vm15 = vmpackc.low %vm343_vm13, %vm341_vm12  ;;  %v525_v39 = vsub.f32 %v4883_v13, %v7490_v62  ;;  %v7108_v54 = vand.u32 4294901760, %v4981_v56  ;;  %v7491_v63 = vand.u32 4294901760, %v5048_v46 }
  0x5f   : > { %v7486_v41 = vsel %vm5535_vm15, 4294967295, %v7485_v41  ;;  %7488 = vst [vmem:[#allocation92_spill] sm:$0xff] %v5539_v44  ;;  %7489 = vst [vmem:[#allocation93_spill] sm:$0xff] %v5541_v42  ;;  %4294 = vmatpush1.bf16.msk.msra.mxu1 %vm5535_vm15, %v7376_v23  ;;  %v701_v23 = vsub.f32 %v4971_v52, %v7091_v30  ;;  %v713_v62 = vsub.f32 %v4973_v53, %v7094_v38  ;;  %v7493_v42 = vand.u32 4294901760, %v5058_v49 }
  0x60   : > { %7487 = vst [vmem:[#allocation91_spill] sm:$0xff] %v7486_v41  ;;  %v526_v41 = vand.u32 4294901760, %v525_v39  ;;  %v2131_v13 = vsub.f32 %v4886_v14, %v7099_v51  ;;  %v7492_v39 = vand.u32 4294901760, %v5053_v47  ;;  %v7494_v30 = vand.u32 4294901760, %v5063_v50 }
  0x61   : > { %v702_v38 = vand.u32 4294901760, %v701_v23  ;;  %v714_v53 = vand.u32 4294901760, %v713_v62  ;;  %v5577_v51 = vsub.f32 %v4853_v6, %v4872_v10  ;;  %v2307_v46 = vsub.f32 %v4979_v55, %v7109_v45 }
  0x62   : > { %v4105_v2 = vpack.c.bf16 %v7492_v39, %v7491_v63  ;;  %v4297_v52 = vpack.c.bf16 %v7494_v30, %v7493_v42  ;;  %527 = vmatmul.mubr.f32.vlgmr.msra.gmra.mrb[0].mxu0 %v526_v41  ;;  %v2132_v44 = vand.u32 4294901760, %v2131_v13  ;;  %v2319_v47 = vsub.f32 %v4981_v56, %v7108_v54 }
  0x63   : > { %7495 = vst [vmem:[#allocation94_spill] sm:$0xff] %v5577_v51  ;;  %532 = vmatprep.mubr.f32.mxu0 %v7397_v26  ;;  %v5588_v49 = vsub.f32 %v4858_v7, %v4875_v11  ;;  %v5592_v13 = vsub.f32 %v4863_v8, %v4889_v15  ;;  %v4103_v6 = vpack.c.bf16 %v714_v53, %v702_v38  ;;  %v7100_v50 = vand.u32 4294901760, %v5577_v51 }
  0x64   : > { %2133 = vmatmul.mubr.f32.vlgmr.msra.gmra.mrb[0].mxu1 %v2132_v44  ;;  %v7104_v23 = vand.u32 4294901760, %v5068_v57  ;;  %v7101_v42 = vand.u32 4294901760, %v5070_v58  ;;  %v2308_v41 = vand.u32 4294901760, %v2307_v46  ;;  %v2320_v30 = vand.u32 4294901760, %v2319_v47 }
  0x65   : > { %7496 = vst [vmem:[#allocation95_spill] sm:$0xff] %v5588_v49  ;;  %7497 = vst [vmem:[#allocation96_spill] sm:$0xff] %v5592_v13  ;;  %2138 = vmatprep.mubr.f32.mxu1 %v7397_v26  ;;  %v7102_v63 = vand.u32 4294901760, %v5588_v49  ;;  %v7103_v7 = vand.u32 4294901760, %v5592_v13  ;;  %4104 = vmatprep.subr.bf16.mxu0 %v4103_v6  ;;  %v536_v8 = vsub.f32 %v5577_v51, %v7100_v50  ;;  %v7106_v47 = vand.u32 4294901760, %v5072_v60  ;;  %v412_v6 = vld [vmem:[%s6928_s0 + $0x18] sm:$0xff] }
  0x66   : > { %v725_v53 = vsub.f32 %v5068_v57, %v7104_v23  ;;  %v737_v44 = vsub.f32 %v5070_v58, %v7101_v42  ;;  %v5611_v38 = vsub.f32 %v4880_v12, %v4892_v16  ;;  %v4295_v62 = vpack.c.bf16 %v2320_v30, %v2308_v41  ;;  %4106 = vmatpush1.bf16.msra.mxu0 %v4105_v2 }
  0x67   : > { %v2142_v39 = vsub.f32 %v5588_v49, %v7102_v63  ;;  %v547_v46 = vsub.f32 %v5592_v13, %v7103_v7  ;;  %v537_v50 = vand.u32 4294901760, %v536_v8  ;;  %v2331_v63 = vsub.f32 %v5072_v60, %v7106_v47 }
  0x68   : > { %7498 = vst [vmem:[#allocation97_spill] sm:$0xff] %v5611_v38  ;;  %v726_v42 = vand.u32 4294901760, %v725_v53  ;;  %v738_v12 = vand.u32 4294901760, %v737_v44  ;;  %v7105_v41 = vand.u32 4294901760, %v5611_v38  ;;  %4296 = vmatprep.subr.bf16.mxu1 %v4295_v62  ;;  %v7107_v7 = vand.u32 4294901760, %v5074_v61 }
  0x69   : > { %v2143_v2 = vand.u32 4294901760, %v2142_v39  ;;  %v548_v30 = vand.u32 4294901760, %v547_v46  ;;  %4298 = vmatpush1.bf16.msra.mxu1 %v4297_v52  ;;  %538 = vmatmul.mubr.f32.gmra.mrb[2].mxu0 %v537_v50  ;;  %v7499_v53 = vand.u32 4294901760, %v5099_v22  ;;  %v5634_v62 = vand.u32 4294901760, %v412_v6  ;;  %v2018_v39 = vld [vmem:[%s6929_s1 + $0x18] sm:$0xff] }
  0x6a   : > { %v4107_v23 = vpack.c.bf16 %v738_v12, %v726_v42  ;;  %v2153_v8 = vsub.f32 %v5611_v38, %v7105_v41  ;;  %543 = vmatprep.mubr.f32.mxu0 %v7397_v26  ;;  %v2332_v52 = vand.u32 4294901760, %v2331_v63  ;;  %v2343_v50 = vsub.f32 %v5074_v61, %v7107_v7  ;;  %v413_v41 = vld [vmem:[%s6928_s0 + $0x20] sm:$0xff] }
  0x6b   : > { %v731_v44 = vsub.f32 %v5099_v22, %v7499_v53  ;;  %7500 = vst [vmem:[#allocation98_spill] sm:$0xff] %v5634_v62  ;;  %2144 = vmatmul.mubr.f32.gmra.mrb[2].mxu1 %v2143_v2  ;;  %v7501_v42 = vand.u32 4294901760, %v5101_v20  ;;  %v7502_v12 = vand.u32 4294901760, %v5107_v18  ;;  %v7503_v47 = vand.u32 4294901760, %v5109_v19 }
  0x6c   : > { %2149 = vmatprep.mubr.f32.mxu1 %v7397_v26  ;;  %4108 = vmatprep.subr.bf16.mxu0 %v4107_v23  ;;  %v2154_v63 = vand.u32 4294901760, %v2153_v8  ;;  %v5657_v54 = vsub.f32 %v412_v6, %v5634_v62  ;;  %v5662_v51 = vand.u32 4294901760, %v413_v41  ;;  %v7123_v23 = vand.u32 4294901760, %v5141_v32 }
  0x6d   : > { %v743_v46 = vsub.f32 %v5101_v20, %v7501_v42  ;;  %v2337_v53 = vsub.f32 %v5107_v18, %v7502_v12  ;;  %v732_v2 = vand.u32 4294901760, %v731_v44  ;;  %v2349_v7 = vsub.f32 %v5109_v19, %v7503_v47  ;;  %549 = vmatmul.mubr.f32.gmra.mrb[4].mxu0 %v548_v30  ;;  %v2019_v47 = vld [vmem:[%s6929_s1 + $0x20] sm:$0xff]  ;;  %v7608_v18 = vld [vmem:[#allocation12_spill] sm:$0xff] }
  0x6e   : > { %7504 = vst [vmem:[#allocation99_spill] sm:$0xff] %v5657_v54  ;;  %v2344_v42 = vand.u32 4294901760, %v2343_v50  ;;  %v5659_v12 = vand.u32 4294901760, %v2018_v39  ;;  %v7118_v49 = vand.u32 4294901760, %v5657_v54  ;;  %7506 = vst [vmem:[#allocation101_spill] sm:$0xff] %v5662_v51  ;;  %554 = vmatprep.mubr.f32.mxu0 %v7397_v26 }
  0x6f   : > { %v744_v45 = vand.u32 4294901760, %v743_v46  ;;  %v2338_v38 = vand.u32 4294901760, %v2337_v53  ;;  %v2350_v13 = vand.u32 4294901760, %v2349_v7  ;;  %2155 = vmatmul.mubr.f32.gmra.mrb[4].mxu1 %v2154_v63  ;;  %v7122_v7 = vand.u32 4294901760, %v5143_v31 }
  0x70   : > { %7505 = vst [vmem:[#allocation100_spill] sm:$0xff] %v5659_v12  ;;  %v4299_v6 = vpack.c.bf16 %v2344_v42, %v2332_v52  ;;  %v5670_v44 = vsub.f32 %v2018_v39, %v5659_v12  ;;  %2160 = vmatprep.mubr.f32.mxu1 %v7397_v26  ;;  %v558_v50 = vsub.f32 %v5657_v54, %v7118_v49  ;;  %v7120_v52 = vand.u32 4294901760, %v5148_v33 }
  0x71   : > { %v4109_v8 = vpack.c.bf16 %v744_v45, %v732_v2  ;;  %v4301_v30 = vpack.c.bf16 %v2350_v13, %v2338_v38  ;;  %v5678_v46 = vsub.f32 %v413_v41, %v5662_v51  ;;  %v749_v45 = vsub.f32 %v5141_v32, %v7123_v23 }
  0x72   : > { %7507 = vst [vmem:[#allocation102_spill] sm:$0xff] %v5670_v44  ;;  %4300 = vmatprep.subr.bf16.mxu1 %v4299_v6  ;;  %v7119_v39 = vand.u32 4294901760, %v5670_v44  ;;  %v761_v13 = vsub.f32 %v5143_v31, %v7122_v7  ;;  %v5687_v38 = vand.u32 4294901760, %v2019_v47  ;;  %v559_v53 = vand.u32 4294901760, %v558_v50 }
  0x73   : > { %7508 = vst [vmem:[#allocation103_spill] sm:$0xff] %v5678_v46  ;;  %4110 = vmatpush1.bf16.msra.mxu0 %v4109_v8  ;;  %4302 = vmatpush1.bf16.msra.mxu1 %v4301_v30  ;;  %v7121_v41 = vand.u32 4294901760, %v5678_v46  ;;  %v750_v63 = vand.u32 4294901760, %v749_v45  ;;  %v7124_v2 = vand.u32 4294901760, %v5150_v0  ;;  %v2355_v49 = vsub.f32 %v5148_v33, %v7120_v52 }
  0x74   : > { %7509 = vst [vmem:[#allocation104_spill] sm:$0xff] %v5687_v38  ;;  %v2164_v42 = vsub.f32 %v5670_v44, %v7119_v39  ;;  %v762_v6 = vand.u32 4294901760, %v761_v13  ;;  %v5696_v8 = vsub.f32 %v2019_v47, %v5687_v38  ;;  %560 = vmatmul.mubr.f32.gmra.mrb[6].mxu0 %v559_v53  ;;  %v7511_v45 = vand.u32 4294901760, %v5171_v24  ;;  %v414_v53 = vld [vmem:[%s6928_s0 + $0x28] sm:$0xff] }
  0x75   : > { %v569_v30 = vsub.f32 %v5678_v46, %v7121_v41  ;;  %v2367_v50 = vsub.f32 %v5150_v0, %v7124_v2  ;;  %v7512_v47 = vand.u32 4294901760, %v5173_v21  ;;  %565 = vmatprep.mubr.f32.mxu0 %v7397_v26  ;;  %v2356_v23 = vand.u32 4294901760, %v2355_v49  ;;  %v2020_v2 = vld [vmem:[%s6929_s1 + $0x28] sm:$0xff] }
  0x76   : > { %7510 = vst [vmem:[#allocation105_spill] sm:$0xff] %v5696_v8  ;;  %v755_v13 = vsub.f32 %v5171_v24, %v7511_v45  ;;  %v2165_v52 = vand.u32 4294901760, %v2164_v42  ;;  %v4111_v41 = vpack.c.bf16 %v762_v6, %v750_v63  ;;  %v7135_v7 = vand.u32 4294901760, %v5696_v8  ;;  %v415_v45 = vld [vmem:[%s6928_s0 + $0x30] sm:$0xff] }
  0x77   : > { %v767_v39 = vsub.f32 %v5173_v21, %v7512_v47  ;;  %v570_v47 = vand.u32 4294901760, %v569_v30  ;;  %v2368_v46 = vand.u32 4294901760, %v2367_v50  ;;  %v7513_v49 = vand.u32 4294901760, %v5179_v1  ;;  %v2021_v50 = vld [vmem:[%s6929_s1 + $0x30] sm:$0xff] }
  0x78   : > { %v756_v44 = vand.u32 4294901760, %v755_v13  ;;  %2166 = vmatmul.mubr.f32.gmra.mrb[6].mxu1 %v2165_v52  ;;  %4112 = vmatprep.subr.bf16.mxu0 %v4111_v41  ;;  %v2175_v63 = vsub.f32 %v5696_v8, %v7135_v7  ;;  %v7514_v6 = vand.u32 4294901760, %v5181_v59  ;;  %v5733_v38 = vand.u32 4294901760, %v414_v53 }
  0x79   : > { %v768_v54 = vand.u32 4294901760, %v767_v39  ;;  %v2361_v42 = vsub.f32 %v5179_v1, %v7513_v49  ;;  %2171 = vmatprep.mubr.f32.mxu1 %v7397_v26  ;;  %571 = vmatmul.mubr.f32.gmra.mrb[8].mxu0 %v570_v47  ;;  %v4303_v39 = vpack.c.bf16 %v2368_v46, %v2356_v23  ;;  %v5736_v41 = vand.u32 4294901760, %v2020_v2 }
  0x7a   : > { %v2373_v14 = vsub.f32 %v5181_v59, %v7514_v6  ;;  %7515 = vst [vmem:[#allocation106_spill] sm:$0xff] %v5733_v38  ;;  %v5738_v30 = vand.u32 4294901760, %v415_v45  ;;  %v2176_v13 = vand.u32 4294901760, %v2175_v63  ;;  %576 = vmatprep.mubr.f32.mxu0 %v7397_v26  ;;  %v5745_v6 = vsub.f32 %v414_v53, %v5733_v38 }
  0x7b   : > { %v4113_v52 = vpack.c.bf16 %v768_v54, %v756_v44  ;;  %7516 = vst [vmem:[#allocation107_spill] sm:$0xff] %v5736_v41  ;;  %v2362_v49 = vand.u32 4294901760, %v2361_v42  ;;  %4304 = vmatprep.subr.bf16.mxu1 %v4303_v39  ;;  %v5748_v54 = vsub.f32 %v2020_v2, %v5736_v41  ;;  %v7136_v44 = vand.u32 4294901760, %v5213_v17 }
  0x7c   : > { %7517 = vst [vmem:[#allocation108_spill] sm:$0xff] %v5738_v30  ;;  %v2374_v7 = vand.u32 4294901760, %v2373_v14  ;;  %7518 = vst [vmem:[#allocation109_spill] sm:$0xff] %v5745_v6  ;;  %v5751_v23 = vsub.f32 %v415_v45, %v5738_v30  ;;  %v7137_v46 = vand.u32 4294901760, %v5215_v48  ;;  %2177 = vmatmul.mubr.f32.gmra.mrb[8].mxu1 %v2176_v13  ;;  %v7140_v14 = vand.u32 4294901760, %v5745_v6 }
  0x7d   : > { %4114 = vmatpush1.bf16.msra.mxu0 %v4113_v52  ;;  %7519 = vst [vmem:[#allocation110_spill] sm:$0xff] %v5748_v54  ;;  %v5756_v63 = vand.u32 4294901760, %v2021_v50  ;;  %v7143_v53 = vand.u32 4294901760, %v5220_v5  ;;  %2182 = vmatprep.mubr.f32.mxu1 %v7397_v26  ;;  %v7146_v2 = vand.u32 4294901760, %v5748_v54  ;;  %v773_v45 = vsub.f32 %v5213_v17, %v7136_v44 }
  0x7e   : > { %7520 = vst [vmem:[#allocation111_spill] sm:$0xff] %v5751_v23  ;;  %v4305_v47 = vpack.c.bf16 %v2374_v7, %v2362_v49  ;;  %v7149_v42 = vand.u32 4294901760, %v5751_v23  ;;  %v785_v7 = vsub.f32 %v5215_v48, %v7137_v46  ;;  %v580_v39 = vsub.f32 %v5745_v6, %v7140_v14 }
  0x7f   : > { %7521 = vst [vmem:[#allocation112_spill] sm:$0xff] %v5756_v63  ;;  %v5772_v52 = vsub.f32 %v2021_v50, %v5756_v63  ;;  %v2379_v13 = vsub.f32 %v5220_v5, %v7143_v53  ;;  %v7150_v49 = vand.u32 4294901760, %v5222_v3  ;;  %v2186_v44 = vsub.f32 %v5748_v54, %v7146_v2  ;;  %v416_v63 = vld [vmem:[%s6928_s0 + $0x38] sm:$0xff] }
  0x80   : > { %4306 = vmatpush1.bf16.msra.mxu1 %v4305_v47  ;;  %v591_v47 = vsub.f32 %v5751_v23, %v7149_v42  ;;  %v774_v46 = vand.u32 4294901760, %v773_v45  ;;  %v786_v8 = vand.u32 4294901760, %v785_v7  ;;  %v581_v14 = vand.u32 4294901760, %v580_v39  ;;  %v2022_v2 = vld [vmem:[%s6929_s1 + $0x38] sm:$0xff] }
  0x81   : > { %7522 = vst [vmem:[#allocation113_spill] sm:$0xff] %v5772_v52  ;;  %v7157_v50 = vand.u32 4294901760, %v5772_v52  ;;  %v2380_v6 = vand.u32 4294901760, %v2379_v13  ;;  %v2391_v53 = vsub.f32 %v5222_v3, %v7150_v49  ;;  %v2187_v54 = vand.u32 4294901760, %v2186_v44 }
  0x82   : > { %v592_v42 = vand.u32 4294901760, %v591_v47  ;;  %v4115_v45 = vpack.c.bf16 %v786_v8, %v774_v46  ;;  %v7523_v7 = vand.u32 4294901760, %v5243_v27  ;;  %582 = vmatmul.mubr.f32.gmra.mrb[10].mxu0 %v581_v14  ;;  %v7524_v23 = vand.u32 4294901760, %v5245_v4  ;;  %v417_v8 = vld [vmem:[%s6928_s0 + $0x40] sm:$0xff] }
  0x83   : > { %v2197_v13 = vsub.f32 %v5772_v52, %v7157_v50  ;;  %v2392_v49 = vand.u32 4294901760, %v2391_v53  ;;  %v7525_v41 = vand.u32 4294901760, %v5251_v9  ;;  %2188 = vmatmul.mubr.f32.gmra.mrb[10].mxu1 %v2187_v54  ;;  %587 = vmatprep.mubr.f32.mxu0 %v7397_v26  ;;  %v7526_v14 = vld [vmem:[#allocation50_spill] sm:$0xff]  ;;  %v5815_v50 = vand.u32 4294901760, %v2022_v2 }
  0x84   : > { %v779_v39 = vsub.f32 %v5243_v27, %v7523_v7  ;;  %v791_v30 = vsub.f32 %v5245_v4, %v7524_v23  ;;  %v7527_v47 = vand.u32 4294901760, %v7526_v14  ;;  %v5813_v7 = vand.u32 4294901760, %v416_v63  ;;  %2193 = vmatprep.mubr.f32.mxu1 %v7397_v26  ;;  %4116 = vmatprep.subr.bf16.mxu0 %v4115_v45  ;;  %v7534_v4 = vld [vmem:[#allocation54_spill] sm:$0xff] }
  0x85   : > { %v2385_v44 = vsub.f32 %v5251_v9, %v7525_v41  ;;  %7529 = vst [vmem:[#allocation115_spill] sm:$0xff] %v5815_v50  ;;  %v2023_v41 = vld [vmem:[%s6929_s1 + $0x40] sm:$0xff]  ;;  %v2198_v23 = vand.u32 4294901760, %v2197_v13  ;;  %v4307_v54 = vpack.c.bf16 %v2392_v49, %v2380_v6  ;;  %v5827_v12 = vand.u32 4294901760, %v417_v8  ;;  %v7538_v49 = vld [vmem:[#allocation55_spill] sm:$0xff] }
  0x86   : > { %v780_v46 = vand.u32 4294901760, %v779_v39  ;;  %v2397_v53 = vsub.f32 %v7526_v14, %v7527_v47  ;;  %7528 = vst [vmem:[#allocation114_spill] sm:$0xff] %v5813_v7  ;;  %v792_v52 = vand.u32 4294901760, %v791_v30  ;;  %v5822_v51 = vsub.f32 %v416_v63, %v5813_v7  ;;  %593 = vmatmul.mubr.f32.gmra.mrb[12].mxu0 %v592_v42  ;;  %v7533_v14 = vld [vmem:[#allocation53_spill] sm:$0xff] }
  0x87   : > { %v2386_v38 = vand.u32 4294901760, %v2385_v44  ;;  %v5825_v47 = vsub.f32 %v2022_v2, %v5815_v50  ;;  %7532 = vst [vmem:[#allocation118_spill] sm:$0xff] %v5827_v12  ;;  %4308 = vmatprep.subr.bf16.mxu1 %v4307_v54  ;;  %v7174_v9 = vand.u32 4294901760, %v7533_v14  ;;  %v7173_v45 = vand.u32 4294901760, %v7534_v4  ;;  %2199 = vmatmul.mubr.f32.gmra.mrb[12].mxu1 %v2198_v23 }
  0x88   : > { %v2398_v39 = vand.u32 4294901760, %v2397_v53  ;;  %7530 = vst [vmem:[#allocation116_spill] sm:$0xff] %v5822_v51  ;;  %v4117_v62 = vpack.c.bf16 %v792_v52, %v780_v46  ;;  %v5831_v13 = vand.u32 4294901760, %v2023_v41  ;;  %598 = vmatprep.mubr.f32.mxu0 %v7397_v26  ;;  %v7175_v6 = vand.u32 4294901760, %v5822_v51  ;;  %2204 = vmatprep.mubr.f32.mxu1 %v7397_v26  ;;  %v7539_v53 = vld [vmem:[#allocation56_spill] sm:$0xff] }
  0x89   : > { %7531 = vst [vmem:[#allocation117_spill] sm:$0xff] %v5825_v47  ;;  %v7176_v63 = vand.u32 4294901760, %v5825_v47  ;;  %v5837_v2 = vsub.f32 %v417_v8, %v5827_v12  ;;  %v797_v42 = vsub.f32 %v7533_v14, %v7174_v9  ;;  %v7179_v44 = vand.u32 4294901760, %v7538_v49 }
  0x8a   : > { %7535 = vst [vmem:[#allocation119_spill] sm:$0xff] %v5831_v13  ;;  %v4309_v30 = vpack.c.bf16 %v2398_v39, %v2386_v38  ;;  %4118 = vmatpush1.bf16.msra.mxu0 %v4117_v62  ;;  %v809_v38 = vsub.f32 %v7534_v4, %v7173_v45  ;;  %v5847_v52 = vsub.f32 %v2023_v41, %v5831_v13  ;;  %v7181_v23 = vand.u32 4294901760, %v7539_v53 }
  0x8b   : > { %7536 = vst [vmem:[#allocation120_spill] sm:$0xff] %v5837_v2  ;;  %v602_v62 = vsub.f32 %v5822_v51, %v7175_v6  ;;  %v2208_v8 = vsub.f32 %v5825_v47, %v7176_v63  ;;  %v7180_v46 = vand.u32 4294901760, %v5837_v2  ;;  %v798_v54 = vand.u32 4294901760, %v797_v42  ;;  %v418_v42 = vld [vmem:[%s6928_s0 + $0x48] sm:$0xff] }
  0x8c   : > { %7537 = vst [vmem:[#allocation121_spill] sm:$0xff] %v5847_v52  ;;  %4310 = vmatpush1.bf16.msra.mxu1 %v4309_v30  ;;  %v810_v39 = vand.u32 4294901760, %v809_v38  ;;  %v7188_v41 = vand.u32 4294901760, %v5847_v52  ;;  %v2403_v30 = vsub.f32 %v7538_v49, %v7179_v44  ;;  %v2415_v63 = vsub.f32 %v7539_v53, %v7181_v23 }
  0x8d   : > { %v603_v45 = vand.u32 4294901760, %v602_v62  ;;  %v2209_v9 = vand.u32 4294901760, %v2208_v8  ;;  %v613_v6 = vsub.f32 %v5837_v2, %v7180_v46  ;;  %v7540_v62 = vand.u32 4294901760, %v5315_v29  ;;  %v2024_v46 = vld [vmem:[%s6929_s1 + $0x48] sm:$0xff] }
  0x8e   : > { %v4119_v38 = vpack.c.bf16 %v810_v39, %v798_v54  ;;  %v2219_v47 = vsub.f32 %v5847_v52, %v7188_v41  ;;  %v2404_v44 = vand.u32 4294901760, %v2403_v30  ;;  %v2416_v2 = vand.u32 4294901760, %v2415_v63  ;;  %v7542_v39 = vld [vmem:[#allocation61_spill] sm:$0xff] }
  0x8f   : > { %v803_v8 = vsub.f32 %v5315_v29, %v7540_v62  ;;  %604 = vmatmul.mubr.f32.gmra.mrb[14].mxu0 %v603_v45  ;;  %2210 = vmatmul.mubr.f32.gmra.mrb[14].mxu1 %v2209_v9  ;;  %v614_v23 = vand.u32 4294901760, %v613_v6  ;;  %v7541_v51 = vand.u32 4294901760, %v5317_v28  ;;  %v7543_v13 = vand.u32 4294901760, %v7542_v39  ;;  %v419_v62 = vld [vmem:[%s6928_s0 + $0x50] sm:$0xff]  ;;  %v7544_v6 = vld [vmem:[#allocation62_spill] sm:$0xff] }
  0x90   : > { %609 = vmatprep.mubr.f32.mxu0 %v7397_v26  ;;  %2215 = vmatprep.mubr.f32.mxu1 %v7397_v26  ;;  %v2220_v45 = vand.u32 4294901760, %v2219_v47  ;;  %v7545_v63 = vand.u32 4294901760, %v7544_v6  ;;  %v5894_v52 = vand.u32 4294901760, %v418_v42  ;;  %v5899_v7 = vand.u32 4294901760, %v2024_v46 }
  0x91   : > { %v815_v54 = vsub.f32 %v5317_v28, %v7541_v51  ;;  %v2409_v30 = vsub.f32 %v7542_v39, %v7543_v13  ;;  %v804_v9 = vand.u32 4294901760, %v803_v8  ;;  %v2025_v51 = vld [vmem:[%s6929_s1 + $0x50] sm:$0xff]  ;;  %4120 = vmatprep.subr.bf16.mxu0 %v4119_v38  ;;  %v4311_v13 = vpack.c.bf16 %v2416_v2, %v2404_v44  ;;  %v7550_v28 = vld [vmem:[#allocation65_spill] sm:$0xff]  ;;  %v7552_v38 = vld [vmem:[#allocation66_spill] sm:$0xff] }
  0x92   : > { %v2421_v41 = vsub.f32 %v7544_v6, %v7545_v63  ;;  %7546 = vst [vmem:[#allocation122_spill] sm:$0xff] %v5894_v52  ;;  %7547 = vst [vmem:[#allocation123_spill] sm:$0xff] %v5899_v7  ;;  %v5902_v47 = vsub.f32 %v418_v42, %v5894_v52  ;;  %v5904_v8 = vand.u32 4294901760, %v419_v62  ;;  %v7203_v63 = vand.u32 4294901760, %v7550_v28  ;;  %v7563_v52 = vld [vmem:[#allocation72_spill] sm:$0xff] }
  0x93   : > { %v816_v12 = vand.u32 4294901760, %v815_v54  ;;  %v2410_v50 = vand.u32 4294901760, %v2409_v30  ;;  %615 = vmatmul.mubr.f32.gmra.mrb[16].mxu0 %v614_v23  ;;  %2221 = vmatmul.mubr.f32.gmra.mrb[16].mxu1 %v2220_v45  ;;  %v5908_v29 = vsub.f32 %v2024_v46, %v5899_v7  ;;  %v7204_v2 = vand.u32 4294901760, %v7552_v38 }
  0x94   : > { %v2422_v39 = vand.u32 4294901760, %v2421_v41  ;;  %7548 = vst [vmem:[#allocation124_spill] sm:$0xff] %v5902_v47  ;;  %7549 = vst [vmem:[#allocation125_spill] sm:$0xff] %v5904_v8  ;;  %v5911_v44 = vand.u32 4294901760, %v2025_v51  ;;  %4312 = vmatprep.subr.bf16.mxu1 %v4311_v13  ;;  %620 = vmatprep.mubr.f32.mxu0 %v7397_v26  ;;  %v7207_v41 = vand.u32 4294901760, %v5902_v47  ;;  %v5916_v42 = vsub.f32 %v419_v62, %v5904_v8 }
  0x95   : > { %v4121_v6 = vpack.c.bf16 %v816_v12, %v804_v9  ;;  %7551 = vst [vmem:[#allocation126_spill] sm:$0xff] %v5908_v29  ;;  %v821_v12 = vsub.f32 %v7550_v28, %v7203_v63  ;;  %2226 = vmatprep.mubr.f32.mxu1 %v7397_v26  ;;  %v7210_v46 = vand.u32 4294901760, %v5908_v29  ;;  %v7564_v27 = vand.u32 4294901760, %v7563_v52 }
  0x96   : > { %7553 = vst [vmem:[#allocation127_spill] sm:$0xff] %v5911_v44  ;;  %v4313_v54 = vpack.c.bf16 %v2422_v39, %v2410_v50  ;;  %7554 = vst [vmem:[#allocation128_spill] sm:$0xff] %v5916_v42  ;;  %v833_v50 = vsub.f32 %v7552_v38, %v7204_v2  ;;  %v5927_v23 = vsub.f32 %v2025_v51, %v5911_v44  ;;  %v7556_v39 = vld [vmem:[#allocation67_spill] sm:$0xff]  ;;  %v7216_v45 = vand.u32 4294901760, %v5916_v42 }
  0x97   : > { %4122 = vmatpush1.bf16.msra.mxu0 %v4121_v6  ;;  %v7213_v30 = vand.u32 4294901760, %v7556_v39  ;;  %v624_v62 = vsub.f32 %v5902_v47, %v7207_v41  ;;  %v822_v9 = vand.u32 4294901760, %v821_v12  ;;  %v7557_v6 = vld [vmem:[#allocation68_spill] sm:$0xff]  ;;  %v2230_v63 = vsub.f32 %v5908_v29, %v7210_v46 }
  0x98   : > { %7555 = vst [vmem:[#allocation129_spill] sm:$0xff] %v5927_v23  ;;  %4314 = vmatpush1.bf16.msra.mxu1 %v4313_v54  ;;  %v7217_v13 = vand.u32 4294901760, %v7557_v6  ;;  %v834_v2 = vand.u32 4294901760, %v833_v50  ;;  %v635_v41 = vsub.f32 %v5916_v42, %v7216_v45  ;;  %v7558_v47 = vand.u32 4294901760, %v5387_v35  ;;  %v420_v50 = vld [vmem:[%s6928_s0 + $0x58] sm:$0xff] }
  0x99   : > { %v2427_v54 = vsub.f32 %v7556_v39, %v7213_v30  ;;  %v625_v44 = vand.u32 4294901760, %v624_v62  ;;  %v2231_v51 = vand.u32 4294901760, %v2230_v63  ;;  %v7559_v62 = vand.u32 4294901760, %v5927_v23  ;;  %v2026_v45 = vld [vmem:[%s6929_s1 + $0x58] sm:$0xff] }
  0x9a   : > { %v2439_v12 = vsub.f32 %v7557_v6, %v7217_v13  ;;  %v827_v46 = vsub.f32 %v5387_v35, %v7558_v47  ;;  %v4123_v29 = vpack.c.bf16 %v834_v2, %v822_v9  ;;  %v421_v13 = vld [vmem:[%s6928_s0 + $0x60] sm:$0xff]  ;;  %v636_v47 = vand.u32 4294901760, %v635_v41 }
  0x9b   : > { %v2241_v30 = vsub.f32 %v5927_v23, %v7559_v62  ;;  %v2428_v8 = vand.u32 4294901760, %v2427_v54  ;;  %626 = vmatmul.mubr.f32.gmra.mrb[18].mxu0 %v625_v44  ;;  %v7560_v63 = vand.u32 4294901760, %v5389_v34  ;;  %2232 = vmatmul.mubr.f32.gmra.mrb[18].mxu1 %v2231_v51  ;;  %v7561_v54 = vld [vmem:[#allocation71_spill] sm:$0xff]  ;;  %v2445_v16 = vsub.f32 %v7563_v52, %v7564_v27 }
  0x9c   : > { %v2440_v42 = vand.u32 4294901760, %v2439_v12  ;;  %v828_v7 = vand.u32 4294901760, %v827_v46  ;;  %631 = vmatprep.mubr.f32.mxu0 %v7397_v26  ;;  %v7562_v62 = vand.u32 4294901760, %v7561_v54  ;;  %v5973_v44 = vand.u32 4294901760, %v420_v50  ;;  %2237 = vmatprep.mubr.f32.mxu1 %v7397_v26 }
  0x9d   : > { %v839_v2 = vsub.f32 %v5389_v34, %v7560_v63  ;;  %v2242_v9 = vand.u32 4294901760, %v2241_v30  ;;  %4124 = vmatprep.subr.bf16.mxu0 %v4123_v29  ;;  %v5976_v12 = vand.u32 4294901760, %v2026_v45  ;;  %v5978_v51 = vand.u32 4294901760, %v421_v13  ;;  %v2027_v30 = vld [vmem:[%s6929_s1 + $0x60] sm:$0xff] }
  0x9e   : > { %v2433_v23 = vsub.f32 %v7561_v54, %v7562_v62  ;;  %7565 = vst [vmem:[#allocation71_spill] sm:$0xff] %v5973_v44  ;;  %v4315_v41 = vpack.c.bf16 %v2440_v42, %v2428_v8  ;;  %v2446_v62 = vand.u32 4294901760, %v2445_v16  ;;  %v5984_v15 = vsub.f32 %v420_v50, %v5973_v44 }
  0x9f   : > { %v840_v46 = vand.u32 4294901760, %v839_v2  ;;  %7566 = vst [vmem:[#allocation72_spill] sm:$0xff] %v5976_v12  ;;  %7567 = vst [vmem:[#allocation130_spill] sm:$0xff] %v5978_v51  ;;  %v7236_v27 = vand.u32 4294901760, %v5429_v25  ;;  %637 = vmatmul.mubr.f32.gmra.mrb[20].mxu0 %v636_v47  ;;  %v5988_v8 = vsub.f32 %v2026_v45, %v5976_v12  ;;  %v5991_v42 = vsub.f32 %v421_v13, %v5978_v51  ;;  %v7571_v2 = vld [vmem:[#allocation75_spill] sm:$0xff]  ;;  %v7573_v47 = vld [vmem:[#allocation76_spill] sm:$0xff] }
  0xa0   : > { %v2434_v63 = vand.u32 4294901760, %v2433_v23  ;;  %7568 = vst [vmem:[#allocation131_spill] sm:$0xff] %v5984_v15  ;;  %4316 = vmatprep.subr.bf16.mxu1 %v4315_v41  ;;  %v7237_v59 = vand.u32 4294901760, %v7571_v2  ;;  %2243 = vmatmul.mubr.f32.gmra.mrb[20].mxu1 %v2242_v9  ;;  %v7240_v16 = vand.u32 4294901760, %v5984_v15  ;;  %v5999_v50 = vand.u32 4294901760, %v2027_v30 }
  0xa1   : > { %v4125_v29 = vpack.c.bf16 %v840_v46, %v828_v7  ;;  %7569 = vst [vmem:[#allocation132_spill] sm:$0xff] %v5988_v8  ;;  %7570 = vst [vmem:[#allocation133_spill] sm:$0xff] %v5991_v42  ;;  %642 = vmatprep.mubr.f32.mxu0 %v7397_v26  ;;  %v845_v23 = vsub.f32 %v5429_v25, %v7236_v27  ;;  %2248 = vmatprep.mubr.f32.mxu1 %v7397_v26  ;;  %v7243_v7 = vand.u32 4294901760, %v5988_v8 }
  0xa2   : > { %v4317_v1 = vpack.c.bf16 %v2446_v62, %v2434_v63  ;;  %7572 = vst [vmem:[#allocation75_spill] sm:$0xff] %v5999_v50  ;;  %v7244_v45 = vand.u32 4294901760, %v5991_v42  ;;  %v857_v13 = vsub.f32 %v7571_v2, %v7237_v59  ;;  %v646_v41 = vsub.f32 %v5984_v15, %v7240_v16  ;;  %v7575_v62 = vld [vmem:[#allocation77_spill] sm:$0xff] }
  0xa3   : > { %4126 = vmatpush1.bf16.msra.mxu0 %v4125_v29  ;;  %v846_v46 = vand.u32 4294901760, %v845_v23  ;;  %v6012_v63 = vsub.f32 %v2027_v30, %v5999_v50  ;;  %v7247_v29 = vand.u32 4294901760, %v7575_v62  ;;  %v2252_v27 = vsub.f32 %v5988_v8, %v7243_v7 }
  0xa4   : > { %4318 = vmatpush1.bf16.msra.mxu1 %v4317_v1  ;;  %v657_v59 = vsub.f32 %v5991_v42, %v7244_v45  ;;  %v858_v9 = vand.u32 4294901760, %v857_v13  ;;  %v7576_v1 = vand.u32 4294901760, %v7573_v47  ;;  %v647_v16 = vand.u32 4294901760, %v646_v41  ;;  %v422_v45 = vld [vmem:[%s6928_s0 + $0x68] sm:$0xff] }
  0xa5   : > { %7574 = vst [vmem:[#allocation76_spill] sm:$0xff] %v6012_v63  ;;  %v2463_v30 = vsub.f32 %v7575_v62, %v7247_v29  ;;  %v7577_v15 = vand.u32 4294901760, %v5459_v37  ;;  %v2028_v13 = vld [vmem:[%s6929_s1 + $0x68] sm:$0xff]  ;;  %v423_v29 = vld [vmem:[%s6928_s0 + $0x70] sm:$0xff]  ;;  %v7578_v8 = vand.u32 4294901760, %v6012_v63  ;;  %v7579_v44 = vand.u32 4294901760, %v5461_v36 }
  0xa6   : > { %v2451_v51 = vsub.f32 %v7573_v47, %v7576_v1  ;;  %v2253_v1 = vand.u32 4294901760, %v2252_v27  ;;  %v658_v41 = vand.u32 4294901760, %v657_v59  ;;  %v4127_v42 = vpack.c.bf16 %v858_v9, %v846_v46  ;;  %648 = vmatmul.mubr.f32.gmra.mrb[22].mxu0 %v647_v16  ;;  %v7580_v59 = vld [vmem:[#allocation80_spill] sm:$0xff]  ;;  %v7582_v9 = vld [vmem:[#allocation81_spill] sm:$0xff] }
  0xa7   : > { %v851_v7 = vsub.f32 %v5459_v37, %v7577_v15  ;;  %v2263_v15 = vsub.f32 %v6012_v63, %v7578_v8  ;;  %v2464_v50 = vand.u32 4294901760, %v2463_v30  ;;  %v863_v21 = vsub.f32 %v5461_v36, %v7579_v44  ;;  %653 = vmatprep.mubr.f32.mxu0 %v7397_v26 }
  0xa8   : > { %v2452_v23 = vand.u32 4294901760, %v2451_v51  ;;  %2254 = vmatmul.mubr.f32.gmra.mrb[22].mxu1 %v2253_v1  ;;  %v7581_v51 = vand.u32 4294901760, %v7580_v59  ;;  %v7583_v46 = vand.u32 4294901760, %v7582_v9  ;;  %v6053_v24 = vand.u32 4294901760, %v422_v45  ;;  %4128 = vmatprep.subr.bf16.mxu0 %v4127_v42 }
  0xa9   : > { %v852_v12 = vand.u32 4294901760, %v851_v7  ;;  %v6055_v8 = vand.u32 4294901760, %v2028_v13  ;;  %2259 = vmatprep.mubr.f32.mxu1 %v7397_v26  ;;  %v2264_v7 = vand.u32 4294901760, %v2263_v15  ;;  %v864_v30 = vand.u32 4294901760, %v863_v21  ;;  %v7590_v21 = vld [vmem:[#allocation84_spill] sm:$0xff]  ;;  %v7591_v15 = vld [vmem:[#allocation85_spill] sm:$0xff] }
  0xaa   : > { %v2457_v27 = vsub.f32 %v7580_v59, %v7581_v51  ;;  %v2469_v16 = vsub.f32 %v7582_v9, %v7583_v46  ;;  %7584 = vst [vmem:[#allocation77_spill] sm:$0xff] %v6053_v24  ;;  %v4319_v44 = vpack.c.bf16 %v2464_v50, %v2452_v23  ;;  %v6058_v1 = vand.u32 4294901760, %v423_v29  ;;  %v2029_v51 = vld [vmem:[%s6929_s1 + $0x70] sm:$0xff]  ;;  %659 = vmatmul.mubr.f32.gmra.mrb[24].mxu0 %v658_v41 }
  0xab   : > { %7585 = vst [vmem:[#allocation80_spill] sm:$0xff] %v6055_v8  ;;  %v6064_v46 = vsub.f32 %v422_v45, %v6053_v24  ;;  %v6067_v10 = vsub.f32 %v2028_v13, %v6055_v8  ;;  %v4129_v42 = vpack.c.bf16 %v864_v30, %v852_v12  ;;  %v7271_v23 = vand.u32 4294901760, %v7590_v21  ;;  %664 = vmatprep.mubr.f32.mxu0 %v7397_v26  ;;  %v7595_v30 = vld [vmem:[#allocation87_spill] sm:$0xff]  ;;  %v7599_v24 = vld [vmem:[#allocation92_spill] sm:$0xff] }
  0xac   : > { %7586 = vst [vmem:[#allocation134_spill] sm:$0xff] %v6058_v1  ;;  %v2458_v63 = vand.u32 4294901760, %v2457_v27  ;;  %v2470_v11 = vand.u32 4294901760, %v2469_v16  ;;  %4320 = vmatprep.subr.bf16.mxu1 %v4319_v44  ;;  %v6070_v50 = vsub.f32 %v423_v29, %v6058_v1  ;;  %v7270_v0 = vand.u32 4294901760, %v7591_v15  ;;  %2265 = vmatmul.mubr.f32.gmra.mrb[24].mxu1 %v2264_v7 }
  0xad   : > { %7587 = vst [vmem:[#allocation135_spill] sm:$0xff] %v6064_v46  ;;  %7588 = vst [vmem:[#allocation136_spill] sm:$0xff] %v6067_v10  ;;  %v7274_v45 = vand.u32 4294901760, %v6064_v46  ;;  %v7279_v27 = vand.u32 4294901760, %v6067_v10  ;;  %v6077_v13 = vand.u32 4294901760, %v2029_v51  ;;  %4130 = vmatpush1.bf16.msra.mxu0 %v4129_v42  ;;  %2270 = vmatprep.mubr.f32.mxu1 %v7397_v26  ;;  %v869_v29 = vsub.f32 %v7590_v21, %v7271_v23 }
  0xae   : > { %7589 = vst [vmem:[#allocation137_spill] sm:$0xff] %v6070_v50  ;;  %v4321_v33 = vpack.c.bf16 %v2470_v11, %v2458_v63  ;;  %v7280_v12 = vand.u32 4294901760, %v6070_v50  ;;  %v881_v11 = vsub.f32 %v7591_v15, %v7270_v0  ;;  %v7593_v63 = vld [vmem:[#allocation86_spill] sm:$0xff]  ;;  %v7283_v42 = vand.u32 4294901760, %v7595_v30 }
  0xaf   : > { %7592 = vst [vmem:[#allocation138_spill] sm:$0xff] %v6077_v13  ;;  %v668_v16 = vsub.f32 %v6064_v46, %v7274_v45  ;;  %v2274_v7 = vsub.f32 %v6067_v10, %v7279_v27  ;;  %v6095_v44 = vsub.f32 %v2029_v51, %v6077_v13  ;;  %v870_v23 = vand.u32 4294901760, %v869_v29  ;;  %v424_v27 = vld [vmem:[%s6928_s0 + $0x78] sm:$0xff] }
  0xb0   : > { %4322 = vmatpush1.bf16.msra.mxu1 %v4321_v33  ;;  %v679_v0 = vsub.f32 %v6070_v50, %v7280_v12  ;;  %v882_v41 = vand.u32 4294901760, %v881_v11  ;;  %v7596_v33 = vand.u32 4294901760, %v7593_v63  ;;  %v2487_v51 = vsub.f32 %v7595_v30, %v7283_v42  ;;  %v2030_v29 = vld [vmem:[%s6929_s1 + $0x78] sm:$0xff] }
  0xb1   : > { %7594 = vst [vmem:[#allocation139_spill] sm:$0xff] %v6095_v44  ;;  %v669_v45 = vand.u32 4294901760, %v668_v16  ;;  %v2275_v46 = vand.u32 4294901760, %v2274_v7  ;;  %v7292_v8 = vand.u32 4294901760, %v6095_v44  ;;  %v7597_v16 = vand.u32 4294901760, %v5531_v40 }
  0xb2   : > { %v2475_v1 = vsub.f32 %v7593_v63, %v7596_v33  ;;  %v680_v11 = vand.u32 4294901760, %v679_v0  ;;  %v4131_v12 = vpack.c.bf16 %v882_v41, %v870_v23  ;;  %v2488_v42 = vand.u32 4294901760, %v2487_v51  ;;  %v7601_v23 = vld [vmem:[#allocation93_spill] sm:$0xff] }
  0xb3   : > { %v875_v7 = vsub.f32 %v5531_v40, %v7597_v16  ;;  %670 = vmatmul.mubr.f32.gmra.mrb[26].mxu0 %v669_v45  ;;  %2276 = vmatmul.mubr.f32.gmra.mrb[26].mxu1 %v2275_v46  ;;  %v2285_v33 = vsub.f32 %v6095_v44, %v7292_v8  ;;  %v7598_v10 = vand.u32 4294901760, %v5533_v43  ;;  %v7600_v31 = vand.u32 4294901760, %v7599_v24 }
  0xb4   : > { %v2476_v50 = vand.u32 4294901760, %v2475_v1  ;;  %675 = vmatprep.mubr.f32.mxu0 %v7397_v26  ;;  %2281 = vmatprep.mubr.f32.mxu1 %v7397_v26  ;;  %v7602_v46 = vand.u32 4294901760, %v7601_v23  ;;  %v6131_v41 = vand.u32 4294901760, %v424_v27  ;;  %v6133_v51 = vand.u32 4294901760, %v2030_v29 }
  0xb5   : > { %v887_v13 = vsub.f32 %v5533_v43, %v7598_v10  ;;  %v2481_v0 = vsub.f32 %v7599_v24, %v7600_v31  ;;  %v876_v1 = vand.u32 4294901760, %v875_v7  ;;  %4132 = vmatprep.subr.bf16.mxu0 %v4131_v12  ;;  %v2286_v16 = vand.u32 4294901760, %v2285_v33  ;;  %v7607_v7 = vld [vmem:[#allocation11_spill] sm:$0xff] }
  0xb6   : > { %v2493_v45 = vsub.f32 %v7601_v23, %v7602_v46  ;;  %7603 = vst [vmem:[#allocation140_spill] sm:$0xff] %v6131_v41  ;;  %7604 = vst [vmem:[#allocation141_spill] sm:$0xff] %v6133_v51  ;;  %v4323_v10 = vpack.c.bf16 %v2488_v42, %v2476_v50  ;;  %v6136_v31 = vsub.f32 %v424_v27, %v6131_v41  ;;  %v7609_v33 = vld [vmem:[#allocation15_spill] sm:$0xff] }
  0xb7   : > { %v888_v8 = vand.u32 4294901760, %v887_v13  ;;  %v2482_v44 = vand.u32 4294901760, %v2481_v0  ;;  %v6139_v19 = vsub.f32 %v2030_v29, %v6133_v51  ;;  %v4135_v20 = vpack.c.bf16 %v7608_v18, %v7607_v7  ;;  %681 = vmatmul.mubr.f32.gmra.mrb[28].mxu0 %v680_v11  ;;  %2287 = vmatmul.mubr.f32.gmra.mrb[28].mxu1 %v2286_v16  ;;  %v7610_v0 = vld [vmem:[#allocation16_spill] sm:$0xff]  ;;  %v7612_v16 = vld [vmem:[#allocation19_spill] sm:$0xff] }
  0xb8   : > { %v2494_v32 = vand.u32 4294901760, %v2493_v45  ;;  %7605 = vst [vmem:[#allocation142_spill] sm:$0xff] %v6136_v31  ;;  %v4327_v12 = vpack.c.bf16 %v4981_v56, %v4979_v55  ;;  %4324 = vmatprep.subr.bf16.mxu1 %v4323_v10  ;;  %686 = vmatprep.mubr.f32.mxu0 %v7397_v26  ;;  %v7304_v13 = vand.u32 4294901760, %v6136_v31  ;;  %v4147_v29 = vpack.c.bf16 %v5215_v48, %v5213_v17  ;;  %v7611_v45 = vld [vmem:[#allocation18_spill] sm:$0xff]  ;;  %v7628_v17 = vld [vmem:[#allocation8_spill] sm:$0xff] }
  0xb9   : > { %7606 = vst [vmem:[#allocation143_spill] sm:$0xff] %v6139_v19  ;;  %v4133_v46 = vpack.c.bf16 %v888_v8, %v876_v1  ;;  %v7303_v27 = vand.u32 4294901760, %v6139_v19  ;;  %2292 = vmatprep.mubr.f32.mxu1 %v7397_v26  ;;  %v4339_v11 = vpack.c.bf16 %v5222_v3, %v5220_v5  ;;  %v4137_v1 = vpack.c.bf16 %v7610_v0, %v7609_v33  ;;  %v7625_v3 = vld [vmem:[#allocation35_spill] sm:$0xff]  ;;  %v7627_v5 = vld [vmem:[#allocation38_spill] sm:$0xff] }
  0xba   : > { %v4325_v50 = vpack.c.bf16 %v2494_v32, %v2482_v44  ;;  %v690_v42 = vsub.f32 %v6136_v31, %v7304_v13  ;;  %v4329_v10 = vpack.c.bf16 %v7612_v16, %v7611_v45  ;;  %v7614_v13 = vld [vmem:[#allocation3_spill] sm:$0xff] }
  0xbb   : > { %4134 = vmatpush1.bf16.msra.mxu0 %v4133_v46  ;;  %v2296_v8 = vsub.f32 %v6139_v19, %v7303_v27  ;;  %v4151_v46 = vpack.c.bf16 %v7534_v4, %v7533_v14  ;;  %v7619_v27 = vld [vmem:[#allocation30_spill] sm:$0xff]  ;;  %v7621_v4 = vld [vmem:[#allocation32_spill] sm:$0xff] }
  0xbc   : > { %4326 = vmatpush1.bf16.msra.mxu1 %v4325_v50  ;;  %4136 = vmatprep.subr.bf16.mxu0 %v4135_v20  ;;  %v691_v32 = vand.u32 4294901760, %v690_v42  ;;  %v4343_v20 = vpack.c.bf16 %v7539_v53, %v7538_v49  ;;  %v4331_v50 = vpack.c.bf16 %v5074_v61, %v5072_v60  ;;  %v4155_v42 = vpack.c.bf16 %v7552_v38, %v7550_v28  ;;  %v7617_v38 = vld [vmem:[#allocation26_spill] sm:$0xff] }
  0xbd   : > { %4328 = vmatprep.subr.bf16.mxu1 %v4327_v12  ;;  %v2297_v44 = vand.u32 4294901760, %v2296_v8  ;;  %v4139_v12 = vpack.c.bf16 %v5070_v58, %v5068_v57  ;;  %v4347_v8 = vpack.c.bf16 %v7557_v6, %v7556_v39  ;;  %v7613_v39 = vld [vmem:[#allocation2_spill] sm:$0xff]  ;;  %v7615_v6 = vld [vmem:[#allocation23_spill] sm:$0xff] }
  0xbe   : > { %692 = vmatmul.mubr.f32.gmra.mrb[30].mxu0 %v691_v32  ;;  %v4141_v28 = vpack.c.bf16 %v7615_v6, %v5099_v22  ;;  %v7616_v32 = vld [vmem:[#allocation25_spill] sm:$0xff]  ;;  %v7624_v14 = vld [vmem:[#allocation34_spill] sm:$0xff] }
  0xbf   : > { %2298 = vmatmul.mubr.f32.gmra.mrb[30].mxu1 %v2297_v44  ;;  %922 = vmatprep.mubr.f32.mxu0 %v7397_v26  ;;  %v4333_v53 = vpack.c.bf16 %v7617_v38, %v7616_v32  ;;  %v7618_v44 = vld [vmem:[#allocation29_spill] sm:$0xff] }
  0xc0   : > { %2528 = vmatprep.mubr.f32.mxu1 %v7397_v26  ;;  %v4143_v49 = vpack.c.bf16 %v7619_v27, %v7618_v44 }
  0xc2   : > { %924 = vmatmul.mubr.f32.vlgmr.msra.gmra.mrb[0].mxu0 %v7613_v39  ;;  %v7620_v39 = vld [vmem:[#allocation31_spill] sm:$0xff] }
  0xc3   : > { %2530 = vmatmul.mubr.f32.vlgmr.msra.gmra.mrb[0].mxu1 %v7614_v13  ;;  %4138 = vmatpush1.bf16.msra.mxu0 %v4137_v1  ;;  %v4335_v13 = vpack.c.bf16 %v7621_v4, %v7620_v39  ;;  %v7622_v1 = vld [vmem:[#allocation4_spill] sm:$0xff]  ;;  %v7629_v4 = vld [vmem:[#allocation9_spill] sm:$0xff] }
  0xc4   : > { %4330 = vmatpush1.bf16.msra.mxu1 %v4329_v10  ;;  %929 = vmatprep.mubr.f32.mxu0 %v7397_v26  ;;  %v7623_v10 = vld [vmem:[#allocation5_spill] sm:$0xff] }
  0xc5   : > { %2535 = vmatprep.mubr.f32.mxu1 %v7397_v26  ;;  %4140 = vmatprep.subr.bf16.mxu0 %v4139_v12  ;;  %v4145_v12 = vpack.c.bf16 %v7625_v3, %v7624_v14  ;;  %v7633_v3 = vld [vmem:[#allocation50_spill] sm:$0xff] }
  0xc6   : > { %4332 = vmatprep.subr.bf16.mxu1 %v4331_v50  ;;  %931 = vmatmul.mubr.f32.gmra.mrb[2].mxu0 %v7622_v1  ;;  %v7626_v50 = vld [vmem:[#allocation37_spill] sm:$0xff] }
  0xc7   : > { %2537 = vmatmul.mubr.f32.gmra.mrb[2].mxu1 %v7623_v10  ;;  %936 = vmatprep.mubr.f32.mxu0 %v7397_v26  ;;  %v4337_v48 = vpack.c.bf16 %v7627_v5, %v7626_v50  ;;  %v7632_v1 = vld [vmem:[#allocation49_spill] sm:$0xff] }
  0xc8   : > { %2542 = vmatprep.mubr.f32.mxu1 %v7397_v26  ;;  %4142 = vmatpush1.bf16.msra.mxu0 %v4141_v28  ;;  %v7630_v28 = vld [vmem:[#allocation46_spill] sm:$0xff]  ;;  %v4341_v14 = vpack.c.bf16 %v7633_v3, %v7632_v1 }
  0xc9   : > { %4334 = vmatpush1.bf16.msra.mxu1 %v4333_v53  ;;  %4144 = vmatprep.subr.bf16.mxu0 %v4143_v49  ;;  %v7631_v53 = vld [vmem:[#allocation47_spill] sm:$0xff]  ;;  %v7634_v49 = vld [vmem:[#allocation98_spill] sm:$0xff] }
  0xca   : > { %4336 = vmatprep.subr.bf16.mxu1 %v4335_v13  ;;  %938 = vmatmul.mubr.f32.gmra.mrb[4].mxu0 %v7628_v17  ;;  %v4149_v10 = vpack.c.bf16 %v7631_v53, %v7630_v28  ;;  %v7635_v13 = vld [vmem:[#allocation100_spill] sm:$0xff]  ;;  %v7638_v17 = vld [vmem:[#allocation61_spill] sm:$0xff]  ;;  %v7639_v53 = vld [vmem:[#allocation62_spill] sm:$0xff] }
  0xcb   : > { %2544 = vmatmul.mubr.f32.gmra.mrb[4].mxu1 %v7629_v4  ;;  %943 = vmatprep.mubr.f32.mxu0 %v7397_v26  ;;  %v4345_v28 = vpack.c.bf16 %v7639_v53, %v7638_v17 }
  0xcc   : > { %2549 = vmatprep.mubr.f32.mxu1 %v7397_v26  ;;  %4146 = vmatpush1.bf16.msra.mxu0 %v4145_v12  ;;  %v7636_v12 = vld [vmem:[#allocation58_spill] sm:$0xff] }
  0xcd   : > { %4338 = vmatpush1.bf16.msra.mxu1 %v4337_v48  ;;  %4148 = vmatprep.subr.bf16.mxu0 %v4147_v29  ;;  %v7637_v48 = vld [vmem:[#allocation59_spill] sm:$0xff]  ;;  %v7640_v29 = vld [vmem:[#allocation101_spill] sm:$0xff] }
  0xce   : > { %4340 = vmatprep.subr.bf16.mxu1 %v4339_v11  ;;  %945 = vmatmul.mubr.f32.gmra.mrb[6].mxu0 %v7634_v49  ;;  %v4153_v4 = vpack.c.bf16 %v7637_v48, %v7636_v12  ;;  %v7641_v11 = vld [vmem:[#allocation104_spill] sm:$0xff]  ;;  %v7693_v49 = vld [vmem:[#allocation39_spill] sm:$0xff] }
  0xcf   : > { %2551 = vmatmul.mubr.f32.gmra.mrb[6].mxu1 %v7635_v13  ;;  %950 = vmatprep.mubr.f32.mxu0 %v7397_v26  ;;  %v7691_v13 = vld [vmem:[#allocation36_spill] sm:$0xff]  ;;  %vm7694_vm12 = vnez %v7693_v49  ;;  %v7703_v49 = vld [vmem:[#allocation51_spill] sm:$0xff] }
  0xd0   : > { %2556 = vmatprep.mubr.f32.mxu1 %v7397_v26  ;;  %4150 = vmatpush1.bf16.msra.mxu0 %v4149_v10  ;;  %v7643_v10 = vld [vmem:[#allocation107_spill] sm:$0xff]  ;;  %vm7692_vm7 = vnez %v7691_v13  ;;  %v7701_v13 = vld [vmem:[#allocation48_spill] sm:$0xff] }
  0xd1   : > { %4342 = vmatpush1.bf16.msra.mxu1 %v4341_v14  ;;  %4152 = vmatprep.subr.bf16.mxu0 %v4151_v46  ;;  %v7642_v14 = vld [vmem:[#allocation106_spill] sm:$0xff]  ;;  %v7644_v46 = vpack.c.bf16 %v5389_v34, %v5387_v35 }
  0xd2   : > { %4344 = vmatprep.subr.bf16.mxu1 %v4343_v20  ;;  %952 = vmatmul.mubr.f32.gmra.mrb[8].mxu0 %v7640_v29  ;;  %v7645_v20 = vpack.c.bf16 %v7563_v52, %v7561_v54  ;;  %v7689_v29 = vld [vmem:[#allocation33_spill] sm:$0xff] }
  0xd3   : > { %2558 = vmatmul.mubr.f32.gmra.mrb[8].mxu1 %v7641_v11  ;;  %957 = vmatprep.mubr.f32.mxu0 %v7397_v26  ;;  %v7666_v11 = vld [vmem:[#allocation127_spill] sm:$0xff]  ;;  %vm7690_vm6 = vnez %v7689_v29  ;;  %v7699_v29 = vld [vmem:[#allocation45_spill] sm:$0xff] }
  0xd4   : > { %2563 = vmatprep.mubr.f32.mxu1 %v7397_v26  ;;  %4154 = vmatpush1.bf16.msra.mxu0 %v4153_v4  ;;  %v7646_v4 = vpack.c.bf16 %v7571_v2, %v5429_v25 }
  0xd5   : > { %4346 = vmatpush1.bf16.msra.mxu1 %v4345_v28  ;;  %4156 = vmatprep.subr.bf16.mxu0 %v4155_v42  ;;  %v7647_v42 = vpack.c.bf16 %v7575_v62, %v7573_v47  ;;  %v7649_v28 = vld [vmem:[#allocation112_spill] sm:$0xff] }
  0xd6   : > { %4348 = vmatprep.subr.bf16.mxu1 %v4347_v8  ;;  %959 = vmatmul.mubr.f32.gmra.mrb[10].mxu0 %v7642_v14  ;;  %v7648_v8 = vld [vmem:[#allocation108_spill] sm:$0xff]  ;;  %v7664_v14 = vld [vmem:[#allocation123_spill] sm:$0xff] }
  0xd7   : > { %2565 = vmatmul.mubr.f32.gmra.mrb[10].mxu1 %v7643_v10  ;;  %964 = vmatprep.mubr.f32.mxu0 %v7397_v26  ;;  %v7707_v10 = vld [vmem:[#allocation103_spill] sm:$0xff] }
  0xd8   : > { %2570 = vmatprep.mubr.f32.mxu1 %v7397_v26  ;;  %4158 = vmatpush1.bf16.msra.mxu0 %v7644_v46  ;;  %v7650_v46 = vpack.c.bf16 %v5461_v36, %v5459_v37 }
  0xd9   : > { %4350 = vmatpush1.bf16.msra.mxu1 %v7645_v20  ;;  %4160 = vmatprep.subr.bf16.mxu0 %v7646_v4  ;;  %v7651_v20 = vpack.c.bf16 %v7582_v9, %v7580_v59  ;;  %v7652_v4 = vpack.c.bf16 %v7591_v15, %v7590_v21  ;;  %v7740_v15 = vand.u32 4294901760, %v4981_v56  ;;  %v7742_v9 = vld [vmem:[#allocation117_spill] sm:$0xff] }
  0xda   : > { %4352 = vmatprep.subr.bf16.mxu1 %v7647_v42  ;;  %966 = vmatmul.mubr.f32.gmra.mrb[12].mxu0 %v7648_v8  ;;  %v7653_v42 = vpack.c.bf16 %v7595_v30, %v7593_v63  ;;  %v7655_v8 = vld [vmem:[#allocation115_spill] sm:$0xff]  ;;  %v7728_v30 = vld [vmem:[#allocation113_spill] sm:$0xff] }
  0xdb   : > { %2572 = vmatmul.mubr.f32.gmra.mrb[12].mxu1 %v7649_v28  ;;  %971 = vmatprep.mubr.f32.mxu0 %v7397_v26  ;;  %v7654_v28 = vld [vmem:[#allocation114_spill] sm:$0xff]  ;;  %v7746_v56 = vld [vmem:[#allocation121_spill] sm:$0xff] }
  0xdc   : > { %2577 = vmatprep.mubr.f32.mxu1 %v7397_v26  ;;  %4162 = vmatpush1.bf16.msra.mxu0 %v7650_v46  ;;  %v7656_v46 = vpack.c.bf16 %v5533_v43, %v5531_v40  ;;  %v7718_v43 = vld [vmem:[#allocation110_spill] sm:$0xff]  ;;  %v7727_v40 = vld [vmem:[#allocation111_spill] sm:$0xff] }
  0xdd   : > { %4354 = vmatpush1.bf16.msra.mxu1 %v7651_v20  ;;  %4164 = vmatprep.subr.bf16.mxu0 %v7652_v4  ;;  %v7657_v20 = vpack.c.bf16 %v7601_v23, %v7599_v24  ;;  %v7658_v4 = vmov 1.0|1.0   ;;  %v7708_v23 = vld [vmem:[#allocation105_spill] sm:$0xff] }
  0xde   : > { %4356 = vmatprep.subr.bf16.mxu1 %v7653_v42  ;;  %973 = vmatmul.mubr.f32.gmra.mrb[14].mxu0 %v7654_v28  ;;  %v7662_v28 = vld [vmem:[#allocation119_spill] sm:$0xff]  ;;  %v7698_v42 = vld [vmem:[#allocation102_spill] sm:$0xff]  ;;  %v7717_v24 = vld [vmem:[#allocation109_spill] sm:$0xff] }
  0xdf   : > { %2579 = vmatmul.mubr.f32.gmra.mrb[14].mxu1 %v7655_v8  ;;  %978 = vmatprep.mubr.f32.mxu0 %v7397_v26  ;;  %v7661_v8 = vld [vmem:[#allocation118_spill] sm:$0xff] }
  0xe0   : > { %2584 = vmatprep.mubr.f32.mxu1 %v7397_v26  ;;  %4166 = vmatpush1.bf16.msra.mxu0 %v7656_v46  ;;  %v7663_v46 = vld [vmem:[#allocation122_spill] sm:$0xff] }
  0xe1   : > { %4358 = vmatpush1.bf16.msra.mxu1 %v7657_v20  ;;  %4168 = vmatprep.subr.msk.bf16.mxu0 %vm4962_vm4, %v7658_v4  ;;  %v7665_v20 = vld [vmem:[#allocation125_spill] sm:$0xff] }
  0xe2   : > { %4360 = vmatprep.subr.msk.bf16.mxu1 %vm4975_vm5, %v7658_v4  ;;  %980 = vmatmul.mubr.f32.gmra.mrb[16].mxu0 %v7661_v8  ;;  %v7668_v8 = vld [vmem:[#allocation72_spill] sm:$0xff] }
  0xe3   : > { %2586 = vmatmul.mubr.f32.gmra.mrb[16].mxu1 %v7662_v28  ;;  %985 = vmatprep.mubr.f32.mxu0 %v7397_v26  ;;  %v7667_v28 = vld [vmem:[#allocation71_spill] sm:$0xff] }
  0xe4   : > { %2591 = vmatprep.mubr.f32.mxu1 %v7397_v26 }
  0xe6   : > { %987 = vmatmul.mubr.f32.gmra.mrb[18].mxu0 %v7663_v46  ;;  %v7670_v46 = vld [vmem:[#allocation75_spill] sm:$0xff] }
  0xe7   : > { %2593 = vmatmul.mubr.f32.gmra.mrb[18].mxu1 %v7664_v14  ;;  %992 = vmatprep.mubr.f32.mxu0 %v7397_v26  ;;  %v7669_v14 = vld [vmem:[#allocation130_spill] sm:$0xff] }
  0xe8   : > { %2598 = vmatprep.mubr.f32.mxu1 %v7397_v26 }
  0xea   : > { %994 = vmatmul.mubr.f32.gmra.mrb[20].mxu0 %v7665_v20  ;;  %v7672_v20 = vld [vmem:[#allocation80_spill] sm:$0xff] }
  0xeb   : > { %2600 = vmatmul.mubr.f32.gmra.mrb[20].mxu1 %v7666_v11  ;;  %999 = vmatprep.mubr.f32.mxu0 %v7397_v26  ;;  %v7671_v11 = vld [vmem:[#allocation77_spill] sm:$0xff] }
  0xec   : > { %2605 = vmatprep.mubr.f32.mxu1 %v7397_v26 }
  0xee   : > { %1001 = vmatmul.mubr.f32.gmra.mrb[22].mxu0 %v7667_v28  ;;  %v7674_v28 = vld [vmem:[#allocation138_spill] sm:$0xff] }
  0xef   : > { %2607 = vmatmul.mubr.f32.gmra.mrb[22].mxu1 %v7668_v8  ;;  %1006 = vmatprep.mubr.f32.mxu0 %v7397_v26  ;;  %v7673_v8 = vld [vmem:[#allocation134_spill] sm:$0xff] }
  0xf0   : > { %2612 = vmatprep.mubr.f32.mxu1 %v7397_v26 }
  0xf2   : > { %1008 = vmatmul.mubr.f32.gmra.mrb[24].mxu0 %v7669_v14  ;;  %v7682_v14 = vld [vmem:[#allocation95_spill] sm:$0xff] }
  0xf3   : > { %2614 = vmatmul.mubr.f32.gmra.mrb[24].mxu1 %v7670_v46  ;;  %1013 = vmatprep.mubr.f32.mxu0 %v7397_v26  ;;  %v7681_v46 = vld [vmem:[#allocation94_spill] sm:$0xff] }
  0xf4   : > { %2619 = vmatprep.mubr.f32.mxu1 %v7397_v26 }
  0xf6   : > { %1015 = vmatmul.mubr.f32.gmra.mrb[26].mxu0 %v7671_v11  ;;  %v7676_v11 = vld [vmem:[#allocation7_spill] sm:$0xff] }
  0xf7   : > { %2621 = vmatmul.mubr.f32.gmra.mrb[26].mxu1 %v7672_v20  ;;  %1020 = vmatprep.mubr.f32.mxu0 %v7397_v26  ;;  %v7675_v20 = vld [vmem:[#allocation6_spill] sm:$0xff] }
  0xf8   : > { %2626 = vmatprep.mubr.f32.mxu1 %v7397_v26 }
  0xfa   : > { %1022 = vmatmul.mubr.f32.gmra.mrb[28].mxu0 %v7673_v8  ;;  %v7697_v8 = vld [vmem:[#allocation99_spill] sm:$0xff] }
  0xfb   : > { %2628 = vmatmul.mubr.f32.gmra.mrb[28].mxu1 %v7674_v28  ;;  %1027 = vmatprep.mubr.f32.mxu0 %v7397_v26  ;;  %v7688_v28 = vld [vmem:[#allocation97_spill] sm:$0xff] }
  0xfc   : > { %2633 = vmatprep.mubr.f32.mxu1 %v7397_v26 }
  0xfe   : > { %1029 = vmatmul.mubr.f32.gmra.mrb[30].mxu0 %v6131_v41  ;;  %v7695_v41 = vld [vmem:[#allocation40_spill] sm:$0xff] }
  0xff   : > { %2635 = vmatmul.mubr.f32.gmra.mrb[30].mxu1 %v6133_v51  ;;  %1163 = vmatprep.mubr.f32.mxu0 %v7397_v26  ;;  %v7687_v51 = vld [vmem:[#allocation96_spill] sm:$0xff]  ;;  %vm7696_vm13 = vnez %v7695_v41 }
 0x100   : > { %2769 = vmatprep.mubr.f32.mxu1 %v7397_v26  ;;  %v7705_v41 = vld [vmem:[#allocation52_spill] sm:$0xff] }
 0x102   : > { %1166 = vmatmul.mubr.f32.vlgmr.msra.gmra.mrb[0].mxu0 %v7675_v20 }
 0x103   : > { %2772 = vmatmul.mubr.f32.vlgmr.msra.gmra.mrb[0].mxu1 %v7676_v11  ;;  %4170 = vmatpush1.bf16.msk.msra.mxu0 %vm4994_vm10, %v7658_v4 }
 0x104   : > { %4362 = vmatpush1.bf16.msk.msra.mxu1 %vm5007_vm11, %v7658_v4  ;;  %1171 = vmatprep.mubr.f32.mxu0 %v7397_v26 }
 0x105   : > { %2777 = vmatprep.mubr.f32.mxu1 %v7397_v26  ;;  %4172 = vmatprep.subr.msk.bf16.mxu0 %vm5030_vm0, %v7658_v4 }
 0x106   : > { %4364 = vmatprep.subr.msk.bf16.mxu1 %vm5041_vm1, %v7658_v4  ;;  %1174 = vmatmul.mubr.f32.gmra.mrb[2].mxu0 %v7681_v46 }
 0x107   : > { %2780 = vmatmul.mubr.f32.gmra.mrb[2].mxu1 %v7682_v14  ;;  %1179 = vmatprep.mubr.f32.mxu0 %v7397_v26 }
 0x108   : > { %2785 = vmatprep.mubr.f32.mxu1 %v7397_v26  ;;  %4174 = vmatpush1.bf16.msk.msra.mxu0 %vm5090_vm8, %v7658_v4 }
 0x109   : > { %4366 = vmatpush1.bf16.msk.msra.mxu1 %vm5103_vm9, %v7658_v4  ;;  %4176 = vmatprep.subr.msk.bf16.mxu0 %vm5126_vm2, %v7658_v4 }
 0x10a   : > { %4368 = vmatprep.subr.msk.bf16.mxu1 %vm5137_vm3, %v7658_v4  ;;  %1182 = vmatmul.mubr.f32.gmra.mrb[4].mxu0 %v7687_v51 }
 0x10b   : > { %2788 = vmatmul.mubr.f32.gmra.mrb[4].mxu1 %v7688_v28  ;;  %1187 = vmatprep.mubr.f32.mxu0 %v7397_v26 }
 0x10c   : > { %2793 = vmatprep.mubr.f32.mxu1 %v7397_v26  ;;  %4178 = vmatpush1.bf16.msk.msra.mxu0 %vm7690_vm6, %v7658_v4  ;;  %vm7700_vm6 = vnez %v7699_v29  ;;  %v7709_v29 = vld [vmem:[#allocation57_spill] sm:$0xff] }
 0x10d   : > { %4370 = vmatpush1.bf16.msk.msra.mxu1 %vm7692_vm7, %v7658_v4  ;;  %4180 = vmatprep.subr.msk.bf16.mxu0 %vm7694_vm12, %v7658_v4  ;;  %vm7702_vm7 = vnez %v7701_v13  ;;  %vm7704_vm12 = vnez %v7703_v49  ;;  %v7711_v13 = vld [vmem:[#allocation60_spill] sm:$0xff]  ;;  %v7713_v49 = vld [vmem:[#allocation63_spill] sm:$0xff] }
 0x10e   : > { %4372 = vmatprep.subr.msk.bf16.mxu1 %vm7696_vm13, %v7658_v4  ;;  %1190 = vmatmul.mubr.f32.gmra.mrb[6].mxu0 %v7697_v8  ;;  %vm7706_vm13 = vnez %v7705_v41  ;;  %v7715_v41 = vld [vmem:[#allocation64_spill] sm:$0xff] }
 0x10f   : > { %2796 = vmatmul.mubr.f32.gmra.mrb[6].mxu1 %v7698_v42  ;;  %1195 = vmatprep.mubr.f32.mxu0 %v7397_v26 }
 0x110   : > { %2801 = vmatprep.mubr.f32.mxu1 %v7397_v26  ;;  %4182 = vmatpush1.bf16.msk.msra.mxu0 %vm7700_vm6, %v7658_v4  ;;  %vm7710_vm6 = vnez %v7709_v29  ;;  %v7719_v29 = vld [vmem:[#allocation69_spill] sm:$0xff] }
 0x111   : > { %4374 = vmatpush1.bf16.msk.msra.mxu1 %vm7702_vm7, %v7658_v4  ;;  %4184 = vmatprep.subr.msk.bf16.mxu0 %vm7704_vm12, %v7658_v4  ;;  %vm7712_vm7 = vnez %v7711_v13  ;;  %vm7714_vm12 = vnez %v7713_v49  ;;  %v7721_v13 = vld [vmem:[#allocation70_spill] sm:$0xff]  ;;  %v7723_v49 = vld [vmem:[#allocation73_spill] sm:$0xff] }
 0x112   : > { %4376 = vmatprep.subr.msk.bf16.mxu1 %vm7706_vm13, %v7658_v4  ;;  %1198 = vmatmul.mubr.f32.gmra.mrb[8].mxu0 %v7707_v10  ;;  %vm7716_vm13 = vnez %v7715_v41  ;;  %v7725_v41 = vld [vmem:[#allocation74_spill] sm:$0xff] }
 0x113   : > { %2804 = vmatmul.mubr.f32.gmra.mrb[8].mxu1 %v7708_v23  ;;  %1203 = vmatprep.mubr.f32.mxu0 %v7397_v26 }
 0x114   : > { %2809 = vmatprep.mubr.f32.mxu1 %v7397_v26  ;;  %4186 = vmatpush1.bf16.msk.msra.mxu0 %vm7710_vm6, %v7658_v4  ;;  %vm7720_vm6 = vnez %v7719_v29  ;;  %v7729_v29 = vld [vmem:[#allocation78_spill] sm:$0xff] }
 0x115   : > { %4378 = vmatpush1.bf16.msk.msra.mxu1 %vm7712_vm7, %v7658_v4  ;;  %4188 = vmatprep.subr.msk.bf16.mxu0 %vm7714_vm12, %v7658_v4  ;;  %vm7722_vm7 = vnez %v7721_v13  ;;  %vm7724_vm12 = vnez %v7723_v49  ;;  %v7731_v13 = vld [vmem:[#allocation79_spill] sm:$0xff]  ;;  %v7733_v49 = vld [vmem:[#allocation82_spill] sm:$0xff] }
 0x116   : > { %4380 = vmatprep.subr.msk.bf16.mxu1 %vm7716_vm13, %v7658_v4  ;;  %1206 = vmatmul.mubr.f32.gmra.mrb[10].mxu0 %v7717_v24  ;;  %vm7726_vm13 = vnez %v7725_v41  ;;  %v7735_v41 = vld [vmem:[#allocation83_spill] sm:$0xff] }
 0x117   : > { %2812 = vmatmul.mubr.f32.gmra.mrb[10].mxu1 %v7718_v43  ;;  %1211 = vmatprep.mubr.f32.mxu0 %v7397_v26 }
 0x118   : > { %2817 = vmatprep.mubr.f32.mxu1 %v7397_v26  ;;  %4190 = vmatpush1.bf16.msk.msra.mxu0 %vm7720_vm6, %v7658_v4  ;;  %vm7730_vm6 = vnez %v7729_v29  ;;  %v7739_v29 = vand.u32 4294901760, %v4979_v55  ;;  %v7745_v55 = vld [vmem:[#allocation120_spill] sm:$0xff] }
 0x119   : > { %4382 = vmatpush1.bf16.msk.msra.mxu1 %vm7722_vm7, %v7658_v4  ;;  %4192 = vmatprep.subr.msk.bf16.mxu0 %vm7724_vm12, %v7658_v4  ;;  %vm7732_vm7 = vnez %v7731_v13  ;;  %vm7734_vm12 = vnez %v7733_v49  ;;  %v7741_v13 = vld [vmem:[#allocation116_spill] sm:$0xff] }
 0x11a   : > { %4384 = vmatprep.subr.msk.bf16.mxu1 %vm7726_vm13, %v7658_v4  ;;  %1214 = vmatmul.mubr.f32.gmra.mrb[12].mxu0 %v7727_v40  ;;  %vm7736_vm13 = vnez %v7735_v41  ;;  %v7738_v40 = vand.u32 4294901760, %v7608_v18  ;;  %v4391_v21 = vpack.c.bf16 %v7740_v15, %v7739_v29  ;;  %v7748_v15 = vld [vmem:[#allocation126_spill] sm:$0xff]  ;;  %v7753_v29 = vld [vmem:[#allocation133_spill] sm:$0xff]  ;;  %v7754_v18 = vld [vmem:[#allocation76_spill] sm:$0xff] }
 0x11b   : > { %2820 = vmatmul.mubr.f32.gmra.mrb[12].mxu1 %v7728_v30  ;;  %1219 = vmatprep.mubr.f32.mxu0 %v7397_v26  ;;  %v7737_v30 = vand.u32 4294901760, %v7607_v7  ;;  %v7752_v7 = vld [vmem:[#allocation132_spill] sm:$0xff]  ;;  %v7755_v41 = vld [vmem:[#allocation135_spill] sm:$0xff] }
 0x11c   : > { %2825 = vmatprep.mubr.f32.mxu1 %v7397_v26  ;;  %4194 = vmatpush1.bf16.msk.msra.mxu0 %vm7730_vm6, %v7658_v4  ;;  %v7756_v49 = vld [vmem:[#allocation136_spill] sm:$0xff] }
 0x11d   : > { %4386 = vmatpush1.bf16.msk.msra.mxu1 %vm7732_vm7, %v7658_v4  ;;  %4196 = vmatprep.subr.msk.bf16.mxu0 %vm7734_vm12, %v7658_v4  ;;  %v4199_v63 = vpack.c.bf16 %v7738_v40, %v7737_v30  ;;  %v7747_v40 = vld [vmem:[#allocation124_spill] sm:$0xff] }
 0x11e   : > { %4388 = vmatprep.subr.msk.bf16.mxu1 %vm7736_vm13, %v7658_v4  ;;  %1222 = vmatmul.mubr.f32.gmra.mrb[14].mxu0 %v7741_v13  ;;  %v7749_v30 = vld [vmem:[#allocation128_spill] sm:$0xff] }
 0x11f   : > { %2828 = vmatmul.mubr.f32.gmra.mrb[14].mxu1 %v7742_v9  ;;  %1227 = vmatprep.mubr.f32.mxu0 %v7397_v26 }
 0x120   : > { %2833 = vmatprep.mubr.f32.mxu1 %v7397_v26  ;;  %4198 = vmatpush1.bf16.msk.msra.mxu0 %vm5522_vm14, %v7658_v4 }
 0x121   : > { %4390 = vmatpush1.bf16.msk.msra.mxu1 %vm5535_vm15, %v7658_v4  ;;  %4200 = vmatprep.subr.bf16.mxu0 %v4199_v63  ;;  %v7750_v63 = vld [vmem:[#allocation129_spill] sm:$0xff] }
 0x122   : > { %4392 = vmatprep.subr.bf16.mxu1 %v4391_v21  ;;  %1230 = vmatmul.mubr.f32.gmra.mrb[16].mxu0 %v7745_v55  ;;  %v7751_v21 = vld [vmem:[#allocation131_spill] sm:$0xff] }
 0x123   : > { %2836 = vmatmul.mubr.f32.gmra.mrb[16].mxu1 %v7746_v56  ;;  %1235 = vmatprep.mubr.f32.mxu0 %v7397_v26 }
 0x124   : > { %2841 = vmatprep.mubr.f32.mxu1 %v7397_v26 }
 0x126   : > { %1238 = vmatmul.mubr.f32.gmra.mrb[18].mxu0 %v7747_v40 }
 0x127   : > { %2844 = vmatmul.mubr.f32.gmra.mrb[18].mxu1 %v7748_v15  ;;  %1243 = vmatprep.mubr.f32.mxu0 %v7397_v26  ;;  %v7766_v15 = vand.u32 4294901760, %v5074_v61  ;;  %v7771_v61 = vand.u32 4294901760, %v7616_v32  ;;  %v7779_v32 = vand.u32 4294901760, %v7682_v14  ;;  %v7786_v14 = vld [vmem:[#allocation41_spill] sm:$0xff] }
 0x128   : > { %2849 = vmatprep.mubr.f32.mxu1 %v7397_v26 }
 0x12a   : > { %1246 = vmatmul.mubr.f32.gmra.mrb[20].mxu0 %v7749_v30 }
 0x12b   : > { %2852 = vmatmul.mubr.f32.gmra.mrb[20].mxu1 %v7750_v63  ;;  %1251 = vmatprep.mubr.f32.mxu0 %v7397_v26  ;;  %v7763_v63 = vand.u32 4294901760, %v5068_v57  ;;  %v7769_v57 = vand.u32 4294901760, %v5099_v22 }
 0x12c   : > { %2857 = vmatprep.mubr.f32.mxu1 %v7397_v26 }
 0x12e   : > { %1254 = vmatmul.mubr.f32.gmra.mrb[22].mxu0 %v7751_v21  ;;  %v7758_v21 = vld [vmem:[#allocation139_spill] sm:$0xff] }
 0x12f   : > { %2860 = vmatmul.mubr.f32.gmra.mrb[22].mxu1 %v7752_v7  ;;  %1259 = vmatprep.mubr.f32.mxu0 %v7397_v26  ;;  %v7757_v7 = vld [vmem:[#allocation137_spill] sm:$0xff] }
 0x130   : > { %2865 = vmatprep.mubr.f32.mxu1 %v7397_v26 }
 0x132   : > { %1262 = vmatmul.mubr.f32.gmra.mrb[24].mxu0 %v7753_v29 }
 0x133   : > { %2868 = vmatmul.mubr.f32.gmra.mrb[24].mxu1 %v7754_v18  ;;  %1267 = vmatprep.mubr.f32.mxu0 %v7397_v26 }
 0x134   : > { %2873 = vmatprep.mubr.f32.mxu1 %v7397_v26 }
 0x136   : > { %1270 = vmatmul.mubr.f32.gmra.mrb[26].mxu0 %v7755_v41  ;;  %v7760_v41 = vand.u32 4294901760, %v7610_v0  ;;  %v7773_v0 = vand.u32 4294901760, %v7618_v44  ;;  %v7782_v44 = vld [vmem:[#allocation35_spill] sm:$0xff] }
 0x137   : > { %2876 = vmatmul.mubr.f32.gmra.mrb[26].mxu1 %v7756_v49  ;;  %1275 = vmatprep.mubr.f32.mxu0 %v7397_v26  ;;  %v7759_v49 = vand.u32 4294901760, %v7609_v33  ;;  %v7767_v33 = vand.u32 4294901760, %v7675_v20 }
 0x138   : > { %2881 = vmatprep.mubr.f32.mxu1 %v7397_v26 }
 0x139   : > { %v4201_v18 = vpack.c.bf16 %v7760_v41, %v7759_v49  ;;  %v7768_v41 = vand.u32 4294901760, %v7676_v11  ;;  %v7775_v49 = vand.u32 4294901760, %v7620_v39  ;;  %v7776_v11 = vld [vmem:[#allocation32_spill] sm:$0xff] }
 0x13a   : > { %1278 = vmatmul.mubr.f32.gmra.mrb[28].mxu0 %v7757_v7  ;;  %v7761_v7 = vand.u32 4294901760, %v7611_v45  ;;  %v7774_v45 = vand.u32 4294901760, %v7619_v27  ;;  %v7777_v20 = vand.u32 4294901760, %v7776_v11  ;;  %v7804_v11 = vld [vmem:[#allocation54_spill] sm:$0xff] }
 0x13b   : > { %2884 = vmatmul.mubr.f32.gmra.mrb[28].mxu1 %v7758_v21  ;;  %1283 = vmatprep.mubr.f32.mxu0 %v7397_v26  ;;  %v7762_v21 = vand.u32 4294901760, %v7612_v16 }
 0x13c   : > { %2889 = vmatprep.mubr.f32.mxu1 %v7397_v26  ;;  %v4207_v16 = vpack.c.bf16 %v7774_v45, %v7773_v0  ;;  %v4399_v22 = vpack.c.bf16 %v7777_v20, %v7775_v49  ;;  %v7800_v45 = vand.u32 4294901760, %v7632_v1  ;;  %v7805_v20 = vand.u32 4294901760, %v7804_v11 }
 0x13d   : > { %v4393_v29 = vpack.c.bf16 %v7762_v21, %v7761_v7  ;;  %v7811_v1 = vand.u32 4294901760, %v7698_v42  ;;  %v7816_v42 = vld [vmem:[#allocation65_spill] sm:$0xff] }
 0x13e   : > { %1286 = vmatmul.mubr.f32.gmra.mrb[30].mxu0 %v6136_v31  ;;  %v7764_v31 = vand.u32 4294901760, %v5070_v58  ;;  %v7770_v58 = vand.u32 4294901760, %v7615_v6  ;;  %v7778_v6 = vand.u32 4294901760, %v7681_v46 }
 0x13f   : > { %2892 = vmatmul.mubr.f32.gmra.mrb[30].mxu1 %v6139_v19  ;;  %1388 = vmatprep.mubr.f32.mxu0 %v7397_v26  ;;  %v7765_v19 = vand.u32 4294901760, %v5072_v60 }
 0x140   : > { %2994 = vmatprep.mubr.f32.mxu1 %v7397_v26  ;;  %v4203_v30 = vpack.c.bf16 %v7764_v31, %v7763_v63  ;;  %v4205_v60 = vpack.c.bf16 %v7770_v58, %v7769_v57  ;;  %v7788_v63 = vld [vmem:[#allocation42_spill] sm:$0xff] }
 0x141   : > { %v4395_v40 = vpack.c.bf16 %v7766_v15, %v7765_v19  ;;  %v7772_v19 = vand.u32 4294901760, %v7617_v38  ;;  %v7780_v38 = vld [vmem:[#allocation34_spill] sm:$0xff]  ;;  %v7785_v15 = vand.u32 4294901760, %v7627_v5  ;;  %v7789_v21 = vand.u32 4294901760, %v7788_v63 }
 0x142   : > { %1392 = vmatmul.mubr.f32.vlgmr.msra.gmra.mrb[0].mxu0 %v7767_v33  ;;  %v7781_v27 = vand.u32 4294901760, %v7780_v38  ;;  %v7796_v5 = vld [vmem:[#allocation46_spill] sm:$0xff]  ;;  %v7808_v38 = vld [vmem:[#allocation56_spill] sm:$0xff] }
 0x143   : > { %2998 = vmatmul.mubr.f32.vlgmr.msra.gmra.mrb[0].mxu1 %v7768_v41  ;;  %4202 = vmatpush1.bf16.msra.mxu0 %v4201_v18  ;;  %v4397_v31 = vpack.c.bf16 %v7772_v19, %v7771_v61  ;;  %v7783_v18 = vand.u32 4294901760, %v7782_v44  ;;  %v7792_v41 = vld [vmem:[#allocation44_spill] sm:$0xff]  ;;  %v7797_v61 = vand.u32 4294901760, %v7796_v5  ;;  %v7798_v19 = vld [vmem:[#allocation47_spill] sm:$0xff]  ;;  %v7831_v5 = vand.u32 4294901760, %v7571_v2 }
 0x144   : > { %4394 = vmatpush1.bf16.msra.mxu1 %v4393_v29  ;;  %1397 = vmatprep.mubr.f32.mxu0 %v7397_v26  ;;  %v7790_v29 = vld [vmem:[#allocation43_spill] sm:$0xff]  ;;  %v7793_v57 = vand.u32 4294901760, %v7792_v41 }
 0x145   : > { %3003 = vmatprep.mubr.f32.mxu1 %v7397_v26  ;;  %4204 = vmatprep.subr.bf16.mxu0 %v4203_v30  ;;  %v4209_v39 = vpack.c.bf16 %v7783_v18, %v7781_v27  ;;  %v7787_v30 = vand.u32 4294901760, %v7786_v14  ;;  %v7791_v33 = vand.u32 4294901760, %v7790_v29  ;;  %v7809_v27 = vand.u32 4294901760, %v7808_v38  ;;  %v7853_v38 = vld [vmem:[#allocation89_spill] sm:$0xff] }
 0x146   : > { %4396 = vmatprep.subr.bf16.mxu1 %v4395_v40  ;;  %1401 = vmatmul.mubr.f32.gmra.mrb[2].mxu0 %v7778_v6  ;;  %v7784_v40 = vand.u32 4294901760, %v7626_v50  ;;  %v7795_v50 = vand.u32 4294901760, %v7688_v28  ;;  %v7802_v28 = vld [vmem:[#allocation53_spill] sm:$0xff]  ;;  %v7806_v6 = vld [vmem:[#allocation55_spill] sm:$0xff]  ;;  %v7810_v18 = vand.u32 4294901760, %v7697_v8  ;;  %v7817_v14 = vand.u32 4294901760, %v7816_v42 }
 0x147   : > { %3007 = vmatmul.mubr.f32.gmra.mrb[2].mxu1 %v7779_v32  ;;  %1406 = vmatprep.mubr.f32.mxu0 %v7397_v26  ;;  %v4211_v7 = vpack.c.bf16 %v7789_v21, %v7787_v30  ;;  %v4403_v58 = vpack.c.bf16 %v7793_v57, %v7791_v33  ;;  %v7803_v49 = vand.u32 4294901760, %v7802_v28  ;;  %v7807_v32 = vand.u32 4294901760, %v7806_v6  ;;  %v7818_v30 = vld [vmem:[#allocation66_spill] sm:$0xff]  ;;  %v7822_v33 = vld [vmem:[#allocation68_spill] sm:$0xff]  ;;  %v7849_v6 = vld [vmem:[#allocation111_spill] sm:$0xff] }
 0x148   : > { %3012 = vmatprep.mubr.f32.mxu1 %v7397_v26  ;;  %4206 = vmatpush1.bf16.msra.mxu0 %v4205_v60  ;;  %v4401_v46 = vpack.c.bf16 %v7785_v15, %v7784_v40  ;;  %v7794_v60 = vand.u32 4294901760, %v7687_v51  ;;  %v7814_v15 = vand.u32 4294901760, %v7638_v17  ;;  %v7819_v63 = vand.u32 4294901760, %v7818_v30  ;;  %v7938_v30 = vld [vmem:[#allocation107_spill] sm:$0xff] }
 0x149   : > { %4398 = vmatpush1.bf16.msra.mxu1 %v4397_v31  ;;  %4208 = vmatprep.subr.bf16.mxu0 %v4207_v16  ;;  %v7799_v31 = vand.u32 4294901760, %v7798_v19  ;;  %v7801_v16 = vand.u32 4294901760, %v7633_v3  ;;  %v4407_v44 = vpack.c.bf16 %v7809_v27, %v7807_v32  ;;  %v7812_v3 = vand.u32 4294901760, %v7636_v12  ;;  %v7851_v32 = vld [vmem:[#allocation113_spill] sm:$0xff] }
 0x14a   : > { %4400 = vmatprep.subr.bf16.mxu1 %v4399_v22  ;;  %1410 = vmatmul.mubr.f32.gmra.mrb[4].mxu0 %v7794_v60  ;;  %v4215_v22 = vpack.c.bf16 %v7805_v20, %v7803_v49  ;;  %v4219_v21 = vpack.c.bf16 %v7819_v63, %v7817_v14  ;;  %v7823_v41 = vand.u32 4294901760, %v7822_v33  ;;  %v7825_v17 = vand.u32 4294901760, %v7708_v23  ;;  %v7845_v49 = vld [vmem:[#allocation86_spill] sm:$0xff]  ;;  %v7847_v20 = vld [vmem:[#allocation87_spill] sm:$0xff]  ;;  %v7867_v63 = vld [vmem:[#allocation124_spill] sm:$0xff] }
 0x14b   : > { %3016 = vmatmul.mubr.f32.gmra.mrb[4].mxu1 %v7795_v50  ;;  %1415 = vmatprep.mubr.f32.mxu0 %v7397_v26  ;;  %v4213_v0 = vpack.c.bf16 %v7799_v31, %v7797_v61  ;;  %v4405_v51 = vpack.c.bf16 %v7801_v16, %v7800_v45  ;;  %v7827_v57 = vand.u32 4294901760, %v5389_v34  ;;  %v7828_v60 = vand.u32 4294901760, %v7561_v54  ;;  %v7843_v16 = vld [vmem:[#allocation85_spill] sm:$0xff]  ;;  %v7871_v33 = vld [vmem:[#allocation128_spill] sm:$0xff]  ;;  %v7937_v14 = vld [vmem:[#allocation106_spill] sm:$0xff] }
 0x14c   : > { %3021 = vmatprep.mubr.f32.mxu1 %v7397_v26  ;;  %4210 = vmatpush1.bf16.msra.mxu0 %v4209_v39  ;;  %v7813_v39 = vand.u32 4294901760, %v7637_v48  ;;  %v7824_v48 = vand.u32 4294901760, %v7707_v10  ;;  %v7829_v50 = vand.u32 4294901760, %v7563_v52  ;;  %v7830_v23 = vand.u32 4294901760, %v5429_v25 }
 0x14d   : > { %4402 = vmatpush1.bf16.msra.mxu1 %v4401_v46  ;;  %4212 = vmatprep.subr.bf16.mxu0 %v4211_v7  ;;  %v7815_v46 = vand.u32 4294901760, %v7639_v53  ;;  %v7820_v7 = vld [vmem:[#allocation67_spill] sm:$0xff]  ;;  %v7826_v53 = vand.u32 4294901760, %v5387_v35  ;;  %v7832_v19 = vand.u32 4294901760, %v7573_v47  ;;  %v7833_v31 = vand.u32 4294901760, %v7575_v62  ;;  %v7839_v62 = vld [vmem:[#allocation81_spill] sm:$0xff] }
 0x14e   : > { %4404 = vmatprep.subr.bf16.mxu1 %v4403_v58  ;;  %1419 = vmatmul.mubr.f32.gmra.mrb[6].mxu0 %v7810_v18  ;;  %v4217_v40 = vpack.c.bf16 %v7813_v39, %v7812_v3  ;;  %v7821_v29 = vand.u32 4294901760, %v7820_v7  ;;  %v4413_v10 = vpack.c.bf16 %v7829_v50, %v7828_v60  ;;  %v4223_v61 = vpack.c.bf16 %v7831_v5, %v7830_v23  ;;  %v7857_v3 = vld [vmem:[#allocation92_spill] sm:$0xff]  ;;  %v7869_v7 = vld [vmem:[#allocation126_spill] sm:$0xff] }
 0x14f   : > { %3025 = vmatmul.mubr.f32.gmra.mrb[6].mxu1 %v7811_v1  ;;  %1424 = vmatprep.mubr.f32.mxu0 %v7397_v26  ;;  %v4409_v8 = vpack.c.bf16 %v7815_v46, %v7814_v15  ;;  %v4221_v58 = vpack.c.bf16 %v7827_v57, %v7826_v53  ;;  %v4415_v35 = vpack.c.bf16 %v7833_v31, %v7832_v19  ;;  %v7834_v34 = vand.u32 4294901760, %v7717_v24  ;;  %v7879_v57 = vld [vmem:[#allocation133_spill] sm:$0xff]  ;;  %v7881_v60 = vld [vmem:[#allocation76_spill] sm:$0xff] }
 0x150   : > { %3030 = vmatprep.mubr.f32.mxu1 %v7397_v26  ;;  %4214 = vmatpush1.bf16.msra.mxu0 %v4213_v0  ;;  %v4411_v12 = vpack.c.bf16 %v7823_v41, %v7821_v29  ;;  %v7835_v54 = vand.u32 4294901760, %v7718_v43  ;;  %v7836_v25 = vand.u32 4294901760, %v5459_v37  ;;  %v7837_v52 = vand.u32 4294901760, %v5461_v36  ;;  %v7841_v43 = vld [vmem:[#allocation84_spill] sm:$0xff]  ;;  %v7873_v41 = vld [vmem:[#allocation129_spill] sm:$0xff] }
 0x151   : > { %4406 = vmatpush1.bf16.msra.mxu1 %v4405_v51  ;;  %4216 = vmatprep.subr.bf16.mxu0 %v4215_v22  ;;  %v7838_v47 = vand.u32 4294901760, %v7580_v59  ;;  %v7840_v0 = vand.u32 4294901760, %v7839_v62  ;;  %v7842_v45 = vand.u32 4294901760, %v7841_v43  ;;  %v7844_v51 = vand.u32 4294901760, %v7843_v16  ;;  %v7885_v5 = vld [vmem:[#allocation136_spill] sm:$0xff]  ;;  %v7887_v19 = vld [vmem:[#allocation137_spill] sm:$0xff] }
 0x152   : > { %4408 = vmatprep.subr.bf16.mxu1 %v4407_v44  ;;  %1428 = vmatmul.mubr.f32.gmra.mrb[8].mxu0 %v7824_v48  ;;  %v4225_v2 = vpack.c.bf16 %v7837_v52, %v7836_v25  ;;  %v7846_v11 = vand.u32 4294901760, %v7845_v49  ;;  %v7848_v22 = vand.u32 4294901760, %v7847_v20  ;;  %v7850_v36 = vand.u32 4294901760, %v7849_v6  ;;  %v7855_v44 = vld [vmem:[#allocation90_spill] sm:$0xff]  ;;  %v7893_v52 = vld [vmem:[#allocation143_spill] sm:$0xff]  ;;  %v7901_v16 = vld [vmem:[#allocation4_spill] sm:$0xff] }
 0x153   : > { %3034 = vmatmul.mubr.f32.gmra.mrb[8].mxu1 %v7825_v17  ;;  %1433 = vmatprep.mubr.f32.mxu0 %v7397_v26  ;;  %v4417_v24 = vpack.c.bf16 %v7840_v0, %v7838_v47  ;;  %v4227_v28 = vpack.c.bf16 %v7844_v51, %v7842_v45  ;;  %v7852_v59 = vand.u32 4294901760, %v7851_v32  ;;  %v7854_v27 = vand.u32 4294901760, %v7853_v38  ;;  %v7877_v17 = vld [vmem:[#allocation132_spill] sm:$0xff]  ;;  %v7895_v47 = vld [vmem:[#allocation2_spill] sm:$0xff]  ;;  %v7896_v62 = vld [vmem:[#allocation3_spill] sm:$0xff] }
 0x154   : > { %3039 = vmatprep.mubr.f32.mxu1 %v7397_v26  ;;  %4218 = vmatpush1.bf16.msra.mxu0 %v4217_v40  ;;  %v4419_v37 = vpack.c.bf16 %v7848_v22, %v7846_v11  ;;  %v7856_v18 = vand.u32 4294901760, %v7855_v44  ;;  %v7858_v39 = vand.u32 4294901760, %v7857_v3  ;;  %v7859_v40 = vld [vmem:[#allocation93_spill] sm:$0xff]  ;;  %v7862_v42 = vand.u32 4294901760, %v7742_v9  ;;  %v7907_v22 = vld [vmem:[#allocation8_spill] sm:$0xff]  ;;  %v7913_v32 = vld [vmem:[#allocation39_spill] sm:$0xff] }
 0x155   : > { %4410 = vmatpush1.bf16.msra.mxu1 %v4409_v8  ;;  %4220 = vmatprep.subr.bf16.mxu0 %v4219_v21  ;;  %v7860_v15 = vand.u32 4294901760, %v7859_v40  ;;  %v7861_v8 = vand.u32 4294901760, %v7741_v13  ;;  %v7865_v13 = vand.u32 4294901760, %v7745_v55  ;;  %v7866_v9 = vand.u32 4294901760, %v7746_v56  ;;  %v7902_v51 = vld [vmem:[#allocation5_spill] sm:$0xff]  ;;  %v7917_v38 = vld [vmem:[#allocation98_spill] sm:$0xff] }
 0x156   : > { %4412 = vmatprep.subr.bf16.mxu1 %v4411_v12  ;;  %1437 = vmatmul.mubr.f32.gmra.mrb[10].mxu0 %v7834_v34  ;;  %v4229_v1 = vpack.c.bf16 %v7856_v18, %v7854_v27  ;;  %v7868_v21 = vand.u32 4294901760, %v7867_v63  ;;  %v7870_v29 = vand.u32 4294901760, %v7869_v7  ;;  %v7872_v55 = vand.u32 4294901760, %v7871_v33  ;;  %v7875_v12 = vld [vmem:[#allocation131_spill] sm:$0xff]  ;;  %v7909_v6 = vld [vmem:[#allocation33_spill] sm:$0xff]  ;;  %v7918_v27 = vld [vmem:[#allocation100_spill] sm:$0xff] }
 0x157   : > { %3043 = vmatmul.mubr.f32.gmra.mrb[10].mxu1 %v7835_v54  ;;  %1442 = vmatprep.mubr.f32.mxu0 %v7397_v26  ;;  %v4421_v46 = vpack.c.bf16 %v7860_v15, %v7858_v39  ;;  %v7874_v56 = vand.u32 4294901760, %v7873_v41  ;;  %v7876_v48 = vand.u32 4294901760, %v7875_v12  ;;  %v7878_v53 = vand.u32 4294901760, %v7877_v17  ;;  %v7891_v54 = vld [vmem:[#allocation142_spill] sm:$0xff]  ;;  %v7919_v44 = vld [vmem:[#allocation45_spill] sm:$0xff]  ;;  %v7921_v18 = vld [vmem:[#allocation48_spill] sm:$0xff] }
 0x158   : > { %3048 = vmatprep.mubr.f32.mxu1 %v7397_v26  ;;  %4222 = vmatpush1.bf16.msra.mxu0 %v4221_v58  ;;  %v7880_v58 = vand.u32 4294901760, %v7879_v57  ;;  %v7882_v50 = vand.u32 4294901760, %v7881_v60  ;;  %v7888_v31 = vand.u32 4294901760, %v7887_v19  ;;  %v7892_v25 = vand.u32 4294901760, %v7891_v54  ;;  %v7925_v3 = vld [vmem:[#allocation52_spill] sm:$0xff]  ;;  %v7927_v39 = vld [vmem:[#allocation101_spill] sm:$0xff] }
 0x159   : > { %4414 = vmatpush1.bf16.msra.mxu1 %v4413_v10  ;;  %4224 = vmatprep.subr.bf16.mxu0 %v4223_v61  ;;  %v7883_v10 = vld [vmem:[#allocation135_spill] sm:$0xff]  ;;  %v7886_v61 = vand.u32 4294901760, %v7885_v5  ;;  %v7928_v40 = vld [vmem:[#allocation104_spill] sm:$0xff]  ;;  %v7929_v15 = vld [vmem:[#allocation57_spill] sm:$0xff] }
 0x15a   : > { %4416 = vmatprep.subr.bf16.mxu1 %v4415_v35  ;;  %1446 = vmatmul.mubr.f32.gmra.mrb[12].mxu0 %v7850_v36  ;;  %v7884_v23 = vand.u32 4294901760, %v7883_v10  ;;  %v7889_v35 = vld [vmem:[#allocation139_spill] sm:$0xff]  ;;  %v7911_v36 = vld [vmem:[#allocation36_spill] sm:$0xff]  ;;  %v7943_v63 = vld [vmem:[#allocation73_spill] sm:$0xff] }
 0x15b   : > { %3052 = vmatmul.mubr.f32.gmra.mrb[12].mxu1 %v7852_v59  ;;  %1451 = vmatprep.mubr.f32.mxu0 %v7397_v26  ;;  %v7890_v34 = vand.u32 4294901760, %v7889_v35  ;;  %v7915_v59 = vld [vmem:[#allocation40_spill] sm:$0xff]  ;;  %v7953_v12 = vld [vmem:[#allocation114_spill] sm:$0xff]  ;;  %v7961_v10 = vld [vmem:[#allocation125_spill] sm:$0xff] }
 0x15c   : > { %3057 = vmatprep.mubr.f32.mxu1 %v7397_v26  ;;  %4226 = vmatpush1.bf16.msra.mxu0 %v4225_v2  ;;  %v7894_v2 = vand.u32 4294901760, %v7893_v52  ;;  %v7947_v7 = vld [vmem:[#allocation108_spill] sm:$0xff]  ;;  %v7957_v57 = vld [vmem:[#allocation118_spill] sm:$0xff]  ;;  %v7966_v19 = vld [vmem:[#allocation75_spill] sm:$0xff] }
 0x15d   : > { %4418 = vmatpush1.bf16.msra.mxu1 %v4417_v24  ;;  %4228 = vmatprep.subr.bf16.mxu0 %v4227_v28  ;;  %v7959_v60 = vld [vmem:[#allocation122_spill] sm:$0xff]  ;;  %v7964_v5 = vld [vmem:[#allocation72_spill] sm:$0xff]  ;;  %v7972_v52 = vld [vmem:[#allocation141_spill] sm:$0xff] }
 0x15e   : > { %4420 = vmatprep.subr.bf16.mxu1 %v4419_v37  ;;  %1455 = vmatmul.mubr.f32.gmra.mrb[14].mxu0 %v7861_v8  ;;  %v7908_v37 = vld [vmem:[#allocation9_spill] sm:$0xff]  ;;  %v7933_v8 = vld [vmem:[#allocation63_spill] sm:$0xff]  ;;  %v7968_v35 = vld [vmem:[#allocation80_spill] sm:$0xff] }
 0x15f   : > { %3061 = vmatmul.mubr.f32.gmra.mrb[14].mxu1 %v7862_v42  ;;  %1460 = vmatprep.mubr.f32.mxu0 %v7397_v26  ;;  %v7935_v42 = vld [vmem:[#allocation64_spill] sm:$0xff]  ;;  %v7970_v54 = vld [vmem:[#allocation138_spill] sm:$0xff] }
 0x160   : > { %3066 = vmatprep.mubr.f32.mxu1 %v7397_v26  ;;  %4230 = vmatpush1.bf16.msra.mxu0 %v4229_v1  ;;  %v7923_v1 = vld [vmem:[#allocation51_spill] sm:$0xff] }
 0x161   : > { %4422 = vmatpush1.bf16.msra.mxu1 %v4421_v46  ;;  %4232 = vmatprep.subr.msk.bf16.mxu0 %vm4962_vm4, %v7658_v4  ;;  %vm7910_vm4 = vnez %v7909_v6  ;;  %v7931_v46 = vld [vmem:[#allocation60_spill] sm:$0xff] }
 0x162   : > { %4424 = vmatprep.subr.msk.bf16.mxu1 %vm4975_vm5, %v7658_v4  ;;  %1464 = vmatmul.mubr.f32.gmra.mrb[16].mxu0 %v7865_v13  ;;  %vm7912_vm5 = vnez %v7911_v36  ;;  %v7939_v13 = vld [vmem:[#allocation69_spill] sm:$0xff] }
 0x163   : > { %3070 = vmatmul.mubr.f32.gmra.mrb[16].mxu1 %v7866_v9  ;;  %1469 = vmatprep.mubr.f32.mxu0 %v7397_v26  ;;  %v7941_v9 = vld [vmem:[#allocation70_spill] sm:$0xff] }
 0x164   : > { %3075 = vmatprep.mubr.f32.mxu1 %v7397_v26 }
 0x166   : > { %1473 = vmatmul.mubr.f32.gmra.mrb[18].mxu0 %v7868_v21  ;;  %v7945_v21 = vld [vmem:[#allocation74_spill] sm:$0xff] }
 0x167   : > { %3079 = vmatmul.mubr.f32.gmra.mrb[18].mxu1 %v7870_v29  ;;  %1478 = vmatprep.mubr.f32.mxu0 %v7397_v26  ;;  %v7948_v29 = vld [vmem:[#allocation112_spill] sm:$0xff] }
 0x168   : > { %3084 = vmatprep.mubr.f32.mxu1 %v7397_v26 }
 0x16a   : > { %1482 = vmatmul.mubr.f32.gmra.mrb[20].mxu0 %v7872_v55 }
 0x16b   : > { %3088 = vmatmul.mubr.f32.gmra.mrb[20].mxu1 %v7874_v56  ;;  %1487 = vmatprep.mubr.f32.mxu0 %v7397_v26 }
 0x16c   : > { %3093 = vmatprep.mubr.f32.mxu1 %v7397_v26 }
 0x16e   : > { %1491 = vmatmul.mubr.f32.gmra.mrb[22].mxu0 %v7876_v48  ;;  %v7954_v48 = vld [vmem:[#allocation115_spill] sm:$0xff] }
 0x16f   : > { %3097 = vmatmul.mubr.f32.gmra.mrb[22].mxu1 %v7878_v53  ;;  %1496 = vmatprep.mubr.f32.mxu0 %v7397_v26 }
 0x170   : > { %3102 = vmatprep.mubr.f32.mxu1 %v7397_v26 }
 0x172   : > { %1500 = vmatmul.mubr.f32.gmra.mrb[24].mxu0 %v7880_v58  ;;  %v7958_v58 = vld [vmem:[#allocation119_spill] sm:$0xff] }
 0x173   : > { %3106 = vmatmul.mubr.f32.gmra.mrb[24].mxu1 %v7882_v50  ;;  %1505 = vmatprep.mubr.f32.mxu0 %v7397_v26  ;;  %v7960_v50 = vld [vmem:[#allocation123_spill] sm:$0xff] }
 0x174   : > { %3111 = vmatprep.mubr.f32.mxu1 %v7397_v26 }
 0x176   : > { %1509 = vmatmul.mubr.f32.gmra.mrb[26].mxu0 %v7884_v23  ;;  %v7962_v23 = vld [vmem:[#allocation127_spill] sm:$0xff] }
 0x177   : > { %3115 = vmatmul.mubr.f32.gmra.mrb[26].mxu1 %v7886_v61  ;;  %1514 = vmatprep.mubr.f32.mxu0 %v7397_v26  ;;  %v7965_v61 = vld [vmem:[#allocation130_spill] sm:$0xff] }
 0x178   : > { %3120 = vmatprep.mubr.f32.mxu1 %v7397_v26 }
 0x17a   : > { %1518 = vmatmul.mubr.f32.gmra.mrb[28].mxu0 %v7888_v31  ;;  %v7967_v31 = vld [vmem:[#allocation77_spill] sm:$0xff] }
 0x17b   : > { %3124 = vmatmul.mubr.f32.gmra.mrb[28].mxu1 %v7890_v34  ;;  %1523 = vmatprep.mubr.f32.mxu0 %v7397_v26  ;;  %v7969_v34 = vld [vmem:[#allocation134_spill] sm:$0xff] }
 0x17c   : > { %3129 = vmatprep.mubr.f32.mxu1 %v7397_v26 }
 0x17e   : > { %1527 = vmatmul.mubr.f32.gmra.mrb[30].mxu0 %v7892_v25  ;;  %v7971_v25 = vld [vmem:[#allocation140_spill] sm:$0xff] }
 0x17f   : > { %3133 = vmatmul.mubr.f32.gmra.mrb[30].mxu1 %v7894_v2  ;;  %1693 = vmatprep.mubr.f32.mxu0 %v7397_v26 }
 0x180   : > { %3299 = vmatprep.mubr.f32.mxu1 %v7397_v26 }
 0x182   : > { %1695 = vmatmul.mubr.f32.vlgmr.msra.gmra.mrb[0].mxu0 %v7895_v47 }
 0x183   : > { %3301 = vmatmul.mubr.f32.vlgmr.msra.gmra.mrb[0].mxu1 %v7896_v62  ;;  %4234 = vmatpush1.bf16.msk.msra.mxu0 %vm4994_vm10, %v7658_v4  ;;  %vm7914_vm10 = vnez %v7913_v32 }
 0x184   : > { %4426 = vmatpush1.bf16.msk.msra.mxu1 %vm5007_vm11, %v7658_v4  ;;  %1700 = vmatprep.mubr.f32.mxu0 %v7397_v26  ;;  %vm7916_vm11 = vnez %v7915_v59 }
 0x185   : > { %3306 = vmatprep.mubr.f32.mxu1 %v7397_v26  ;;  %4236 = vmatprep.subr.msk.bf16.mxu0 %vm5030_vm0, %v7658_v4  ;;  %vm7920_vm0 = vnez %v7919_v44 }
 0x186   : > { %4428 = vmatprep.subr.msk.bf16.mxu1 %vm5041_vm1, %v7658_v4  ;;  %1702 = vmatmul.mubr.f32.gmra.mrb[2].mxu0 %v7901_v16  ;;  %vm7922_vm1 = vnez %v7921_v18 }
 0x187   : > { %3308 = vmatmul.mubr.f32.gmra.mrb[2].mxu1 %v7902_v51  ;;  %1707 = vmatprep.mubr.f32.mxu0 %v7397_v26 }
 0x188   : > { %3313 = vmatprep.mubr.f32.mxu1 %v7397_v26  ;;  %4238 = vmatpush1.bf16.msk.msra.mxu0 %vm5090_vm8, %v7658_v4  ;;  %vm7924_vm8 = vnez %v7923_v1 }
 0x189   : > { %4430 = vmatpush1.bf16.msk.msra.mxu1 %vm5103_vm9, %v7658_v4  ;;  %4240 = vmatprep.subr.msk.bf16.mxu0 %vm5126_vm2, %v7658_v4  ;;  %vm7926_vm9 = vnez %v7925_v3  ;;  %vm7930_vm2 = vnez %v7929_v15 }
 0x18a   : > { %4432 = vmatprep.subr.msk.bf16.mxu1 %vm5137_vm3, %v7658_v4  ;;  %1709 = vmatmul.mubr.f32.gmra.mrb[4].mxu0 %v7907_v22  ;;  %vm7932_vm3 = vnez %v7931_v46 }
 0x18b   : > { %3315 = vmatmul.mubr.f32.gmra.mrb[4].mxu1 %v7908_v37  ;;  %1714 = vmatprep.mubr.f32.mxu0 %v7397_v26 }
 0x18c   : > { %3320 = vmatprep.mubr.f32.mxu1 %v7397_v26  ;;  %4242 = vmatpush1.bf16.msk.msra.mxu0 %vm7910_vm4, %v7658_v4  ;;  %vm7934_vm4 = vnez %v7933_v8 }
 0x18d   : > { %4434 = vmatpush1.bf16.msk.msra.mxu1 %vm7912_vm5, %v7658_v4  ;;  %4244 = vmatprep.subr.msk.bf16.mxu0 %vm7914_vm10, %v7658_v4  ;;  %vm7936_vm5 = vnez %v7935_v42  ;;  %vm7940_vm10 = vnez %v7939_v13 }
 0x18e   : > { %4436 = vmatprep.subr.msk.bf16.mxu1 %vm7916_vm11, %v7658_v4  ;;  %1716 = vmatmul.mubr.f32.gmra.mrb[6].mxu0 %v7917_v38  ;;  %vm7942_vm11 = vnez %v7941_v9 }
 0x18f   : > { %3322 = vmatmul.mubr.f32.gmra.mrb[6].mxu1 %v7918_v27  ;;  %1721 = vmatprep.mubr.f32.mxu0 %v7397_v26 }
 0x190   : > { %3327 = vmatprep.mubr.f32.mxu1 %v7397_v26  ;;  %4246 = vmatpush1.bf16.msk.msra.mxu0 %vm7920_vm0, %v7658_v4  ;;  %vm7944_vm0 = vnez %v7943_v63 }
 0x191   : > { %4438 = vmatpush1.bf16.msk.msra.mxu1 %vm7922_vm1, %v7658_v4  ;;  %4248 = vmatprep.subr.msk.bf16.mxu0 %vm7924_vm8, %v7658_v4  ;;  %vm7946_vm1 = vnez %v7945_v21  ;;  %vm3740_vm8 = vcmask 1040384  }
 0x192   : > { %4440 = vmatprep.subr.msk.bf16.mxu1 %vm7926_vm9, %v7658_v4  ;;  %1723 = vmatmul.mubr.f32.gmra.mrb[8].mxu0 %v7927_v39 }
 0x193   : > { %3329 = vmatmul.mubr.f32.gmra.mrb[8].mxu1 %v7928_v40  ;;  %1728 = vmatprep.mubr.f32.mxu0 %v7397_v26 }
 0x194   : > { %3334 = vmatprep.mubr.f32.mxu1 %v7397_v26  ;;  %4250 = vmatpush1.bf16.msk.msra.mxu0 %vm7930_vm2, %v7658_v4 }
 0x195   : > { %4442 = vmatpush1.bf16.msk.msra.mxu1 %vm7932_vm3, %v7658_v4  ;;  %4252 = vmatprep.subr.msk.bf16.mxu0 %vm7934_vm4, %v7658_v4 }
 0x196   : > { %4444 = vmatprep.subr.msk.bf16.mxu1 %vm7936_vm5, %v7658_v4  ;;  %1730 = vmatmul.mubr.f32.gmra.mrb[10].mxu0 %v7937_v14 }
 0x197   : > { %3336 = vmatmul.mubr.f32.gmra.mrb[10].mxu1 %v7938_v30  ;;  %1735 = vmatprep.mubr.f32.mxu0 %v7397_v26 }
 0x198   : > { %3341 = vmatprep.mubr.f32.mxu1 %v7397_v26  ;;  %4254 = vmatpush1.bf16.msk.msra.mxu0 %vm7940_vm10, %v7658_v4 }
 0x199   : > { %4446 = vmatpush1.bf16.msk.msra.mxu1 %vm7942_vm11, %v7658_v4  ;;  %4256 = vmatprep.subr.msk.bf16.mxu0 %vm7944_vm0, %v7658_v4 }
 0x19a   : > { %4448 = vmatprep.subr.msk.bf16.mxu1 %vm7946_vm1, %v7658_v4  ;;  %1737 = vmatmul.mubr.f32.gmra.mrb[12].mxu0 %v7947_v7 }
 0x19b   : > { %3343 = vmatmul.mubr.f32.gmra.mrb[12].mxu1 %v7948_v29  ;;  %1742 = vmatprep.mubr.f32.mxu0 %v7397_v26 }
 0x19c   : > { %3348 = vmatprep.mubr.f32.mxu1 %v7397_v26  ;;  %4258 = vmatpush1.bf16.msk.msra.mxu0 %vm7730_vm6, %v7658_v4 }
 0x19d   : > { %4450 = vmatpush1.bf16.msk.msra.mxu1 %vm7732_vm7, %v7658_v4  ;;  %4260 = vmatprep.subr.msk.bf16.mxu0 %vm7734_vm12, %v7658_v4 }
 0x19e   : > { %4452 = vmatprep.subr.msk.bf16.mxu1 %vm7736_vm13, %v7658_v4  ;;  %1744 = vmatmul.mubr.f32.gmra.mrb[14].mxu0 %v7953_v12 }
 0x19f   : > { %3350 = vmatmul.mubr.f32.gmra.mrb[14].mxu1 %v7954_v48  ;;  %1749 = vmatprep.mubr.f32.mxu0 %v7397_v26 }
 0x1a0   : > { %3355 = vmatprep.mubr.f32.mxu1 %v7397_v26  ;;  %4262 = vmatpush1.bf16.msk.msra.mxu0 %vm5522_vm14, %v7658_v4 }
 0x1a1   : > { %4454 = vmatpush1.bf16.msk.msra.mxu1 %vm5535_vm15, %v7658_v4  ;;  %v7963_v4 = vld [vmem:[#allocation71_spill] sm:$0xff] }
 0x1a2   : > { %1751 = vmatmul.mubr.f32.gmra.mrb[16].mxu0 %v7957_v57 }
 0x1a3   : > { %3357 = vmatmul.mubr.f32.gmra.mrb[16].mxu1 %v7958_v58  ;;  %1756 = vmatprep.mubr.f32.mxu0 %v7397_v26 }
 0x1a4   : > { %3362 = vmatprep.mubr.f32.mxu1 %v7397_v26 }
 0x1a6   : > { %1758 = vmatmul.mubr.f32.gmra.mrb[18].mxu0 %v7959_v60 }
 0x1a7   : > { %3364 = vmatmul.mubr.f32.gmra.mrb[18].mxu1 %v7960_v50  ;;  %1763 = vmatprep.mubr.f32.mxu0 %v7397_v26 }
 0x1a8   : > { %3369 = vmatprep.mubr.f32.mxu1 %v7397_v26 }
 0x1aa   : > { %1765 = vmatmul.mubr.f32.gmra.mrb[20].mxu0 %v7961_v10 }
 0x1ab   : > { %3371 = vmatmul.mubr.f32.gmra.mrb[20].mxu1 %v7962_v23  ;;  %1770 = vmatprep.mubr.f32.mxu0 %v7397_v26 }
 0x1ac   : > { %3376 = vmatprep.mubr.f32.mxu1 %v7397_v26 }
 0x1ae   : > { %1772 = vmatmul.mubr.f32.gmra.mrb[22].mxu0 %v7963_v4 }
 0x1af   : > { %3378 = vmatmul.mubr.f32.gmra.mrb[22].mxu1 %v7964_v5  ;;  %1777 = vmatprep.mubr.f32.mxu0 %v7397_v26 }
 0x1b0   : > { %3383 = vmatprep.mubr.f32.mxu1 %v7397_v26 }
 0x1b2   : > { %1779 = vmatmul.mubr.f32.gmra.mrb[24].mxu0 %v7965_v61 }
 0x1b3   : > { %3385 = vmatmul.mubr.f32.gmra.mrb[24].mxu1 %v7966_v19  ;;  %1784 = vmatprep.mubr.f32.mxu0 %v7397_v26 }
 0x1b4   : > { %3390 = vmatprep.mubr.f32.mxu1 %v7397_v26 }
 0x1b6   : > { %1786 = vmatmul.mubr.f32.gmra.mrb[26].mxu0 %v7967_v31 }
 0x1b7   : > { %3392 = vmatmul.mubr.f32.gmra.mrb[26].mxu1 %v7968_v35  ;;  %1791 = vmatprep.mubr.f32.mxu0 %v7397_v26 }
 0x1b8   : > { %3397 = vmatprep.mubr.f32.mxu1 %v7397_v26 }
 0x1ba   : > { %1793 = vmatmul.mubr.f32.gmra.mrb[28].mxu0 %v7969_v34 }
 0x1bb   : > { %3399 = vmatmul.mubr.f32.gmra.mrb[28].mxu1 %v7970_v54  ;;  %1798 = vmatprep.mubr.f32.mxu0 %v7397_v26 }
 0x1bc   : > { %3404 = vmatprep.mubr.f32.mxu1 %v7397_v26 }
 0x1be   : > { %1800 = vmatmul.mubr.f32.gmra.mrb[30].mxu0 %v7971_v25 }
 0x1bf   : > { %3406 = vmatmul.mubr.f32.gmra.mrb[30].mxu1 %v7972_v52  ;;  %1902 = vmatprep.mubr.f32.mxu0 %v7397_v26 }
 0x1c0   : > { %3508 = vmatprep.mubr.f32.mxu1 %v7397_v26 }
 0x1c2   : > { %1904 = vmatmul.mubr.f32.vlgmr.msra.gmra.mrb[0].mxu0 %v7895_v47 }
 0x1c3   : > { %3510 = vmatmul.mubr.f32.vlgmr.msra.gmra.mrb[0].mxu1 %v7896_v62  ;;  %1909 = vmatprep.mubr.f32.mxu0 %v7397_v26 }
 0x1c4   : > { %3515 = vmatprep.mubr.f32.mxu1 %v7397_v26 }
 0x1c6   : > { %1911 = vmatmul.mubr.f32.gmra.mrb[2].mxu0 %v7901_v16 }
 0x1c7   : > { %3517 = vmatmul.mubr.f32.gmra.mrb[2].mxu1 %v7902_v51  ;;  %1916 = vmatprep.mubr.f32.mxu0 %v7397_v26 }
 0x1c8   : > { %3522 = vmatprep.mubr.f32.mxu1 %v7397_v26 }
 0x1ca   : > { %1918 = vmatmul.mubr.f32.gmra.mrb[4].mxu0 %v7907_v22 }
 0x1cb   : > { %3524 = vmatmul.mubr.f32.gmra.mrb[4].mxu1 %v7908_v37  ;;  %1923 = vmatprep.mubr.f32.mxu0 %v7397_v26 }
 0x1cc   : > { %3529 = vmatprep.mubr.f32.mxu1 %v7397_v26 }
 0x1ce   : > { %1925 = vmatmul.mubr.f32.gmra.mrb[6].mxu0 %v7917_v38 }
 0x1cf   : > { %3531 = vmatmul.mubr.f32.gmra.mrb[6].mxu1 %v7918_v27  ;;  %1930 = vmatprep.mubr.f32.mxu0 %v7397_v26 }
 0x1d0   : > { %3536 = vmatprep.mubr.f32.mxu1 %v7397_v26 }
 0x1d2   : > { %1932 = vmatmul.mubr.f32.gmra.mrb[8].mxu0 %v7927_v39 }
 0x1d3   : > { %3538 = vmatmul.mubr.f32.gmra.mrb[8].mxu1 %v7928_v40  ;;  %1937 = vmatprep.mubr.f32.mxu0 %v7397_v26 }
 0x1d4   : > { %3543 = vmatprep.mubr.f32.mxu1 %v7397_v26 }
 0x1d6   : > { %1939 = vmatmul.mubr.f32.gmra.mrb[10].mxu0 %v7937_v14 }
 0x1d7   : > { %3545 = vmatmul.mubr.f32.gmra.mrb[10].mxu1 %v7938_v30  ;;  %1944 = vmatprep.mubr.f32.mxu0 %v7397_v26 }
 0x1d8   : > { %3550 = vmatprep.mubr.f32.mxu1 %v7397_v26 }
 0x1da   : > { %1946 = vmatmul.mubr.f32.gmra.mrb[12].mxu0 %v7947_v7 }
 0x1db   : > { %3552 = vmatmul.mubr.f32.gmra.mrb[12].mxu1 %v7948_v29  ;;  %1951 = vmatprep.mubr.f32.mxu0 %v7397_v26 }
 0x1dc   : > { %3557 = vmatprep.mubr.f32.mxu1 %v7397_v26 }
 0x1de   : > { %1953 = vmatmul.mubr.f32.gmra.mrb[14].mxu0 %v7953_v12 }
 0x1df   : > { %3559 = vmatmul.mubr.f32.gmra.mrb[14].mxu1 %v7954_v48  ;;  %1958 = vmatprep.mubr.f32.mxu0 %v7397_v26 }
 0x1e0   : > { %3564 = vmatprep.mubr.f32.mxu1 %v7397_v26 }
 0x1e2   : > { %1960 = vmatmul.mubr.f32.gmra.mrb[16].mxu0 %v7957_v57 }
 0x1e3   : > { %3566 = vmatmul.mubr.f32.gmra.mrb[16].mxu1 %v7958_v58  ;;  %1965 = vmatprep.mubr.f32.mxu0 %v7397_v26 }
 0x1e4   : > { %3571 = vmatprep.mubr.f32.mxu1 %v7397_v26 }
 0x1e6   : > { %1967 = vmatmul.mubr.f32.gmra.mrb[18].mxu0 %v7959_v60 }
 0x1e7   : > { %3573 = vmatmul.mubr.f32.gmra.mrb[18].mxu1 %v7960_v50  ;;  %1972 = vmatprep.mubr.f32.mxu0 %v7397_v26 }
 0x1e8   : > { %3578 = vmatprep.mubr.f32.mxu1 %v7397_v26 }
 0x1ea   : > { %1974 = vmatmul.mubr.f32.gmra.mrb[20].mxu0 %v7961_v10 }
 0x1eb   : > { %3580 = vmatmul.mubr.f32.gmra.mrb[20].mxu1 %v7962_v23  ;;  %1979 = vmatprep.mubr.f32.mxu0 %v7397_v26 }
 0x1ec   : > { %3585 = vmatprep.mubr.f32.mxu1 %v7397_v26 }
 0x1ee   : > { %1981 = vmatmul.mubr.f32.gmra.mrb[22].mxu0 %v7963_v4 }
 0x1ef   : > { %3587 = vmatmul.mubr.f32.gmra.mrb[22].mxu1 %v7964_v5  ;;  %1986 = vmatprep.mubr.f32.mxu0 %v7397_v26 }
 0x1f0   : > { %3592 = vmatprep.mubr.f32.mxu1 %v7397_v26 }
 0x1f2   : > { %1988 = vmatmul.mubr.f32.gmra.mrb[24].mxu0 %v7965_v61 }
 0x1f3   : > { %3594 = vmatmul.mubr.f32.gmra.mrb[24].mxu1 %v7966_v19  ;;  %1993 = vmatprep.mubr.f32.mxu0 %v7397_v26 }
 0x1f4   : > { %3599 = vmatprep.mubr.f32.mxu1 %v7397_v26 }
 0x1f6   : > { %1995 = vmatmul.mubr.f32.gmra.mrb[26].mxu0 %v7967_v31 }
 0x1f7   : > { %3601 = vmatmul.mubr.f32.gmra.mrb[26].mxu1 %v7968_v35  ;;  %2000 = vmatprep.mubr.f32.mxu0 %v7397_v26 }
 0x1f8   : > { %3606 = vmatprep.mubr.f32.mxu1 %v7397_v26 }
 0x1fa   : > { %2002 = vmatmul.mubr.f32.gmra.mrb[28].mxu0 %v7969_v34 }
 0x1fb   : > { %3608 = vmatmul.mubr.f32.gmra.mrb[28].mxu1 %v7970_v54  ;;  %2007 = vmatprep.mubr.f32.mxu0 %v7397_v26 }
 0x1fc   : > { %3613 = vmatprep.mubr.f32.mxu1 %v7397_v26 }
 0x1fe   : > { %2009 = vmatmul.mubr.f32.gmra.mrb[30].mxu0 %v7971_v25 }
 0x1ff   : > { %3615 = vmatmul.mubr.f32.gmra.mrb[30].mxu1 %v7972_v52 }
 0x295   : > { %v1905_v2 = vpop.f32.mrb[0].mxu0 }
 0x296   : > { %v3511_v47 = vpop.f32.mrb[0].mxu1  ;;  %v1907_v0 = vpop.f32.mrb[1].mxu0 }
 0x297   : > { %v3621_v62 = vmul.f32 %v3511_v47, %v1905_v2  ;;  %v3513_v24 = vpop.f32.mrb[1].mxu1 }
 0x298   : > { %v3622_v43 = vmul.f32 %v3513_v24, %v1907_v0 }
 0x299   : > { %v1912_v45 = vpop.f32.mrb[2].mxu0 }
 0x29a   : > { %v3518_v16 = vpop.f32.mrb[2].mxu1  ;;  %v1914_v28 = vpop.f32.mrb[3].mxu0 }
 0x29b   : > { %v3623_v51 = vmul.f32 %v3518_v16, %v1912_v45  ;;  %v3520_v49 = vpop.f32.mrb[3].mxu1 }
 0x29c   : > { %v3624_v11 = vmul.f32 %v3520_v49, %v1914_v28 }
 0x29d   : > { %v3653_v20 = vadd.f32 %v3623_v51, %v3621_v62  ;;  %v1919_v37 = vpop.f32.mrb[4].mxu0 }
 0x29e   : > { %v3674_v22 = vadd.f32 %v3624_v11, %v3622_v43  ;;  %v3525_v6 = vpop.f32.mrb[4].mxu1  ;;  %v1921_v32 = vpop.f32.mrb[5].mxu0 }
 0x29f   : > { %v3625_v36 = vmul.f32 %v3525_v6, %v1919_v37  ;;  %v3527_v59 = vpop.f32.mrb[5].mxu1 }
 0x2a0   : > { %v3626_v38 = vmul.f32 %v3527_v59, %v1921_v32 }
 0x2a1   : > { %v3654_v27 = vadd.f32 %v3653_v20, %v3625_v36  ;;  %v1926_v18 = vpop.f32.mrb[6].mxu0 }
 0x2a2   : > { %v3675_v44 = vadd.f32 %v3674_v22, %v3626_v38  ;;  %v3532_v1 = vpop.f32.mrb[6].mxu1  ;;  %v1928_v39 = vpop.f32.mrb[7].mxu0 }
 0x2a3   : > { %v3627_v3 = vmul.f32 %v3532_v1, %v1926_v18  ;;  %v3534_v40 = vpop.f32.mrb[7].mxu1 }
 0x2a4   : > { %v3628_v15 = vmul.f32 %v3534_v40, %v1928_v39 }
 0x2a5   : > { %v3655_v46 = vadd.f32 %v3654_v27, %v3627_v3  ;;  %v1933_v42 = vpop.f32.mrb[8].mxu0 }
 0x2a6   : > { %v3676_v8 = vadd.f32 %v3675_v44, %v3628_v15  ;;  %v3539_v14 = vpop.f32.mrb[8].mxu1  ;;  %v1935_v13 = vpop.f32.mrb[9].mxu0 }
 0x2a7   : > { %v3629_v30 = vmul.f32 %v3539_v14, %v1933_v42  ;;  %v3541_v9 = vpop.f32.mrb[9].mxu1 }
 0x2a8   : > { %v3630_v63 = vmul.f32 %v3541_v9, %v1935_v13 }
 0x2a9   : > { %v3656_v21 = vadd.f32 %v3655_v46, %v3629_v30  ;;  %v1940_v29 = vpop.f32.mrb[10].mxu0 }
 0x2aa   : > { %v3677_v7 = vadd.f32 %v3676_v8, %v3630_v63  ;;  %v3546_v33 = vpop.f32.mrb[10].mxu1  ;;  %v1942_v41 = vpop.f32.mrb[11].mxu0 }
 0x2ab   : > { %v3631_v55 = vmul.f32 %v3546_v33, %v1940_v29  ;;  %v3548_v56 = vpop.f32.mrb[11].mxu1 }
 0x2ac   : > { %v3632_v12 = vmul.f32 %v3548_v56, %v1942_v41 }
 0x2ad   : > { %v3657_v48 = vadd.f32 %v3656_v21, %v3631_v55  ;;  %v1947_v53 = vpop.f32.mrb[12].mxu0 }
 0x2ae   : > { %v3678_v17 = vadd.f32 %v3677_v7, %v3632_v12  ;;  %v3553_v57 = vpop.f32.mrb[12].mxu1  ;;  %v1949_v60 = vpop.f32.mrb[13].mxu0 }
 0x2af   : > { %v3633_v58 = vmul.f32 %v3553_v57, %v1947_v53  ;;  %v3555_v50 = vpop.f32.mrb[13].mxu1 }
 0x2b0   : > { %v3634_v10 = vmul.f32 %v3555_v50, %v1949_v60 }
 0x2b1   : > { %v3658_v23 = vadd.f32 %v3657_v48, %v3633_v58  ;;  %v1954_v5 = vpop.f32.mrb[14].mxu0 }
 0x2b2   : > { %v3679_v4 = vadd.f32 %v3678_v17, %v3634_v10  ;;  %v3560_v61 = vpop.f32.mrb[14].mxu1  ;;  %v1956_v31 = vpop.f32.mrb[15].mxu0 }
 0x2b3   : > { %v3635_v19 = vmul.f32 %v3560_v61, %v1954_v5  ;;  %v3562_v35 = vpop.f32.mrb[15].mxu1 }
 0x2b4   : > { %v3636_v34 = vmul.f32 %v3562_v35, %v1956_v31 }
 0x2b5   : > { %v3659_v54 = vadd.f32 %v3658_v23, %v3635_v19  ;;  %v1961_v52 = vpop.f32.mrb[16].mxu0 }
 0x2b6   : > { %v3680_v25 = vadd.f32 %v3679_v4, %v3636_v34  ;;  %v3567_v2 = vpop.f32.mrb[16].mxu1  ;;  %v1963_v62 = vpop.f32.mrb[17].mxu0 }
 0x2b7   : > { %v3637_v47 = vmul.f32 %v3567_v2, %v1961_v52  ;;  %v3569_v0 = vpop.f32.mrb[17].mxu1 }
 0x2b8   : > { %v3638_v24 = vmul.f32 %v3569_v0, %v1963_v62 }
 0x2b9   : > { %v3660_v43 = vadd.f32 %v3659_v54, %v3637_v47  ;;  %v1968_v16 = vpop.f32.mrb[18].mxu0 }
 0x2ba   : > { %v3681_v45 = vadd.f32 %v3680_v25, %v3638_v24  ;;  %v3574_v51 = vpop.f32.mrb[18].mxu1  ;;  %v1970_v49 = vpop.f32.mrb[19].mxu0  ;;  %v7973_v25 = vlaneseq }
 0x2bb   : > { %v3639_v28 = vmul.f32 %v3574_v51, %v1968_v16  ;;  %v3576_v11 = vpop.f32.mrb[19].mxu1 }
 0x2bc   : > { %v3640_v20 = vmul.f32 %v3576_v11, %v1970_v49  ;;  %v3701_v52 = vand.u32 127, %v7973_v25 }
 0x2bd   : > { %v3661_v22 = vadd.f32 %v3660_v43, %v3639_v28  ;;  %v1975_v6 = vpop.f32.mrb[20].mxu0  ;;  %v3703_v43 = vstv %s4067_s8 }
 0x2be   : > { %v3682_v37 = vadd.f32 %v3681_v45, %v3640_v20  ;;  %v3581_v36 = vpop.f32.mrb[20].mxu1  ;;  %v1977_v59 = vpop.f32.mrb[21].mxu0  ;;  %v3702_v24 = vadd.s32 128, %v3701_v52  ;;  %v3704_v28 = vadd.s32 %v3703_v43, %v3701_v52 }
 0x2bf   : > { %v3641_v32 = vmul.f32 %v3581_v36, %v1975_v6  ;;  %v3583_v38 = vpop.f32.mrb[21].mxu1 }
 0x2c0   : > { %v3642_v27 = vmul.f32 %v3583_v38, %v1977_v59  ;;  %v3705_v11 = vadd.s32 %v3703_v43, %v3702_v24  ;;  %vm3706_vm14 = vcmp.lt.s32.totalorder %v3704_v28, 144  ;;  %v4806_v59 = vmov 1.0  }
 0x2c1   : > { %v3662_v44 = vadd.f32 %v3661_v22, %v3641_v32  ;;  %v1982_v1 = vpop.f32.mrb[22].mxu0  ;;  %v3708_v38 = vsel %vm3706_vm14, -1.0, %v4806_v59  ;;  %vm3710_vm6 = vcmp.lt.s32.totalorder %v3704_v28, 432 }
 0x2c2   : > { %v3683_v18 = vadd.f32 %v3682_v37, %v3642_v27  ;;  %v3588_v3 = vpop.f32.mrb[22].mxu1  ;;  %v1984_v40 = vpop.f32.mrb[23].mxu0  ;;  %vm3707_vm15 = vcmp.lt.s32.totalorder %v3705_v11, 144  ;;  %vm3711_vm7 = vcmp.lt.s32.totalorder %v3705_v11, 432 }
 0x2c3   : > { %v3643_v39 = vmul.f32 %v3588_v3, %v1982_v1  ;;  %v3590_v15 = vpop.f32.mrb[23].mxu1 }
 0x2c4   : > { %v3644_v46 = vmul.f32 %v3590_v15, %v1984_v40 }
 0x2c5   : > { %v3663_v8 = vadd.f32 %v3662_v44, %v3643_v39  ;;  %v1989_v14 = vpop.f32.mrb[24].mxu0  ;;  %v3709_v44 = vsel %vm3707_vm15, -1.0, %v4806_v59 }
 0x2c6   : > { %v3684_v42 = vadd.f32 %v3683_v18, %v3644_v46  ;;  %v3595_v30 = vpop.f32.mrb[24].mxu1  ;;  %v1991_v9 = vpop.f32.mrb[25].mxu0 }
 0x2c7   : > { %v3645_v13 = vmul.f32 %v3595_v30, %v1989_v14  ;;  %v3597_v63 = vpop.f32.mrb[25].mxu1 }
 0x2c8   : > { %v3646_v21 = vmul.f32 %v3597_v63, %v1991_v9 }
 0x2c9   : > { %v3664_v7 = vadd.f32 %v3663_v8, %v3645_v13  ;;  %v1996_v33 = vpop.f32.mrb[26].mxu0 }
 0x2ca   : > { %v3685_v29 = vadd.f32 %v3684_v42, %v3646_v21  ;;  %v3602_v55 = vpop.f32.mrb[26].mxu1  ;;  %v1998_v56 = vpop.f32.mrb[27].mxu0 }
 0x2cb   : > { %v3647_v41 = vmul.f32 %v3602_v55, %v1996_v33  ;;  %v3604_v12 = vpop.f32.mrb[27].mxu1  ;;  %v3712_v33 = vsel %vm3710_vm6, 0.0069444445, %v7397_v26 }
 0x2cc   : > { %v3648_v48 = vmul.f32 %v3604_v12, %v1998_v56  ;;  %v3713_v56 = vsel %vm3711_vm7, 0.0069444445, %v7397_v26 }
 0x2cd   : > { %v3665_v17 = vadd.f32 %v3664_v7, %v3647_v41  ;;  %v2003_v57 = vpop.f32.mrb[28].mxu0 }
 0x2ce   : > { %v3686_v53 = vadd.f32 %v3685_v29, %v3648_v48  ;;  %v3609_v58 = vpop.f32.mrb[28].mxu1  ;;  %v2005_v50 = vpop.f32.mrb[29].mxu0 }
 0x2cf   : > { %v3649_v60 = vmul.f32 %v3609_v58, %v2003_v57  ;;  %v3611_v10 = vpop.f32.mrb[29].mxu1 }
 0x2d0   : > { %v3650_v23 = vmul.f32 %v3611_v10, %v2005_v50 }
 0x2d1   : > { %v3666_v4 = vadd.f32 %v3665_v17, %v3649_v60  ;;  %v2010_v61 = vpop.f32.mrb[30].mxu0 }
 0x2d2   : > { %v3687_v5 = vadd.f32 %v3686_v53, %v3650_v23  ;;  %v3616_v19 = vpop.f32.mrb[30].mxu1  ;;  %v2012_v35 = vpop.f32.mrb[31].mxu0 }
 0x2d3   : > { %v3651_v31 = vmul.f32 %v3616_v19, %v2010_v61  ;;  %v3618_v34 = vpop.f32.mrb[31].mxu1 }
 0x2d4   : > { %v3652_v54 = vmul.f32 %v3618_v34, %v2012_v35 }
 0x2d5   : > { %v3667_v2 = vadd.f32 %v3666_v4, %v3651_v31 }
 0x2d6   : > { %v3688_v47 = vadd.f32 %v3687_v5, %v3652_v54 }
 0x2d7   : > { %v3668_v62 = vrot.slane %v3667_v2, 4 }
 0x2d8   : > { %v3689_v0 = vrot.slane %v3688_v47, 4 }
 0x2d9   : > { %v3669_v45 = vadd.f32 %v3668_v62, %v3667_v2 }
 0x2da   : > { %v3690_v16 = vadd.f32 %v3689_v0, %v3688_v47 }
 0x2db   : > { %v3670_v51 = vrot.slane %v3669_v45, 2 }
 0x2dc   : > { %v3691_v49 = vrot.slane %v3690_v16, 2 }
 0x2dd   : > { %v3671_v20 = vadd.f32 %v3670_v51, %v3669_v45 }
 0x2de   : > { %v3692_v22 = vadd.f32 %v3691_v49, %v3690_v16 }
 0x2df   : > { %v3672_v37 = vrot.slane %v3671_v20, 1 }
 0x2e0   : > { %v3693_v6 = vrot.slane %v3692_v22, 1 }
 0x2e1   : > { %v3673_v36 = vadd.f32 %v3672_v37, %v3671_v20 }
 0x2e2   : > { %v3694_v32 = vadd.f32 %v3693_v6, %v3692_v22 }
 0x2e3   : > { %v4065_v27 = vclamps-f32 %v3673_v36, 6.0 }
 0x2e4   : > { %v4066_v18 = vclamps-f32 %v3694_v32, 6.0 }
 0x2e5   : > { %v3714_v1 = vmul.f32 %v4065_v27, %v3708_v38 }
 0x2e6   : > { %v3715_v3 = vmul.f32 %v4066_v18, %v3709_v44 }
 0x2e7   : > { %v3716_v39 = vmul.f32 1.442695, %v3714_v1 }
 0x2e8   : > { %v3718_v40 = vmul.f32 1.442695, %v3715_v3 }
 0x2e9   : > { %4788 = vpow2.f32 %v3716_v39 }
 0x2ea   : > { %4790 = vpow2.f32 %v3718_v40 }
 0x2f3   : > { %v4789_v15 = vpop.eup %4788 }
 0x2f4   : > { %v4791_v46 = vpop.eup %4790  ;;  %v3720_v8 = vadd.f32 1.0, %v4789_v15  ;;  %v3723_v14 = vmul.f32 -0.5, %v4789_v15  ;;  %v3726_v9 = vand.u32 2147483647, %v4789_v15 }
 0x2f5   : > { %v3729_v42 = vadd.f32 1.0, %v4791_v46  ;;  %v3732_v30 = vmul.f32 -0.5, %v4791_v46  ;;  %v3735_v21 = vand.u32 2147483647, %v4791_v46 }
 0x2f6   : > { %4792 = vlog2.f32 %v3720_v8  ;;  %v3724_v13 = vadd.f32 1.0, %v3723_v14  ;;  %vm3727_vm12 = vcmp.lt.f32.partialorder %v3726_v9, 0.0004427343 }
 0x2f7   : > { %4794 = vlog2.f32 %v3729_v42  ;;  %v3733_v63 = vadd.f32 1.0, %v3732_v30  ;;  %vm3736_vm13 = vcmp.lt.f32.partialorder %v3735_v21, 0.0004427343 }
 0x2f8   : > { %v3725_v41 = vmul.f32 %v4789_v15, %v3724_v13 }
 0x2f9   : > { %v3734_v48 = vmul.f32 %v4791_v46, %v3733_v63 }
 0x300   : > { %v4793_v7 = vpop.eup %4792 }
 0x301   : > { %v4795_v29 = vpop.eup %4794  ;;  %v3722_v55 = vmul.f32 0.6931472, %v4793_v7 }
 0x302   : > { %v3731_v12 = vmul.f32 0.6931472, %v4795_v29 }
 0x303   : > { %v3728_v17 = vsel %vm3727_vm12, %v3725_v41, %v3722_v55 }
 0x304   : > { %v3737_v53 = vsel %vm3736_vm13, %v3734_v48, %v3731_v12  ;;  %v3738_v57 = vmul.f32 %v3728_v17, %v3712_v33 }
 0x305   : > { %v3739_v58 = vmul.f32 %v3737_v53, %v3713_v56 }
 0x306   : > { %v3741_v60 = vsel %vm3740_vm8, %v3738_v57, 0.0 }
 0x307   : > { %v3742_v50 = vsel %vm3740_vm8, %v3739_v58, 0.0 }
 0x308   : > { %v3743_v10 = vadd.f32 %v3742_v50, %v3741_v60 }
 0x30a   : > { %3744 = vadd.xlane.f32.xlu0 %v3743_v10 }
 0x397   : > { %v3745_v23 = vpop.xlane.xlu0 %3744 }
 0x398   : > { %v3746_v4 = vrot.slane %v3745_v23, 4 }
 0x39a   : > { %v3747_v5 = vadd.f32 %v3746_v4, %v3745_v23 }
 0x39c   : > { %v3748_v61 = vrot.slane %v3747_v5, 2 }
 0x39e   : > { %v3749_v19 = vadd.f32 %v3748_v61, %v3747_v5 }
 0x3a0   : > { %v3750_v26 = vrot.slane %v3749_v19, 1 }
 0x3a2   : > { %v3751_v31 = vadd.f32 %v3750_v26, %v3749_v19 }
 0x3a4   : > { %4775 = vpush %v3751_v31 }
 0x3d5   : > { %s4776_s11 = spop %4775 }
 0x3d6   : > { %v3753_v35 = vstv %s4776_s11 }
 0x3d7   : > { %3754 = vst [vmem:[%s166_s10] sm:$0x1] %v3753_v35 }
 0x3d8 PF: > { %s13_s12 = sadd.s32 1, %s4802_s12  }
 0x3d9   : > { %p10_p4 = scmp.ge.s32.totalorder %s13_s12, 4  }
 0x3db   :  { %12 = sbr.rel (!%p10_p4) target bundleno = 1 (0x1), region = 62 }

</bundles_post_ra>
